<compile_context>
chip_gen: v6e
topology: v6e:2x2x1
jax: 0.10.0
libtpu: 0.0.40
codegen_flags: <defaults>
</compile_context>

<pallas_src>
import jax
import jax.numpy as jnp
from jax.experimental import pallas as pl
from jax.experimental.pallas import tpu as pltpu

# ----------------------------- config (small) -------------------------------
B = 2        # batch
N_IN = 128   # input point-cloud size (encoder_temporal input)
N_P = 128    # query points
DIM = 4      # 4-D points (x, y, z, t)
HID = 128    # hidden size of decoder / encoder
C_DIM = 128  # temporal latent code size
Z_DIM = 0    # p0_z defaults to Normal(empty) -> z has dimension 0


# --------------------------- fused encoder+decoder kernel -------------------
def onet4d_fused_kernel(p_ref, x_ref,
                        we1_ref, wenc_ref, wp_ref,
                        w1_ref, w2_ref, w3_ref, w4_ref, wo_ref,
                        bias_ref, bo_ref,
                        out_ref):
    f32 = jnp.float32

    # Packed bias columns: [be1, benc(=wc@be2), bp, b1, b2, b3, b4, pad]
    bias = bias_ref[...]                              # (HID, 8) f32
    be1 = bias[:, 0:1]
    benc = bias[:, 1:2]
    bp = bias[:, 2:3]
    b1 = bias[:, 3:4]
    b2 = bias[:, 4:5]
    b3 = bias[:, 5:6]
    b4 = bias[:, 6:7]

    # ---------------- encoder_temporal: simple PointNet ----------------
    #   h      = relu(We1 x + be1)                    (feature-major)
    #   pooled = per-batch max over points (lane axis)
    #   net_c  = Wc (We2 pooled + be2)  ==  Wenc pooled + benc   (fused, exact)
    h = jnp.maximum(
        jnp.dot(we1_ref[...], x_ref[...], preferred_element_type=f32) + be1,
        0.0)                                           # (HID, B*N_IN)
    pooled = jnp.max(h.reshape(HID, B, N_IN), axis=2)  # (HID, B)   one XLU reduce
    net_c = jnp.dot(wenc_ref[...], pooled,
                    preferred_element_type=f32) + benc  # (HID, B)  single matmul
    net_c_full = jnp.broadcast_to(
        net_c.reshape(HID, B, 1), (HID, B, N_P)).reshape(HID, B * N_P)

    # ---------------- decoder: fc_p + conditioning + 2 ResNet blocks ---------
    # z_dim == 0, so z (shape (B, 0)) is correctly not used by the decoder.
    net = (jnp.dot(wp_ref[...], p_ref[...], preferred_element_type=f32)
           + bp + net_c_full)                          # (HID, B*N_P)

    def resblock(net, wa, ba, wb, bb):
        dx = jnp.dot(wa, jnp.maximum(net, 0.0), preferred_element_type=f32) + ba
        dx = jnp.dot(wb, jnp.maximum(dx, 0.0), preferred_element_type=f32) + bb
        return net + dx

    net = resblock(net, w1_ref[...], b1, w2_ref[...], b2)
    net = resblock(net, w3_ref[...], b3, w4_ref[...], b4)

    # ---------------- fc_out + Bernoulli params (lane-dense (2, B*N_P)) ------
    logits = (jnp.dot(wo_ref[...], jnp.maximum(net, 0.0),
                      preferred_element_type=f32) + bo_ref[...])      # (1, B*N_P)
    probs = jax.nn.sigmoid(logits)                     # EUP; numerically safe
    out_ref[...] = jnp.concatenate([logits, probs], axis=0)           # (2, B*N_P)


# ------------------------------ parameter handling --------------------------
def init_params(key):
    """Standard (in, out) Linear layouts, matching the previous version."""
    ks = jax.random.split(key, 16)
    s = 0.05
    enc = (
        s * jax.random.normal(ks[0], (DIM, HID), jnp.float32),    # w1
        jnp.zeros((1, HID), jnp.float32),                         # b1
        s * jax.random.normal(ks[1], (HID, C_DIM), jnp.float32),  # w2
        jnp.zeros((1, C_DIM), jnp.float32),                       # b2
    )
    dec = (
        s * jax.random.normal(ks[2], (DIM, HID), jnp.float32),    # wp
        jnp.zeros((1, HID), jnp.float32),                         # bp
        s * jax.random.normal(ks[3], (C_DIM, HID), jnp.float32),  # wc (no bias: ONet convention)
        s * jax.random.normal(ks[4], (HID, HID), jnp.float32),    # w1
        jnp.zeros((1, HID), jnp.float32),
        s * jax.random.normal(ks[5], (HID, HID), jnp.float32),    # w2
        jnp.zeros((1, HID), jnp.float32),
        s * jax.random.normal(ks[6], (HID, HID), jnp.float32),    # w3
        jnp.zeros((1, HID), jnp.float32),
        s * jax.random.normal(ks[7], (HID, HID), jnp.float32),    # w4
        jnp.zeros((1, HID), jnp.float32),
        s * jax.random.normal(ks[8], (HID, 1), jnp.float32),      # wo
        jnp.zeros((1, 1), jnp.float32),                           # bo
    )
    return enc, dec


def _prep_weights(enc_params, dec_params):
    """Layout plumbing (outside the kernel): transpose to feature-major,
    fuse encoder fc2 with decoder fc_c (exact, no nonlinearity in between),
    pack all (HID,1) bias columns into one (HID,8) slab.  Everything f32."""
    col = lambda v: v.reshape(-1, 1)
    we1, be1, we2, be2 = enc_params
    (wp, bp, wc, w1, b1, w2, b2, w3, b3, w4, b4, wo, bo) = dec_params

    # Fused encoder-fc2 + decoder-fc_c:  net_c = wc^T (we2^T pooled + be2)
    wenc = wc.T @ we2.T                                # (HID, C_DIM) @ (C_DIM, HID)
    benc = wc.T @ col(be2)                             # (HID, 1)

    bias_pack = jnp.concatenate(
        [col(be1), benc, col(bp), col(b1), col(b2), col(b3), col(b4),
         jnp.zeros((HID, 1), jnp.float32)], axis=1)    # (HID, 8)

    weights = (
        we1.T,                                         # (HID, DIM)  f32
        wenc,                                          # (HID, HID)  f32 (fused)
        wp.T,                                          # (HID, DIM)  f32
        w1.T, w2.T, w3.T, w4.T,                        # (HID, HID)  f32
        wo.T,                                          # (1, HID)    f32
        bias_pack,                                     # (HID, 8)    f32
        bo.reshape(1, 1),                              # (1, 1)      f32
    )
    return weights


# ------------------------------ module wrapper ------------------------------
@jax.jit
def occupancy_network_4d_forward(p, inputs, enc_params, dec_params):
    """Mirrors OccupancyNetwork4D.forward: encode -> z from prior -> decode."""
    bsz, n_p, dim = p.shape
    n_in = inputs.shape[1]

    # get_z_from_prior: default p0_z = Normal(empty, empty) -> z of shape (B, 0);
    # sampling vs. mean are identical for a zero-dimensional latent (unused below).
    z = jnp.zeros((bsz, Z_DIM), jnp.float32)
    del z

    # Feature-major, batch folded into the lane (point) axis.
    p_t = p.reshape(bsz * n_p, dim).T         # (DIM, B*N_P)
    x_t = inputs.reshape(bsz * n_in, dim).T   # (DIM, B*N_IN)

    weights = _prep_weights(enc_params, dec_params)

    vmem = pl.BlockSpec(memory_space=pltpu.MemorySpace.VMEM)
    out = pl.pallas_call(
        onet4d_fused_kernel,
        out_shape=jax.ShapeDtypeStruct((2, bsz * n_p), jnp.float32),
        in_specs=[vmem] * (2 + len(weights)),
        out_specs=vmem,
    )(p_t, x_t, *weights)

    logits = out[0].reshape(bsz, n_p)         # Bernoulli(logits) canonical params
    probs = out[1].reshape(bsz, n_p)          # Bernoulli(logits).probs
    return logits, probs


# ----------------------------------- main -----------------------------------
if __name__ == "__main__":
    key = jax.random.PRNGKey(0)
    kp, ki, kw = jax.random.split(key, 3)

    p = jax.random.uniform(kp, (B, N_P, DIM), jnp.float32, minval=-0.5, maxval=0.5)
    inputs = jax.random.uniform(ki, (B, N_IN, DIM), jnp.float32, minval=-0.5, maxval=0.5)
    enc_params, dec_params = init_params(kw)

    logits, probs = occupancy_network_4d_forward(p, inputs, enc_params, dec_params)
    jax.block_until_ready((logits, probs))

    assert logits.shape == (B, N_P) and probs.shape == (B, N_P)
    assert bool(jnp.all(jnp.isfinite(logits)))
    assert bool(jnp.all((probs >= 0.0) & (probs <= 1.0)))
    print("KERNEL_OK")
</pallas_src>

<mosaic_0001>
module attributes {stable_mosaic.version = 11 : i64} {
  func.func @onet4d_fused_kernel(%arg0: memref<4x256xf32, #tpu.memory_space<vmem>>, %arg1: memref<4x256xf32, #tpu.memory_space<vmem>>, %arg2: memref<128x4xf32, #tpu.memory_space<vmem>>, %arg3: memref<128x128xf32, #tpu.memory_space<vmem>>, %arg4: memref<128x4xf32, #tpu.memory_space<vmem>>, %arg5: memref<128x128xf32, #tpu.memory_space<vmem>>, %arg6: memref<128x128xf32, #tpu.memory_space<vmem>>, %arg7: memref<128x128xf32, #tpu.memory_space<vmem>>, %arg8: memref<128x128xf32, #tpu.memory_space<vmem>>, %arg9: memref<1x128xf32, #tpu.memory_space<vmem>>, %arg10: memref<128x8xf32, #tpu.memory_space<vmem>>, %arg11: memref<1x1xf32, #tpu.memory_space<vmem>>, %arg12: memref<2x256xf32, #tpu.memory_space<vmem>>) attributes {dimension_semantics = [], scalar_prefetch = 0 : i64, scratch_operands = 0 : i64, tpu.core_type = #tpu.core_type<tc>} {
    %c0 = arith.constant 0 : index
    %c0_0 = arith.constant 0 : index
    %0 = vector.load %arg10[%c0, %c0_0] : memref<128x8xf32, #tpu.memory_space<vmem>>, vector<128x8xf32>
    %1 = vector.extract_strided_slice %0 {offsets = [0, 0], sizes = [128, 1], strides = [1, 1]} : vector<128x8xf32> to vector<128x1xf32>
    %2 = vector.extract_strided_slice %0 {offsets = [0, 1], sizes = [128, 1], strides = [1, 1]} : vector<128x8xf32> to vector<128x1xf32>
    %3 = vector.extract_strided_slice %0 {offsets = [0, 2], sizes = [128, 1], strides = [1, 1]} : vector<128x8xf32> to vector<128x1xf32>
    %4 = vector.extract_strided_slice %0 {offsets = [0, 3], sizes = [128, 1], strides = [1, 1]} : vector<128x8xf32> to vector<128x1xf32>
    %5 = vector.extract_strided_slice %0 {offsets = [0, 4], sizes = [128, 1], strides = [1, 1]} : vector<128x8xf32> to vector<128x1xf32>
    %6 = vector.extract_strided_slice %0 {offsets = [0, 5], sizes = [128, 1], strides = [1, 1]} : vector<128x8xf32> to vector<128x1xf32>
    %7 = vector.extract_strided_slice %0 {offsets = [0, 6], sizes = [128, 1], strides = [1, 1]} : vector<128x8xf32> to vector<128x1xf32>
    %c0_1 = arith.constant 0 : index
    %c0_2 = arith.constant 0 : index
    %8 = vector.load %arg2[%c0_1, %c0_2] : memref<128x4xf32, #tpu.memory_space<vmem>>, vector<128x4xf32>
    %c0_3 = arith.constant 0 : index
    %c0_4 = arith.constant 0 : index
    %9 = vector.load %arg1[%c0_3, %c0_4] : memref<4x256xf32, #tpu.memory_space<vmem>>, vector<4x256xf32>
    %cst = arith.constant dense<0.000000e+00> : vector<128x256xf32>
    %10 = tpu.matmul %8, %9, %cst {dimension_numbers = #tpu.dot_dimension_numbers<[1], [0], [0], [1], [0, 0, 1, 1], [], []>} : vector<128x4xf32>, vector<4x256xf32>, vector<128x256xf32> -> vector<128x256xf32>
    %11 = vector.broadcast %1 : vector<128x1xf32> to vector<128x256xf32>
    %12 = arith.addf %10, %11 : vector<128x256xf32>
    %cst_5 = arith.constant 0.000000e+00 : f32
    %13 = vector.broadcast %cst_5 : f32 to vector<128x256xf32>
    %14 = arith.maximumf %12, %13 : vector<128x256xf32>
    %15 = vector.shape_cast %14 : vector<128x256xf32> to vector<128x2x128xf32>
    %cst_6 = arith.constant dense<0xFF800000> : vector<128x2xf32>
    %16 = vector.multi_reduction <maximumf>, %15, %cst_6 [2] : vector<128x2x128xf32> to vector<128x2xf32>
    %c0_7 = arith.constant 0 : index
    %c0_8 = arith.constant 0 : index
    %17 = vector.load %arg3[%c0_7, %c0_8] : memref<128x128xf32, #tpu.memory_space<vmem>>, vector<128x128xf32>
    %cst_9 = arith.constant dense<0.000000e+00> : vector<128x2xf32>
    %18 = tpu.matmul %17, %16, %cst_9 {dimension_numbers = #tpu.dot_dimension_numbers<[1], [0], [0], [1], [0, 0, 1, 1], [], []>} : vector<128x128xf32>, vector<128x2xf32>, vector<128x2xf32> -> vector<128x2xf32>
    %19 = vector.broadcast %2 : vector<128x1xf32> to vector<128x2xf32>
    %20 = arith.addf %18, %19 : vector<128x2xf32>
    %21 = vector.shape_cast %20 : vector<128x2xf32> to vector<128x2x1xf32>
    %22 = vector.shape_cast %21 : vector<128x2x1xf32> to vector<128x2x1xf32>
    %23 = vector.broadcast %22 : vector<128x2x1xf32> to vector<128x2x128xf32>
    %24 = vector.shape_cast %23 : vector<128x2x128xf32> to vector<128x256xf32>
    %c0_10 = arith.constant 0 : index
    %c0_11 = arith.constant 0 : index
    %25 = vector.load %arg4[%c0_10, %c0_11] : memref<128x4xf32, #tpu.memory_space<vmem>>, vector<128x4xf32>
    %c0_12 = arith.constant 0 : index
    %c0_13 = arith.constant 0 : index
    %26 = vector.load %arg0[%c0_12, %c0_13] : memref<4x256xf32, #tpu.memory_space<vmem>>, vector<4x256xf32>
    %cst_14 = arith.constant dense<0.000000e+00> : vector<128x256xf32>
    %27 = tpu.matmul %25, %26, %cst_14 {dimension_numbers = #tpu.dot_dimension_numbers<[1], [0], [0], [1], [0, 0, 1, 1], [], []>} : vector<128x4xf32>, vector<4x256xf32>, vector<128x256xf32> -> vector<128x256xf32>
    %28 = vector.broadcast %3 : vector<128x1xf32> to vector<128x256xf32>
    %29 = arith.addf %27, %28 : vector<128x256xf32>
    %30 = arith.addf %29, %24 : vector<128x256xf32>
    %c0_15 = arith.constant 0 : index
    %c0_16 = arith.constant 0 : index
    %31 = vector.load %arg5[%c0_15, %c0_16] : memref<128x128xf32, #tpu.memory_space<vmem>>, vector<128x128xf32>
    %c0_17 = arith.constant 0 : index
    %c0_18 = arith.constant 0 : index
    %32 = vector.load %arg6[%c0_17, %c0_18] : memref<128x128xf32, #tpu.memory_space<vmem>>, vector<128x128xf32>
    %cst_19 = arith.constant 0.000000e+00 : f32
    %33 = vector.broadcast %cst_19 : f32 to vector<128x256xf32>
    %34 = arith.maximumf %30, %33 : vector<128x256xf32>
    %cst_20 = arith.constant dense<0.000000e+00> : vector<128x256xf32>
    %35 = tpu.matmul %31, %34, %cst_20 {dimension_numbers = #tpu.dot_dimension_numbers<[1], [0], [0], [1], [0, 0, 1, 1], [], []>} : vector<128x128xf32>, vector<128x256xf32>, vector<128x256xf32> -> vector<128x256xf32>
    %36 = vector.broadcast %4 : vector<128x1xf32> to vector<128x256xf32>
    %37 = arith.addf %35, %36 : vector<128x256xf32>
    %cst_21 = arith.constant 0.000000e+00 : f32
    %38 = vector.broadcast %cst_21 : f32 to vector<128x256xf32>
    %39 = arith.maximumf %37, %38 : vector<128x256xf32>
    %cst_22 = arith.constant dense<0.000000e+00> : vector<128x256xf32>
    %40 = tpu.matmul %32, %39, %cst_22 {dimension_numbers = #tpu.dot_dimension_numbers<[1], [0], [0], [1], [0, 0, 1, 1], [], []>} : vector<128x128xf32>, vector<128x256xf32>, vector<128x256xf32> -> vector<128x256xf32>
    %41 = vector.broadcast %5 : vector<128x1xf32> to vector<128x256xf32>
    %42 = arith.addf %40, %41 : vector<128x256xf32>
    %43 = arith.addf %30, %42 : vector<128x256xf32>
    %c0_23 = arith.constant 0 : index
    %c0_24 = arith.constant 0 : index
    %44 = vector.load %arg7[%c0_23, %c0_24] : memref<128x128xf32, #tpu.memory_space<vmem>>, vector<128x128xf32>
    %c0_25 = arith.constant 0 : index
    %c0_26 = arith.constant 0 : index
    %45 = vector.load %arg8[%c0_25, %c0_26] : memref<128x128xf32, #tpu.memory_space<vmem>>, vector<128x128xf32>
    %cst_27 = arith.constant 0.000000e+00 : f32
    %46 = vector.broadcast %cst_27 : f32 to vector<128x256xf32>
    %47 = arith.maximumf %43, %46 : vector<128x256xf32>
    %cst_28 = arith.constant dense<0.000000e+00> : vector<128x256xf32>
    %48 = tpu.matmul %44, %47, %cst_28 {dimension_numbers = #tpu.dot_dimension_numbers<[1], [0], [0], [1], [0, 0, 1, 1], [], []>} : vector<128x128xf32>, vector<128x256xf32>, vector<128x256xf32> -> vector<128x256xf32>
    %49 = vector.broadcast %6 : vector<128x1xf32> to vector<128x256xf32>
    %50 = arith.addf %48, %49 : vector<128x256xf32>
    %cst_29 = arith.constant 0.000000e+00 : f32
    %51 = vector.broadcast %cst_29 : f32 to vector<128x256xf32>
    %52 = arith.maximumf %50, %51 : vector<128x256xf32>
    %cst_30 = arith.constant dense<0.000000e+00> : vector<128x256xf32>
    %53 = tpu.matmul %45, %52, %cst_30 {dimension_numbers = #tpu.dot_dimension_numbers<[1], [0], [0], [1], [0, 0, 1, 1], [], []>} : vector<128x128xf32>, vector<128x256xf32>, vector<128x256xf32> -> vector<128x256xf32>
    %54 = vector.broadcast %7 : vector<128x1xf32> to vector<128x256xf32>
    %55 = arith.addf %53, %54 : vector<128x256xf32>
    %56 = arith.addf %43, %55 : vector<128x256xf32>
    %c0_31 = arith.constant 0 : index
    %c0_32 = arith.constant 0 : index
    %57 = vector.load %arg9[%c0_31, %c0_32] : memref<1x128xf32, #tpu.memory_space<vmem>>, vector<1x128xf32>
    %cst_33 = arith.constant 0.000000e+00 : f32
    %58 = vector.broadcast %cst_33 : f32 to vector<128x256xf32>
    %59 = arith.maximumf %56, %58 : vector<128x256xf32>
    %cst_34 = arith.constant dense<0.000000e+00> : vector<1x256xf32>
    %60 = tpu.matmul %57, %59, %cst_34 {dimension_numbers = #tpu.dot_dimension_numbers<[1], [0], [0], [1], [0, 0, 1, 1], [], []>} : vector<1x128xf32>, vector<128x256xf32>, vector<1x256xf32> -> vector<1x256xf32>
    %c0_35 = arith.constant 0 : index
    %c0_36 = arith.constant 0 : index
    %61 = vector.load %arg11[%c0_35, %c0_36] : memref<1x1xf32, #tpu.memory_space<vmem>>, vector<1x1xf32>
    %62 = vector.broadcast %61 : vector<1x1xf32> to vector<1x256xf32>
    %63 = arith.addf %60, %62 : vector<1x256xf32>
    %64 = arith.negf %63 : vector<1x256xf32>
    %65 = math.exp %64 : vector<1x256xf32>
    %cst_37 = arith.constant 1.000000e+00 : f32
    %66 = vector.broadcast %cst_37 : f32 to vector<1x256xf32>
    %67 = arith.addf %66, %65 : vector<1x256xf32>
    %68 = arith.divf %66, %67 : vector<1x256xf32>
    %69 = tpu.concatenate %63, %68 in 0 : vector<1x256xf32>, vector<1x256xf32> -> vector<2x256xf32>
    %c0_38 = arith.constant 0 : index
    %c0_39 = arith.constant 0 : index
    %70 = vector.load %arg12[%c0_38, %c0_39] : memref<2x256xf32, #tpu.memory_space<vmem>>, vector<2x256xf32>
    tpu.vector_store %arg12[%c0_38, %c0_39], %69 {strides = array<i32>} : memref<2x256xf32, #tpu.memory_space<vmem>>, vector<2x256xf32>,
    return
  }
}

</mosaic_0001>

<bundles_post_ra>
// kernel: occupancy_network_4d_forward.1
= control target key start
LH: loop header
LB: loop body
LE: loop exit
PB: predicated region body
PF: predicated region fallthrough
CT: control target
= control target key end

     0   :  { %vm207_vm0 = vcmask 1043456   ;;  %v9862_v1 = vmov 0.0   ;;  %v9860_v3 = vmov 0   ;;  %vm158_vm1 = vcmask 31744   ;;  %s9847_s1 = inlined_call_operand.vmem [shape: f32[4,256], index: 1, kind: input, shape index: {}]   ;;  %s9848_s2 = inlined_call_operand.vmem [shape: f32[128,4], index: 2, kind: input, shape index: {}]   ;;  %s9849_s10 = inlined_call_operand.vmem [shape: f32[128,8], index: 10, kind: input, shape index: {}]   ;;  %s9850_s3 = inlined_call_operand.vmem [shape: f32[128,128], index: 3, kind: input, shape index: {}]   ;;  %s9851_s0 = inlined_call_operand.vmem [shape: f32[4,256], index: 0, kind: input, shape index: {}]   ;;  %s9852_s4 = inlined_call_operand.vmem [shape: f32[128,4], index: 4, kind: input, shape index: {}]   ;;  %s9853_s5 = inlined_call_operand.vmem [shape: f32[128,128], index: 5, kind: input, shape index: {}]   ;;  %s9854_s6 = inlined_call_operand.vmem [shape: f32[128,128], index: 6, kind: input, shape index: {}]   ;;  %s9855_s7 = inlined_call_operand.vmem [shape: f32[128,128], index: 7, kind: input, shape index: {}]   ;;  %s9856_s8 = inlined_call_operand.vmem [shape: f32[128,128], index: 8, kind: input, shape index: {}]   ;;  %s9857_s11 = inlined_call_operand.<no memory space> [shape: f32[1,1], index: 11, kind: input, shape index: {}]   ;;  %s9858_s9 = inlined_call_operand.vmem [shape: f32[1,128], index: 9, kind: input, shape index: {}]   ;;  %s9859_s12 = inlined_call_operand.vmem [shape: f32[2,256], index: 12, kind: output, shape index: {}]  }
   0x1   :  { %v75_v0 = vld [vmem:[%s9847_s1] sm:$0xff]  ;;  %276 = vmatprep.mubr.f32.mxu0 %v9862_v1  ;;  %348 = vmatprep.mubr.f32.mxu1 %v9862_v1  ;;  %v56_v6 = vld [vmem:[%s9849_s10 + $0x68] sm:$0xff]  ;;  %v58_v10 = vld [vmem:[%s9849_s10 + $0x78] sm:$0xff]  ;;  %v6394_v43 = vmov 1983009808   ;;  %v409_v45 = vlaneseq  ;;  %vm1461_vm2 = vcmask 1041408  }
   0x2   :  { %v157_v2 = vcombine.high %v75_v0, %v75_v0  ;;  %6319 = vset.pattern.permute.xlu1 %v9860_v3  ;;  %6318 = vset.pattern.permute.xlu0 %v9860_v3  ;;  %v59_v4 = vld [vmem:[%s9848_s2] sm:$0xff]  ;;  %v60_v7 = vld [vmem:[%s9848_s2 + $0x8] sm:$0xff]  ;;  %v61_v11 = vld [vmem:[%s9848_s2 + $0x10] sm:$0xff]  ;;  %v407_v44 = vunpack.c.l.s4 %v6394_v43  ;;  %v6395_v55 = vmov 1934713408   ;;  %vm2568_vm3 = vcmask 1041409  }
   0x3   :  { %v71_v5 = vld [vmem:[%s9848_s2 + $0x60] sm:$0xff]  ;;  %v72_v8 = vld [vmem:[%s9848_s2 + $0x68] sm:$0xff]  ;;  %143 = vperm.xlu1 %6319, %v56_v6   ;;  %v73_v12 = vld [vmem:[%s9848_s2 + $0x70] sm:$0xff]  ;;  %153 = vperm.xlu0 %6318, %v58_v10   ;;  %v6616_v49 = vshrl.u32 %v409_v45, 7  ;;  %v438_v56 = vunpack.c.l.s4 %v6395_v55  ;;  %vm2570_vm4 = vcmask 1042434   ;;  %vm2572_vm5 = vcmask 1043459  }
   0x4   :  { %6179 = vmatprep.subr.msk.mxu0 %vm207_vm0, %v157_v2  ;;  %6306 = vmatprep.subr.msk.mxu1 %vm207_vm0, %v157_v2  ;;  %v55_v9 = vld [vmem:[%s9849_s10 + $0x60] sm:$0xff]  ;;  %v53_v13 = vld [vmem:[%s9849_s10 + $0x50] sm:$0xff]  ;;  %v62_v15 = vld [vmem:[%s9848_s2 + $0x18] sm:$0xff]  ;;  %v408_v48 = vunpack.c.0.s8 %v407_v44  ;;  %vm2574_vm6 = vcmask 1044484   ;;  %vm2576_vm7 = vcmask 1045509   ;;  %vm2578_vm8 = vcmask 1046534  }
   0x5   :  { %6180 = vmatpush1.msk.msra.mxu0 %vm207_vm0, %v75_v0  ;;  %6307 = vmatpush1.msk.msra.mxu1 %vm207_vm0, %v75_v0  ;;  %v57_v14 = vld [vmem:[%s9849_s10 + $0x70] sm:$0xff]  ;;  %v74_v16 = vld [vmem:[%s9848_s2 + $0x78] sm:$0xff]  ;;  %v51_v17 = vld [vmem:[%s9849_s10 + $0x40] sm:$0xff]  ;;  %9962 = vst [vmem:[#allocation3_spill] sm:$0xff] %v6616_v49  ;;  %v439_v0 = vunpack.c.0.s8 %v438_v56  ;;  %vm2580_vm9 = vcmask 1047559   ;;  %vm6160_vm10 = vcmask 1040384  }
   0x6   :  { %6181 = vmatmul.mubr.msk.f32.vlgmr.msra.gmra.mxu0 %vm158_vm1, %v59_v4  ;;  %6193 = vmatmul.mubr.msk.f32.vlgmr.msra.gmra.mxu1 %vm158_vm1, %v71_v5  ;;  %v54_v18 = vld [vmem:[%s9849_s10 + $0x58] sm:$0xff]  ;;  %v63_v19 = vld [vmem:[%s9848_s2 + $0x20] sm:$0xff]  ;;  %v49_v20 = vld [vmem:[%s9849_s10 + $0x30] sm:$0xff]  ;;  %v6624_v60 = vsub.s32 %v408_v48, %v6616_v49 }
   0x7   :  { %282 = vmatprep.mubr.f32.mxu0 %v9862_v1  ;;  %354 = vmatprep.mubr.f32.mxu1 %v9862_v1  ;;  %v52_v21 = vld [vmem:[%s9849_s10 + $0x48] sm:$0xff]  ;;  %v47_v23 = vld [vmem:[%s9849_s10 + $0x20] sm:$0xff]  ;;  %v50_v24 = vld [vmem:[%s9849_s10 + $0x38] sm:$0xff] }
   0x8   :  { %138 = vperm.xlu1 %6319, %v55_v9   ;;  %148 = vperm.xlu0 %6318, %v57_v14   ;;  %v64_v22 = vld [vmem:[%s9848_s2 + $0x28] sm:$0xff]  ;;  %v65_v25 = vld [vmem:[%s9848_s2 + $0x30] sm:$0xff]  ;;  %v66_v28 = vld [vmem:[%s9848_s2 + $0x38] sm:$0xff]  ;;  %9963 = vst [vmem:[#allocation4_spill] sm:$0xff] %v6624_v60  ;;  %v6644_v9 = vsub.s32 %v439_v0, %v6616_v49 }
   0x9   :  { %v45_v26 = vld [vmem:[%s9849_s10 + $0x10] sm:$0xff]  ;;  %v48_v27 = vld [vmem:[%s9849_s10 + $0x28] sm:$0xff]  ;;  %v43_v29 = vld [vmem:[%s9849_s10] sm:$0xff] }
   0xa   :  { %6182 = vmatmul.mubr.msk.f32.gmra.mxu0 %vm158_vm1, %v60_v7  ;;  %6194 = vmatmul.mubr.msk.f32.gmra.mxu1 %vm158_vm1, %v72_v8  ;;  %v46_v30 = vld [vmem:[%s9849_s10 + $0x18] sm:$0xff]  ;;  %v67_v31 = vld [vmem:[%s9848_s2 + $0x40] sm:$0xff]  ;;  %v44_v32 = vld [vmem:[%s9849_s10 + $0x8] sm:$0xff]  ;;  %9964 = vst [vmem:[#allocation5_spill] sm:$0xff] %v6644_v9 }
   0xb   :  { %288 = vmatprep.mubr.f32.mxu0 %v9862_v1  ;;  %360 = vmatprep.mubr.f32.mxu1 %v9862_v1  ;;  %v68_v33 = vld [vmem:[%s9848_s2 + $0x48] sm:$0xff]  ;;  %v69_v34 = vld [vmem:[%s9848_s2 + $0x50] sm:$0xff]  ;;  %v70_v35 = vld [vmem:[%s9848_s2 + $0x58] sm:$0xff] }
   0xc   :  { %128 = vperm.xlu1 %6319, %v53_v13   ;;  %133 = vperm.xlu0 %6318, %v54_v18  }
   0xe   :  { %6183 = vmatmul.mubr.msk.f32.gmra.mxu0 %vm158_vm1, %v61_v11  ;;  %6195 = vmatmul.mubr.msk.f32.gmra.mxu1 %vm158_vm1, %v73_v12 }
   0xf   :  { %294 = vmatprep.mubr.f32.mxu0 %v9862_v1  ;;  %366 = vmatprep.mubr.f32.mxu1 %v9862_v1 }
  0x10   :  { %118 = vperm.xlu1 %6319, %v51_v17   ;;  %123 = vperm.xlu0 %6318, %v52_v21  }
  0x12   :  { %6184 = vmatmul.mubr.msk.f32.gmra.mxu0 %vm158_vm1, %v62_v15  ;;  %6196 = vmatmul.mubr.msk.f32.gmra.mxu1 %vm158_vm1, %v74_v16 }
  0x13   :  { %300 = vmatprep.mubr.f32.mxu0 %v9862_v1  ;;  %4743 = vmatprep.mubr.f32.mxu1 %v9862_v1 }
  0x14   :  { %108 = vperm.xlu1 %6319, %v49_v20   ;;  %113 = vperm.xlu0 %6318, %v50_v24  }
  0x16   :  { %6185 = vmatmul.mubr.msk.f32.gmra.mxu0 %vm158_vm1, %v63_v19 }
  0x17   :  { %306 = vmatprep.mubr.f32.mxu0 %v9862_v1 }
  0x18   :  { %98 = vperm.xlu1 %6319, %v47_v23   ;;  %103 = vperm.xlu0 %6318, %v48_v27  }
  0x1a   :  { %6186 = vmatmul.mubr.msk.f32.gmra.mxu0 %vm158_vm1, %v64_v22 }
  0x1b   :  { %312 = vmatprep.mubr.f32.mxu0 %v9862_v1 }
  0x1c   :  { %88 = vperm.xlu1 %6319, %v45_v26   ;;  %93 = vperm.xlu0 %6318, %v46_v30  }
  0x1e   :  { %6187 = vmatmul.mubr.msk.f32.gmra.mxu0 %vm158_vm1, %v65_v25 }
  0x1f   :  { %318 = vmatprep.mubr.f32.mxu0 %v9862_v1 }
  0x20   :  { %78 = vperm.xlu1 %6319, %v43_v29   ;;  %83 = vperm.xlu0 %6318, %v44_v32  }
  0x22   :  { %6188 = vmatmul.mubr.msk.f32.gmra.mxu0 %vm158_vm1, %v66_v28 }
  0x23   :  { %324 = vmatprep.mubr.f32.mxu0 %v9862_v1 }
  0x26   :  { %6189 = vmatmul.mubr.msk.f32.gmra.mxu0 %vm158_vm1, %v67_v31 }
  0x27   :  { %330 = vmatprep.mubr.f32.mxu0 %v9862_v1 }
  0x2a   :  { %6190 = vmatmul.mubr.msk.f32.gmra.mxu0 %vm158_vm1, %v68_v33 }
  0x2b   :  { %336 = vmatprep.mubr.f32.mxu0 %v9862_v1 }
  0x2e   :  { %6191 = vmatmul.mubr.msk.f32.gmra.mxu0 %vm158_vm1, %v69_v34 }
  0x2f   :  { %342 = vmatprep.mubr.f32.mxu0 %v9862_v1 }
  0x32   :  { %6192 = vmatmul.mubr.msk.f32.gmra.mxu0 %vm158_vm1, %v70_v35 }
  0x7e   :  { %v144_v36 = vpop.permute.xlu1 %143  ;;  %v6655_v23 = vpop.permute.xlu0 %153 }
  0x83   :  { %v139_v37 = vpop.permute.xlu1 %138  ;;  %v149_v35 = vpop.permute.xlu0 %148 }
  0x87   :  { %v6605_v38 = vpop.permute.xlu1 %128 }
  0x8b   :  { %v6607_v39 = vpop.permute.xlu1 %118 }
  0x8f   :  { %v6609_v40 = vpop.permute.xlu1 %108 }
  0x93   :  { %v6611_v41 = vpop.permute.xlu1 %98 }
  0x97   :  { %v6613_v42 = vpop.permute.xlu1 %88 }
  0x9b   :  { %v79_v46 = vpop.permute.xlu1 %78 }
  0xc6   :  { %v278_v47 = vpop.f32.mrf.mxu0  ;;  %v350_v50 = vpop.f32.mrf.mxu1 }
  0xc7   :  { %v6618_v51 = vadd.f32 %v278_v47, %v79_v46  ;;  %v351_v52 = vadd.f32 %v350_v50, %v139_v37  ;;  %v6670_v50 = vpop.permute.xlu0 %133 }
  0xc8   :  { %v280_v53 = vpop.f32.mrf.mxu0  ;;  %v352_v54 = vpop.f32.mrf.mxu1 }
  0xc9   :  { %v6620_v57 = vadd.f32 %v280_v53, %v79_v46  ;;  %v353_v58 = vadd.f32 %v352_v54, %v139_v37  ;;  %v373_v59 = vmax.f32 %v6618_v51, 0.0  ;;  %v397_v61 = vmax.f32 %v351_v52, 0.0 }
  0xca   :  { %v356_v12 = vpop.f32.mrf.mxu1  ;;  %v6662_v34 = vpop.f32.mrf.mxu0 }
  0xcb   :  { %v374_v62 = vmax.f32 %v6620_v57, 0.0  ;;  %v398_v63 = vmax.f32 %v353_v58, 0.0  ;;  %v6630_v2 = vrot.slane %v373_v59, %v6624_v60  ;;  %v1204_v6 = vrot.slane %v397_v61, %v6624_v60 }
  0xcc   :  { %v1197_v16 = vcombine.high %v397_v61, %v9862_v1  ;;  %v358_v18 = vpop.f32.mrf.mxu1  ;;  %v357_v28 = vadd.f32 %v356_v12, %v144_v36  ;;  %v6667_v46 = vpop.f32.mrf.mxu0 }
  0xcd   :  { %v6635_v4 = vrot.slane %v374_v62, %v6624_v60  ;;  %v1219_v5 = vrot.slane %v398_v63, %v6624_v60  ;;  %v1212_v13 = vcombine.high %v398_v63, %v9862_v1  ;;  %v359_v25 = vadd.f32 %v358_v18, %v144_v36 }
  0xce   :  { %v1211_v24 = vrot.slane %v1197_v16, %v6624_v60  ;;  %v399_v37 = vmax.f32 %v357_v28, 0.0  ;;  %v362_v47 = vpop.f32.mrf.mxu1  ;;  %v290_v55 = vpop.f32.mrf.mxu0 }
  0xcf   :  { %v435_v7 = vcombine.low %v6630_v2, %v6635_v4  ;;  %v436_v8 = vcombine.high %v6630_v2, %v6635_v4  ;;  %v1228_v10 = vcombine.high %v1204_v6, %v1219_v5  ;;  %v1227_v11 = vcombine.low %v1204_v6, %v1219_v5 }
  0xd0   :  { %v1226_v22 = vrot.slane %v1212_v13, %v6624_v60  ;;  %v400_v31 = vmax.f32 %v359_v25, 0.0  ;;  %v1270_v48 = vrot.slane %v399_v37, %v6624_v60  ;;  %v364_v56 = vpop.f32.mrf.mxu1  ;;  %v363_v61 = vadd.f32 %v362_v47, %v149_v35 }
  0xd1   :  { %v1242_v14 = vrot.slane %v1228_v10, %v6644_v9  ;;  %v1235_v15 = vrot.slane %v1227_v11, %v6644_v9  ;;  %v365_v63 = vadd.f32 %v364_v56, %v149_v35  ;;  %v1263_v6 = vcombine.high %v399_v37, %v9862_v1 }
  0xd2   :  { %v1244_v29 = vcombine.high %v1211_v24, %v1226_v22  ;;  %v1243_v30 = vcombine.low %v1211_v24, %v1226_v22  ;;  %v1285_v36 = vrot.slane %v400_v31, %v6624_v60  ;;  %v1278_v54 = vcombine.high %v400_v31, %v9862_v1 }
  0xd3   :  { %v1756_v17 = vsel %vm1461_vm2, %v1242_v14, -inf  ;;  %v1750_v19 = vsel %vm1461_vm2, %v1235_v15, -inf  ;;  %v1260_v20 = vcombine.high %v1242_v14, %v9862_v1  ;;  %v1259_v21 = vcombine.high %v1235_v15, %v9862_v1  ;;  %v292_v14 = vpop.f32.mrf.mxu0  ;;  %v6681_v15 = vpop.permute.xlu0 %123 }
  0xd4   :  { %1757 = vmax.xlane.f32.xlu1 %v1756_v17  ;;  %1751 = vmax.xlane.f32.xlu0 %v1750_v19  ;;  %v1258_v32 = vrot.slane %v1244_v29, %v6644_v9  ;;  %v1251_v33 = vrot.slane %v1243_v30, %v6644_v9  ;;  %v1293_v52 = vcombine.low %v1270_v48, %v1285_v36  ;;  %v401_v16 = vmax.f32 %v363_v61, 0.0 }
  0xd5   :  { %v1753_v26 = vsel %vm1461_vm2, %v1259_v21, -inf  ;;  %v1759_v27 = vsel %vm1461_vm2, %v1260_v20, -inf  ;;  %v1294_v58 = vcombine.high %v1270_v48, %v1285_v36  ;;  %v1292_v13 = vrot.slane %v1278_v54, %v6624_v60  ;;  %v368_v20 = vpop.f32.mrf.mxu1 }
  0xd6   :  { %v1768_v43 = vsel %vm1461_vm2, %v1258_v32, -inf  ;;  %v1762_v44 = vsel %vm1461_vm2, %v1251_v33, -inf  ;;  %v1262_v53 = vcombine.high %v1258_v32, %v9862_v1  ;;  %v1301_v0 = vrot.slane %v1293_v52, %v6644_v9 }
  0xd7   :  { %v1308_v10 = vrot.slane %v1294_v58, %v6644_v9  ;;  %v402_v17 = vmax.f32 %v365_v63, 0.0  ;;  %v1277_v19 = vrot.slane %v1263_v6, %v6624_v60  ;;  %v6687_v22 = vadd.f32 %v292_v14, %v6613_v42  ;;  %v370_v32 = vpop.f32.mrf.mxu1  ;;  %v296_v14 = vpop.f32.mrf.mxu0 }
  0xd8   :  { %1754 = vmax.xlane.f32.xlu1 %v1753_v26  ;;  %1760 = vmax.xlane.f32.xlu0 %v1759_v27  ;;  %v1771_v5 = vsel %vm1461_vm2, %v1262_v53, -inf  ;;  %v1774_v11 = vsel %vm1461_vm2, %v1301_v0, -inf  ;;  %v1325_v12 = vcombine.high %v1301_v0, %v9862_v1  ;;  %v1261_v25 = vcombine.high %v1251_v33, %v9862_v1 }
  0xd9   :  { %v1326_v21 = vcombine.high %v1308_v10, %v9862_v1  ;;  %v1780_v24 = vsel %vm1461_vm2, %v1308_v10, -inf  ;;  %v6692_v26 = vadd.f32 %v290_v55, %v6613_v42  ;;  %v1309_v27 = vcombine.low %v1277_v19, %v1292_v13 }
  0xda   :  { %v1777_v18 = vsel %vm1461_vm2, %v1325_v12, -inf  ;;  %v1336_v28 = vrot.slane %v401_v16, %v6624_v60  ;;  %v1351_v29 = vrot.slane %v402_v17, %v6624_v60  ;;  %v1310_v31 = vcombine.high %v1277_v19, %v1292_v13 }
  0xdb   :  { %v1783_v30 = vsel %vm1461_vm2, %v1326_v21, -inf  ;;  %v1317_v35 = vrot.slane %v1309_v27, %v6644_v9  ;;  %v378_v37 = vmax.f32 %v6687_v22, 0.0  ;;  %v1765_v42 = vsel %vm1461_vm2, %v1261_v25, -inf  ;;  %v298_v27 = vpop.f32.mrf.mxu0 }
  0xdc   :  { %1769 = vmax.xlane.f32.xlu1 %v1768_v43  ;;  %1763 = vmax.xlane.f32.xlu0 %v1762_v44  ;;  %v6699_v43 = vpop.permute.xlu0 %113  ;;  %v377_v33 = vmax.f32 %v6692_v26, 0.0  ;;  %v6704_v44 = vadd.f32 %v368_v20, %v6655_v23  ;;  %v1324_v36 = vrot.slane %v1310_v31, %v6644_v9  ;;  %v6708_v47 = vadd.f32 %v370_v32, %v6655_v23 }
  0xdd   :  { %v1786_v48 = vsel %vm1461_vm2, %v1317_v35, -inf  ;;  %v1359_v52 = vcombine.low %v1336_v28, %v1351_v29  ;;  %v1360_v53 = vcombine.high %v1336_v28, %v1351_v29  ;;  %v1329_v54 = vcombine.high %v401_v16, %v9862_v1 }
  0xde   :  { %v1344_v55 = vcombine.high %v402_v17, %v9862_v1  ;;  %v559_v56 = vrot.slane %v378_v37, %v6624_v60  ;;  %v1792_v58 = vsel %vm1461_vm2, %v1324_v36, -inf  ;;  %v544_v63 = vrot.slane %v377_v33, %v6624_v60 }
  0xdf   :  { %v1367_v61 = vrot.slane %v1359_v52, %v6644_v9  ;;  %v1374_v23 = vrot.slane %v1360_v53, %v6644_v9  ;;  %v404_v6 = vmax.f32 %v6708_v47, 0.0  ;;  %v1343_v12 = vrot.slane %v1329_v54, %v6624_v60 }
  0xe0   :  { %1772 = vmax.xlane.f32.xlu0 %v1771_v5  ;;  %1775 = vmax.xlane.f32.xlu1 %v1774_v11  ;;  %v6722_v0 = vpop.permute.xlu0 %103  ;;  %v403_v5 = vmax.f32 %v6704_v44, 0.0  ;;  %v1328_v11 = vcombine.high %v1324_v36, %v9862_v1  ;;  %v1358_v13 = vrot.slane %v1344_v55, %v6624_v60  ;;  %v1327_v17 = vcombine.high %v1317_v35, %v9862_v1 }
  0xe1   :  { %v1798_v10 = vsel %vm1461_vm2, %v1367_v61, -inf  ;;  %v1804_v16 = vsel %vm1461_vm2, %v1374_v23, -inf  ;;  %v567_v19 = vcombine.low %v544_v63, %v559_v56  ;;  %v1417_v21 = vrot.slane %v404_v6, %v6624_v60 }
  0xe2   :  { %v1402_v20 = vrot.slane %v403_v5, %v6624_v60  ;;  %v1789_v29 = vsel %vm1461_vm2, %v1327_v17, -inf  ;;  %v1375_v31 = vcombine.low %v1343_v12, %v1358_v13  ;;  %v1410_v17 = vcombine.high %v404_v6, %v9862_v1 }
  0xe3   :  { %v575_v25 = vrot.slane %v567_v19, %v6644_v9 }
  0xe4   :  { %1778 = vmax.xlane.f32.xlu0 %v1777_v18  ;;  %1781 = vmax.xlane.f32.xlu1 %v1780_v24  ;;  %v568_v18 = vcombine.high %v544_v63, %v559_v56  ;;  %v1795_v24 = vsel %vm1461_vm2, %v1328_v11, -inf  ;;  %v94_v28 = vpop.permute.xlu0 %93  ;;  %v1383_v44 = vrot.slane %v1375_v31, %v6644_v9  ;;  %v1425_v36 = vcombine.low %v1402_v20, %v1417_v21 }
  0xe5   :  { %v6740_v32 = vadd.f32 %v296_v14, %v94_v28  ;;  %v6742_v35 = vadd.f32 %v298_v27, %v94_v28  ;;  %v1376_v56 = vcombine.high %v1343_v12, %v1358_v13  ;;  %v302_v27 = vpop.f32.mrf.mxu0 }
  0xe6   :  { %v1810_v54 = vsel %vm1461_vm2, %v1383_v44, -inf  ;;  %v1433_v55 = vrot.slane %v1425_v36, %v6644_v9 }
  0xe7   :  { %v379_v52 = vmax.f32 %v6740_v32, 0.0  ;;  %v380_v53 = vmax.f32 %v6742_v35, 0.0 }
  0xe8   :  { %1784 = vmax.xlane.f32.xlu0 %v1783_v30  ;;  %1766 = vmax.xlane.f32.xlu1 %v1765_v42  ;;  %v6738_v30 = vrot.slane %v568_v18, %v6644_v9  ;;  %v1510_v42 = vsel %vm1461_vm2, %v575_v25, -inf  ;;  %v1822_v14 = vsel %vm1461_vm2, %v1433_v55, -inf }
  0xe9   :  { %v625_v11 = vrot.slane %v380_v53, %v6624_v60 }
  0xea   :  { %v1516_v47 = vsel %vm1461_vm2, %v6738_v30, -inf }
  0xec   :  { %1787 = vmax.xlane.f32.xlu0 %v1786_v48  ;;  %1793 = vmax.xlane.f32.xlu1 %v1792_v58  ;;  %v1391_v48 = vcombine.high %v1367_v61, %v9862_v1  ;;  %v1426_v58 = vcombine.high %v1402_v20, %v1417_v21  ;;  %v610_v61 = vrot.slane %v379_v52, %v6624_v60 }
  0xee   :  { %v1801_v63 = vsel %vm1461_vm2, %v1391_v48, -inf  ;;  %v1440_v12 = vrot.slane %v1426_v58, %v6644_v9  ;;  %v633_v20 = vcombine.low %v610_v61, %v625_v11  ;;  %v634_v36 = vcombine.high %v610_v61, %v625_v11 }
  0xf0   :  { %1799 = vmax.xlane.f32.xlu0 %v1798_v10  ;;  %1805 = vmax.xlane.f32.xlu1 %v1804_v16  ;;  %v1392_v10 = vcombine.high %v1374_v23, %v9862_v1  ;;  %v1390_v16 = vrot.slane %v1376_v56, %v6644_v9  ;;  %v1395_v23 = vcombine.high %v403_v5, %v9862_v1  ;;  %v1828_v18 = vsel %vm1461_vm2, %v1440_v12, -inf }
  0xf1   :  { %v641_v6 = vrot.slane %v633_v20, %v6644_v9  ;;  %v1458_v48 = vcombine.high %v1440_v12, %v9862_v1  ;;  %v1457_v12 = vcombine.high %v1433_v55, %v9862_v1 }
  0xf2   :  { %v1807_v13 = vsel %vm1461_vm2, %v1392_v10, -inf  ;;  %v1394_v19 = vcombine.high %v1390_v16, %v9862_v1  ;;  %v1816_v21 = vsel %vm1461_vm2, %v1390_v16, -inf  ;;  %v1409_v28 = vrot.slane %v1395_v23, %v6624_v60 }
  0xf3   :  { %v303_v10 = vadd.f32 %v302_v27, %v6611_v41 }
  0xf4   :  { %1796 = vmax.xlane.f32.xlu0 %v1795_v24  ;;  %1790 = vmax.xlane.f32.xlu1 %v1789_v29  ;;  %v599_v24 = vcombine.high %v575_v25, %v9862_v1  ;;  %v1424_v29 = vrot.slane %v1410_v17, %v6624_v60  ;;  %v1819_v5 = vsel %vm1461_vm2, %v1394_v19, -inf  ;;  %v1534_v25 = vsel %vm1461_vm2, %v641_v6, -inf }
  0xf5   :  { %v381_v23 = vmax.f32 %v303_v10, 0.0 }
  0xf6   :  { %v1513_v31 = vsel %vm1461_vm2, %v599_v24, -inf  ;;  %v1825_v24 = vsel %vm1461_vm2, %v1457_v12, -inf }
  0xf7   :  { %v676_v55 = vrot.slane %v381_v23, %v6624_v60 }
  0xf8   :  { %1511 = vmax.xlane.f32.xlu0 %v1510_v42  ;;  %1517 = vmax.xlane.f32.xlu1 %v1516_v47  ;;  %v1393_v42 = vcombine.high %v1383_v44, %v9862_v1  ;;  %v304_v47 = vpop.f32.mrf.mxu0  ;;  %v1831_v44 = vsel %vm1461_vm2, %v1458_v48, -inf }
  0xf9   :  { %v305_v56 = vadd.f32 %v304_v47, %v6611_v41  ;;  %v665_v47 = vcombine.high %v641_v6, %v9862_v1 }
  0xfa   :  { %v1813_v58 = vsel %vm1461_vm2, %v1393_v42, -inf }
  0xfb   :  { %v382_v11 = vmax.f32 %v305_v56, 0.0 }
  0xfc   :  { %1811 = vmax.xlane.f32.xlu0 %v1810_v54  ;;  %1802 = vmax.xlane.f32.xlu1 %v1801_v63  ;;  %v1441_v54 = vcombine.low %v1409_v28, %v1424_v29  ;;  %v648_v63 = vrot.slane %v634_v36, %v6644_v9 }
  0xfe   :  { %v1449_v61 = vrot.slane %v1441_v54, %v6644_v9  ;;  %v1540_v16 = vsel %vm1461_vm2, %v648_v63, -inf  ;;  %v666_v19 = vcombine.high %v648_v63, %v9862_v1  ;;  %v669_v54 = vcombine.high %v381_v23, %v9862_v1 }
 0x100   :  { %1823 = vmax.xlane.f32.xlu0 %v1822_v14  ;;  %1808 = vmax.xlane.f32.xlu1 %v1807_v13  ;;  %v308_v14 = vpop.f32.mrf.mxu0  ;;  %v1442_v13 = vcombine.high %v1409_v28, %v1424_v29  ;;  %v1543_v28 = vsel %vm1461_vm2, %v666_v19, -inf  ;;  %v1459_v29 = vcombine.high %v1449_v61, %v9862_v1 }
 0x101   :  { %v309_v41 = vadd.f32 %v308_v14, %v6722_v0 }
 0x102   :  { %v310_v17 = vpop.f32.mrf.mxu0  ;;  %v1456_v27 = vrot.slane %v1442_v13, %v6644_v9  ;;  %v1837_v56 = vsel %vm1461_vm2, %v1459_v29, -inf  ;;  %v6818_v13 = vrot.slane %v669_v54, %v6624_v60 }
 0x103   :  { %v311_v20 = vadd.f32 %v310_v17, %v6722_v0  ;;  %v84_v0 = vpop.permute.xlu0 %83 }
 0x104   :  { %1829 = vmax.xlane.f32.xlu0 %v1828_v18  ;;  %1817 = vmax.xlane.f32.xlu1 %v1816_v21  ;;  %v1834_v18 = vsel %vm1461_vm2, %v1449_v61, -inf  ;;  %v691_v21 = vrot.slane %v382_v11, %v6624_v60  ;;  %v1840_v36 = vsel %vm1461_vm2, %v1456_v27, -inf  ;;  %v6808_v14 = vadd.f32 %v6662_v34, %v84_v0  ;;  %v314_v61 = vpop.f32.mrf.mxu0 }
 0x105   :  { %v384_v42 = vmax.f32 %v311_v20, 0.0 }
 0x106   :  { %v699_v48 = vcombine.low %v676_v55, %v691_v21  ;;  %v375_v23 = vmax.f32 %v6808_v14, 0.0  ;;  %v316_v17 = vpop.f32.mrf.mxu0 }
 0x107   :  { %v757_v6 = vrot.slane %v384_v42, %v6624_v60  ;;  %v317_v32 = vadd.f32 %v316_v17, %v6609_v40 }
 0x108   :  { %1820 = vmax.xlane.f32.xlu0 %v1819_v5  ;;  %1514 = vmax.xlane.f32.xlu1 %v1513_v31  ;;  %v684_v5 = vcombine.high %v382_v11, %v9862_v1  ;;  %v383_v31 = vmax.f32 %v309_v41, 0.0  ;;  %v1537_v11 = vsel %vm1461_vm2, %v665_v47, -inf  ;;  %v707_v12 = vrot.slane %v699_v48, %v6644_v9 }
 0x109   :  { %v6841_v22 = vrot.slane %v375_v23, %v6624_v60 }
 0x10a   :  { %v6804_v63 = vrot.slane %v684_v5, %v6624_v60  ;;  %v742_v10 = vrot.slane %v383_v31, %v6624_v60  ;;  %v731_v19 = vcombine.high %v707_v12, %v9862_v1  ;;  %v750_v5 = vcombine.high %v384_v42, %v9862_v1 }
 0x10b   :  { %v537_v42 = vcombine.high %v377_v33, %v9862_v1  ;;  %v386_v33 = vmax.f32 %v317_v32, 0.0 }
 0x10c   :  { %1535 = vmax.xlane.f32.xlu0 %v1534_v25  ;;  %1814 = vmax.xlane.f32.xlu1 %v1813_v58  ;;  %v700_v25 = vcombine.high %v676_v55, %v691_v21  ;;  %v1460_v58 = vcombine.high %v1456_v27, %v9862_v1  ;;  %v766_v41 = vcombine.high %v742_v10, %v757_v6 }
 0x10d   :  { %v715_v20 = vcombine.low %v6818_v13, %v6804_v63  ;;  %v552_v21 = vcombine.high %v378_v37, %v9862_v1  ;;  %v735_v27 = vcombine.high %v383_v31, %v9862_v1  ;;  %v618_v55 = vcombine.high %v380_v53, %v9862_v1 }
 0x10e   :  { %v1843_v34 = vsel %vm1461_vm2, %v1460_v58, -inf  ;;  %v780_v35 = vrot.slane %v766_v41, %v6644_v9  ;;  %v765_v31 = vcombine.low %v742_v10, %v757_v6  ;;  %v320_v41 = vpop.f32.mrf.mxu0 }
 0x10f   :  { %v723_v53 = vrot.slane %v715_v20, %v6644_v9  ;;  %v749_v48 = vrot.slane %v735_v27, %v6624_v60  ;;  %v6867_v26 = vrot.slane %v618_v55, %v6624_v60 }
 0x110   :  { %1832 = vmax.xlane.f32.xlu0 %v1831_v44  ;;  %1541 = vmax.xlane.f32.xlu1 %v1540_v16  ;;  %v6811_v44 = vadd.f32 %v6667_v46, %v84_v0  ;;  %v714_v16 = vrot.slane %v700_v25, %v6644_v9  ;;  %v6854_v0 = vadd.f32 %v314_v61, %v6609_v40  ;;  %v1588_v10 = vsel %vm1461_vm2, %v780_v35, -inf }
 0x111   :  { %v6862_v25 = vrot.slane %v552_v21, %v6624_v60  ;;  %v764_v40 = vrot.slane %v750_v5, %v6624_v60  ;;  %v733_v14 = vcombine.high %v723_v53, %v9862_v1  ;;  %v6880_v61 = vrot.slane %v537_v42, %v6624_v60 }
 0x112   :  { %v376_v46 = vmax.f32 %v6811_v44, 0.0  ;;  %v732_v29 = vcombine.high %v714_v16, %v9862_v1  ;;  %v773_v44 = vrot.slane %v765_v31, %v6644_v9 }
 0x113   :  { %v782_v17 = vcombine.high %v749_v48, %v764_v40  ;;  %v1573_v20 = vsel %vm1461_vm2, %v733_v14, -inf  ;;  %v781_v57 = vcombine.low %v749_v48, %v764_v40  ;;  %v584_v51 = vcombine.high %v6880_v61, %v6862_v25 }
 0x114   :  { %1835 = vmax.xlane.f32.xlu0 %v1834_v18  ;;  %1826 = vmax.xlane.f32.xlu1 %v1825_v24  ;;  %v1564_v18 = vsel %vm1461_vm2, %v714_v16, -inf  ;;  %v603_v24 = vcombine.high %v379_v52, %v9862_v1  ;;  %v6844_v37 = vrot.slane %v376_v46, %v6624_v60  ;;  %v1561_v52 = vsel %vm1461_vm2, %v731_v19, -inf }
 0x115   :  { %v1567_v54 = vsel %vm1461_vm2, %v732_v29, -inf  ;;  %v1570_v16 = vsel %vm1461_vm2, %v723_v53, -inf  ;;  %v823_v19 = vrot.slane %v386_v33, %v6624_v60  ;;  %v797_v21 = vcombine.high %v773_v44, %v9862_v1 }
 0x116   :  { %v6859_v47 = vrot.slane %v603_v24, %v6624_v60  ;;  %v502_v58 = vcombine.high %v6841_v22, %v6844_v37  ;;  %v405_v24 = vcombine.high %v373_v59, %v9862_v1  ;;  %v486_v55 = vcombine.high %v376_v46, %v9862_v1  ;;  %v322_v59 = vpop.f32.mrf.mxu0 }
 0x117   :  { %v798_v29 = vcombine.high %v780_v35, %v9862_v1  ;;  %v796_v32 = vrot.slane %v782_v17, %v6644_v9  ;;  %v789_v46 = vrot.slane %v781_v57, %v6644_v9  ;;  %v816_v48 = vcombine.high %v386_v33, %v9862_v1 }
 0x118   :  { %1544 = vmax.xlane.f32.xlu0 %v1543_v28  ;;  %1841 = vmax.xlane.f32.xlu1 %v1840_v36  ;;  %v1558_v28 = vsel %vm1461_vm2, %v707_v12, -inf  ;;  %v716_v36 = vcombine.high %v6818_v13, %v6804_v63  ;;  %v649_v6 = vcombine.low %v6859_v47, %v6867_v26  ;;  %v650_v12 = vcombine.high %v6859_v47, %v6867_v26 }
 0x119   :  { %v1591_v35 = vsel %vm1461_vm2, %v798_v29, -inf  ;;  %v1600_v40 = vsel %vm1461_vm2, %v796_v32, -inf  ;;  %v321_v17 = vadd.f32 %v320_v41, %v6699_v43  ;;  %v799_v57 = vcombine.high %v789_v46, %v9862_v1 }
 0x11c   :  { %1838 = vmax.xlane.f32.xlu0 %v1837_v56  ;;  %1538 = vmax.xlane.f32.xlu1 %v1537_v11  ;;  %v501_v56 = vcombine.low %v6841_v22, %v6844_v37  ;;  %v385_v11 = vmax.f32 %v6854_v0, 0.0  ;;  %v6918_v0 = vrot.slane %v486_v55, %v6624_v60  ;;  %v387_v55 = vmax.f32 %v321_v17, 0.0 }
 0x11e   :  { %v808_v27 = vrot.slane %v385_v11, %v6624_v60  ;;  %v801_v33 = vcombine.high %v385_v11, %v9862_v1 }
 0x120   :  { %1844 = vmax.xlane.f32.xlu0 %v1843_v34  ;;  %1565 = vmax.xlane.f32.xlu1 %v1564_v18  ;;  %v420_v34 = vcombine.high %v374_v62, %v9862_v1  ;;  %v583_v18 = vcombine.low %v6880_v61, %v6862_v25  ;;  %v471_v62 = vcombine.high %v375_v23, %v9862_v1 }
 0x121   :  { %v832_v53 = vcombine.high %v808_v27, %v823_v19  ;;  %v6910_v23 = vrot.slane %v405_v24, %v6624_v60  ;;  %v831_v31 = vcombine.low %v808_v27, %v823_v19  ;;  %v1594_v19 = vsel %vm1461_vm2, %v789_v46, -inf }
 0x122   :  { %v6903_v5 = vrot.slane %v420_v34, %v6624_v60  ;;  %v6915_v42 = vrot.slane %v471_v62, %v6624_v60  ;;  %v815_v62 = vrot.slane %v801_v33, %v6624_v60 }
 0x123   :  { %v846_v14 = vrot.slane %v832_v53, %v6644_v9  ;;  %v874_v53 = vrot.slane %v387_v55, %v6624_v60 }
 0x124   :  { %1559 = vmax.xlane.f32.xlu0 %v1558_v28  ;;  %1562 = vmax.xlane.f32.xlu1 %v1561_v52  ;;  %v1582_v28 = vsel %vm1461_vm2, %v773_v44, -inf  ;;  %v1585_v52 = vsel %vm1461_vm2, %v797_v21, -inf  ;;  %v517_v44 = vcombine.low %v6915_v42, %v6918_v0  ;;  %v830_v21 = vrot.slane %v816_v48, %v6624_v60 }
 0x125   :  { %v1612_v27 = vsel %vm1461_vm2, %v846_v14, -inf }
 0x126   :  { %v525_v2 = vrot.slane %v517_v44, %v6644_v9 }
 0x128   :  { %1568 = vmax.xlane.f32.xlu0 %v1567_v54  ;;  %1589 = vmax.xlane.f32.xlu1 %v1588_v10  ;;  %v323_v54 = vadd.f32 %v322_v59, %v6699_v43  ;;  %v800_v43 = vcombine.high %v796_v32, %v9862_v1  ;;  %v848_v59 = vcombine.high %v815_v62, %v830_v21  ;;  %v1498_v61 = vsel %vm1461_vm2, %v525_v2, -inf }
 0x12a   :  { %v388_v24 = vmax.f32 %v323_v54, 0.0  ;;  %v1603_v46 = vsel %vm1461_vm2, %v800_v43, -inf  ;;  %v862_v48 = vrot.slane %v848_v59, %v6644_v9 }
 0x12c   :  { %1571 = vmax.xlane.f32.xlu0 %v1570_v16  ;;  %1574 = vmax.xlane.f32.xlu1 %v1573_v20  ;;  %v839_v20 = vrot.slane %v831_v31, %v6644_v9  ;;  %v889_v41 = vrot.slane %v388_v24, %v6624_v60  ;;  %v847_v31 = vcombine.low %v815_v62, %v830_v21 }
 0x12e   :  { %v1606_v11 = vsel %vm1461_vm2, %v839_v20, -inf  ;;  %v863_v29 = vcombine.high %v839_v20, %v9862_v1  ;;  %v898_v54 = vcombine.high %v874_v53, %v889_v41  ;;  %v855_v17 = vrot.slane %v847_v31, %v6644_v9 }
 0x12f   :  { %v882_v20 = vcombine.high %v388_v24, %v9862_v1 }
 0x130   :  { %1583 = vmax.xlane.f32.xlu0 %v1582_v28  ;;  %1586 = vmax.xlane.f32.xlu1 %v1585_v52  ;;  %v1597_v28 = vsel %vm1461_vm2, %v799_v57, -inf  ;;  %v326_v52 = vpop.f32.mrf.mxu0  ;;  %v1609_v32 = vsel %vm1461_vm2, %v863_v29, -inf  ;;  %v912_v21 = vrot.slane %v898_v54, %v6644_v9  ;;  %v867_v57 = vcombine.high %v387_v55, %v9862_v1 }
 0x131   :  { %v327_v62 = vadd.f32 %v326_v52, %v6607_v39  ;;  %v865_v29 = vcombine.high %v855_v17, %v9862_v1 }
 0x132   :  { %v1636_v24 = vsel %vm1461_vm2, %v912_v21, -inf  ;;  %v881_v59 = vrot.slane %v867_v57, %v6624_v60 }
 0x134   :  { %1592 = vmax.xlane.f32.xlu0 %v1591_v35  ;;  %1601 = vmax.xlane.f32.xlu1 %v1600_v40  ;;  %v864_v35 = vcombine.high %v846_v14, %v9862_v1  ;;  %v328_v40 = vpop.f32.mrf.mxu0  ;;  %v1624_v14 = vsel %vm1461_vm2, %v862_v48, -inf }
 0x136   :  { %v1615_v33 = vsel %vm1461_vm2, %v864_v35, -inf  ;;  %v332_v52 = vpop.f32.mrf.mxu0  ;;  %v1621_v35 = vsel %vm1461_vm2, %v865_v29, -inf }
 0x138   :  { %1595 = vmax.xlane.f32.xlu0 %v1594_v19  ;;  %1613 = vmax.xlane.f32.xlu1 %v1612_v27  ;;  %v897_v19 = vcombine.low %v874_v53, %v889_v41  ;;  %v329_v27 = vadd.f32 %v328_v40, %v6607_v39  ;;  %v896_v41 = vrot.slane %v882_v20, %v6624_v60  ;;  %v389_v53 = vmax.f32 %v327_v62, 0.0 }
 0x139   :  { %v866_v39 = vcombine.high %v862_v48, %v9862_v1 }
 0x13a   :  { %v905_v43 = vrot.slane %v897_v19, %v6644_v9  ;;  %v940_v54 = vrot.slane %v389_v53, %v6624_v60  ;;  %v334_v19 = vpop.f32.mrf.mxu0  ;;  %v933_v29 = vcombine.high %v389_v53, %v9862_v1 }
 0x13b   :  { %v1627_v40 = vsel %vm1461_vm2, %v866_v39, -inf }
 0x13c   :  { %1607 = vmax.xlane.f32.xlu0 %v1606_v11  ;;  %1598 = vmax.xlane.f32.xlu1 %v1597_v28  ;;  %v1618_v11 = vsel %vm1461_vm2, %v855_v17, -inf  ;;  %v390_v28 = vmax.f32 %v329_v27, 0.0  ;;  %v1630_v55 = vsel %vm1461_vm2, %v905_v43, -inf  ;;  %v929_v31 = vcombine.high %v905_v43, %v9862_v1 }
 0x13d   :  { %v913_v17 = vcombine.low %v881_v59, %v896_v41  ;;  %v2055_v43 = vand.u32 127, %v409_v45 }
 0x13e   :  { %v1633_v48 = vsel %vm1461_vm2, %v929_v31, -inf }
 0x13f   :  { %v921_v62 = vrot.slane %v913_v17, %v6644_v9  ;;  %v6989_v45 = vsub.s32 %v2055_v43, %v6616_v49  ;;  %v7460_v49 = vld [vmem:[%s9849_s10 + $0x38] sm:$0xff] }
 0x140   :  { %1604 = vmax.xlane.f32.xlu0 %v1603_v46  ;;  %1610 = vmax.xlane.f32.xlu1 %v1609_v32  ;;  %v955_v46 = vrot.slane %v390_v28, %v6624_v60  ;;  %v914_v32 = vcombine.high %v881_v59, %v896_v41  ;;  %v333_v59 = vadd.f32 %v332_v52, %v6681_v15 }
 0x141   :  { %v1642_v39 = vsel %vm1461_vm2, %v921_v62, -inf  ;;  %v931_v53 = vcombine.high %v921_v62, %v9862_v1 }
 0x142   :  { %v928_v20 = vrot.slane %v914_v32, %v6644_v9  ;;  %v964_v27 = vcombine.high %v940_v54, %v955_v46  ;;  %v391_v52 = vmax.f32 %v333_v59, 0.0 }
 0x144   :  { %1616 = vmax.xlane.f32.xlu0 %v1615_v33  ;;  %1625 = vmax.xlane.f32.xlu1 %v1624_v14  ;;  %v930_v33 = vcombine.high %v912_v21, %v9862_v1  ;;  %v6975_v14 = vadd.f32 %v334_v19, %v6681_v15  ;;  %v948_v21 = vcombine.high %v390_v28, %v9862_v1  ;;  %v1648_v41 = vsel %vm1461_vm2, %v928_v20, -inf }
 0x145   :  { %v947_v15 = vrot.slane %v933_v29, %v6624_v60  ;;  %v1006_v43 = vrot.slane %v391_v52, %v6624_v60 }
 0x146   :  { %v1639_v57 = vsel %vm1461_vm2, %v930_v33, -inf  ;;  %v962_v28 = vrot.slane %v948_v21, %v6624_v60  ;;  %v932_v33 = vcombine.high %v928_v20, %v9862_v1  ;;  %v338_v20 = vpop.f32.mrf.mxu0 }
 0x148   :  { %1619 = vmax.xlane.f32.xlu0 %v1618_v11  ;;  %1637 = vmax.xlane.f32.xlu1 %v1636_v24  ;;  %v963_v11 = vcombine.low %v940_v54, %v955_v46  ;;  %v978_v24 = vrot.slane %v964_v27, %v6644_v9  ;;  %v1651_v29 = vsel %vm1461_vm2, %v932_v33, -inf }
 0x14a   :  { %v971_v46 = vrot.slane %v963_v11, %v6644_v9  ;;  %v1660_v32 = vsel %vm1461_vm2, %v978_v24, -inf }
 0x14c   :  { %1631 = vmax.xlane.f32.xlu0 %v1630_v55  ;;  %1622 = vmax.xlane.f32.xlu1 %v1621_v35  ;;  %v392_v55 = vmax.f32 %v6975_v14, 0.0  ;;  %v980_v14 = vcombine.high %v947_v15, %v962_v28  ;;  %v995_v11 = vcombine.high %v971_v46, %v9862_v1 }
 0x14e   :  { %v1021_v54 = vrot.slane %v392_v55, %v6624_v60 }
 0x150   :  { %1628 = vmax.xlane.f32.xlu0 %v1627_v40  ;;  %1634 = vmax.xlane.f32.xlu1 %v1633_v48  ;;  %v1654_v40 = vsel %vm1461_vm2, %v971_v46, -inf  ;;  %v1657_v46 = vsel %vm1461_vm2, %v995_v11, -inf  ;;  %v999_v11 = vcombine.high %v391_v52, %v9862_v1 }
 0x154   :  { %1640 = vmax.xlane.f32.xlu0 %v1639_v57  ;;  %1649 = vmax.xlane.f32.xlu1 %v1648_v41  ;;  %v1645_v57 = vsel %vm1461_vm2, %v931_v53, -inf }
 0x158   :  { %1643 = vmax.xlane.f32.xlu0 %v1642_v39  ;;  %1661 = vmax.xlane.f32.xlu1 %v1660_v32  ;;  %v996_v39 = vcombine.high %v978_v24, %v9862_v1  ;;  %v994_v32 = vrot.slane %v980_v14, %v6644_v9  ;;  %v1029_v24 = vcombine.low %v1006_v43, %v1021_v54 }
 0x15a   :  { %v1663_v33 = vsel %vm1461_vm2, %v996_v39, -inf  ;;  %v1672_v14 = vsel %vm1461_vm2, %v994_v32, -inf }
 0x15c   :  { %1655 = vmax.xlane.f32.xlu0 %v1654_v40  ;;  %1646 = vmax.xlane.f32.xlu1 %v1645_v57  ;;  %v1030_v40 = vcombine.high %v1006_v43, %v1021_v54  ;;  %v1037_v43 = vrot.slane %v1029_v24, %v6644_v9 }
 0x15d   :  { %v1758_v35 = vpop.xlane.xlu1 %1757  ;;  %v1752_v31 = vpop.xlane.xlu0 %1751 }
 0x15e   :  { %v2443_v19 = vrot.slane %v1752_v31, %v6989_v45  ;;  %v2451_v62 = vrot.slane %v1758_v35, %v6989_v45  ;;  %v979_v31 = vcombine.low %v947_v15, %v962_v28  ;;  %v1014_v15 = vcombine.high %v392_v55, %v9862_v1 }
 0x160   :  { %1652 = vmax.xlane.f32.xlu0 %v1651_v29  ;;  %1658 = vmax.xlane.f32.xlu1 %v1657_v46  ;;  %v1028_v55 = vrot.slane %v1014_v15, %v6624_v60 }
 0x161   :  { %v1755_v17 = vpop.xlane.xlu1 %1754  ;;  %v1761_v48 = vpop.xlane.xlu0 %1760 }
 0x162   :  { %v2447_v27 = vrot.slane %v1755_v17, %v6989_v45  ;;  %v2455_v21 = vrot.slane %v1761_v48, %v6989_v45  ;;  %v340_v17 = vpop.f32.mrf.mxu0  ;;  %v987_v48 = vrot.slane %v979_v31, %v6644_v9  ;;  %v1013_v31 = vrot.slane %v999_v11, %v6624_v60 }
 0x164   :  { %v2659_v41 = vsel %vm2568_vm3, %v2447_v27, %v2443_v19  ;;  %1664 = vmax.xlane.f32.xlu0 %v1663_v33  ;;  %v341_v27 = vadd.f32 %v340_v17, %v6605_v38  ;;  %1673 = vmax.xlane.f32.xlu1 %v1672_v14  ;;  %v1666_v54 = vsel %vm1461_vm2, %v987_v48, -inf  ;;  %v997_v39 = vcombine.high %v987_v48, %v9862_v1 }
 0x165   :  { %v2660_v59 = vsel %vm2570_vm4, %v2451_v62, %v2659_v41  ;;  %v1764_v53 = vpop.xlane.xlu0 %1763  ;;  %v7019_v57 = vpop.xlane.xlu1 %1769  ;;  %v1044_v62 = vrot.slane %v1030_v40, %v6644_v9  ;;  %v1046_v33 = vcombine.high %v1013_v31, %v1028_v55 }
 0x166   :  { %v2661_v35 = vsel %vm2572_vm5, %v2455_v21, %v2660_v59  ;;  %v2459_v19 = vrot.slane %v1764_v53, %v6989_v45  ;;  %v339_v21 = vadd.f32 %v338_v20, %v6605_v38  ;;  %v394_v41 = vmax.f32 %v341_v27, 0.0  ;;  %v344_v53 = vpop.f32.mrf.mxu0 }
 0x167   :  { %v1684_v29 = vsel %vm1461_vm2, %v1044_v62, -inf  ;;  %v1678_v38 = vsel %vm1461_vm2, %v1037_v43, -inf  ;;  %v998_v20 = vcombine.high %v994_v32, %v9862_v1  ;;  %v1669_v40 = vsel %vm1461_vm2, %v997_v39, -inf }
 0x168   :  { %v2662_v28 = vsel %vm2574_vm6, %v2459_v19, %v2661_v35  ;;  %1667 = vmax.xlane.f32.xlu0 %v1666_v54  ;;  %1685 = vmax.xlane.f32.xlu1 %v1684_v29  ;;  %v393_v35 = vmax.f32 %v339_v21, 0.0  ;;  %v1087_v46 = vrot.slane %v394_v41, %v6624_v60  ;;  %v1061_v19 = vcombine.high %v1037_v43, %v9862_v1  ;;  %v346_v11 = vpop.f32.mrf.mxu0 }
 0x169   :  { %v1773_v59 = vpop.xlane.xlu0 %1772  ;;  %v7030_v52 = vpop.xlane.xlu1 %1775  ;;  %v1675_v15 = vsel %vm1461_vm2, %v998_v20, -inf  ;;  %v1062_v32 = vcombine.high %v1044_v62, %v9862_v1  ;;  %v1045_v27 = vcombine.low %v1013_v31, %v1028_v55  ;;  %v1060_v43 = vrot.slane %v1046_v33, %v6644_v9 }
 0x16a   :  { %v1072_v48 = vrot.slane %v393_v35, %v6624_v60  ;;  %v1681_v21 = vsel %vm1461_vm2, %v1061_v19, -inf  ;;  %v1080_v62 = vcombine.high %v394_v41, %v9862_v1  ;;  %v347_v55 = vadd.f32 %v346_v11, %v6670_v50 }
 0x16b   :  { %v2467_v20 = vrot.slane %v7019_v57, %v6989_v45  ;;  %v1696_v19 = vsel %vm1461_vm2, %v1060_v43, -inf  ;;  %v2471_v41 = vrot.slane %v1773_v59, %v6989_v45 }
 0x16c   :  { %1679 = vmax.xlane.f32.xlu0 %v1678_v38  ;;  %1670 = vmax.xlane.f32.xlu1 %v1669_v40  ;;  %v1096_v14 = vcombine.high %v1072_v48, %v1087_v46  ;;  %v1095_v29 = vcombine.low %v1072_v48, %v1087_v46  ;;  %v1687_v38 = vsel %vm1461_vm2, %v1062_v32, -inf  ;;  %v1053_v40 = vrot.slane %v1045_v27, %v6644_v9 }
 0x16d   :  { %v7036_v17 = vpop.xlane.xlu0 %1778  ;;  %v7040_v24 = vpop.xlane.xlu1 %1781  ;;  %v1065_v48 = vcombine.high %v393_v35, %v9862_v1  ;;  %v345_v32 = vadd.f32 %v344_v53, %v6670_v50  ;;  %v1094_v35 = vrot.slane %v1080_v62, %v6624_v60  ;;  %v396_v59 = vmax.f32 %v347_v55, 0.0 }
 0x16e   :  { %v1110_v33 = vrot.slane %v1096_v14, %v6644_v9  ;;  %v1690_v57 = vsel %vm1461_vm2, %v1053_v40, -inf  ;;  %v1103_v11 = vrot.slane %v1095_v29, %v6644_v9  ;;  %v1063_v50 = vcombine.high %v1053_v40, %v9862_v1 }
 0x16f   :  { %v1079_v53 = vrot.slane %v1065_v48, %v6624_v60  ;;  %v1153_v62 = vrot.slane %v396_v59, %v6624_v60 }
 0x170   :  { %1676 = vmax.xlane.f32.xlu0 %v1675_v15  ;;  %1682 = vmax.xlane.f32.xlu1 %v1681_v21  ;;  %v1693_v55 = vsel %vm1461_vm2, %v1063_v50, -inf }
 0x171   :  { %v7045_v54 = vpop.xlane.xlu0 %1784  ;;  %v1767_v39 = vpop.xlane.xlu1 %1766  ;;  %v1112_v40 = vcombine.high %v1079_v53, %v1094_v35 }
 0x172   :  { %v2463_v31 = vrot.slane %v1767_v39, %v6989_v45  ;;  %v1708_v39 = vsel %vm1461_vm2, %v1110_v33, -inf }
 0x174   :  { %1688 = vmax.xlane.f32.xlu0 %v1687_v38  ;;  %1697 = vmax.xlane.f32.xlu1 %v1696_v19  ;;  %v2663_v15 = vsel %vm2576_vm7, %v2463_v31, %v2662_v28  ;;  %v395_v38 = vmax.f32 %v345_v32, 0.0  ;;  %v1702_v31 = vsel %vm1461_vm2, %v1103_v11, -inf }
 0x175   :  { %v7056_v46 = vpop.xlane.xlu0 %1787  ;;  %v7063_v27 = vpop.xlane.xlu1 %1793  ;;  %v2664_v21 = vsel %vm2578_vm8, %v2467_v20, %v2663_v15  ;;  %v1064_v20 = vcombine.high %v1060_v43, %v9862_v1  ;;  %v1111_v43 = vcombine.low %v1079_v53, %v1094_v35 }
 0x176   :  { %v7069_v14 = vsel %vm2580_vm9, %v2471_v41, %v2664_v21  ;;  %v1127_v41 = vcombine.high %v1103_v11, %v9862_v1  ;;  %v1138_v48 = vrot.slane %v395_v38, %v6624_v60 }
 0x177   :  { %v1699_v32 = vsel %vm1461_vm2, %v1064_v20, -inf  ;;  %v1119_v34 = vrot.slane %v1111_v43, %v6644_v9  ;;  %v1146_v20 = vcombine.high %v396_v59, %v9862_v1 }
 0x178   :  { %1691 = vmax.xlane.f32.xlu0 %v1690_v57  ;;  %1709 = vmax.xlane.f32.xlu1 %v1708_v39  ;;  %v1128_v57 = vcombine.high %v1110_v33, %v9862_v1  ;;  %v1162_v21 = vcombine.high %v1138_v48, %v1153_v62  ;;  %v1705_v39 = vsel %vm1461_vm2, %v1127_v41, -inf  ;;  %v1161_v11 = vcombine.low %v1138_v48, %v1153_v62 }
 0x179   :  { %v7073_v28 = vpop.xlane.xlu0 %1799  ;;  %v7077_v29 = vpop.xlane.xlu1 %1805  ;;  %v1131_v41 = vcombine.high %v395_v38, %v9862_v1  ;;  %v1714_v62 = vsel %vm1461_vm2, %v1119_v34, -inf  ;;  %v1129_v43 = vcombine.high %v1119_v34, %v9862_v1 }
 0x17a   :  { %v1176_v53 = vrot.slane %v1162_v21, %v6644_v9  ;;  %v1169_v48 = vrot.slane %v1161_v11, %v6644_v9 }
 0x17b   :  { %v1145_v21 = vrot.slane %v1131_v41, %v6624_v60  ;;  %v1717_v11 = vsel %vm1461_vm2, %v1129_v43, -inf }
 0x17c   :  { %1703 = vmax.xlane.f32.xlu0 %v1702_v31  ;;  %1694 = vmax.xlane.f32.xlu1 %v1693_v55  ;;  %v1126_v31 = vrot.slane %v1112_v40, %v6644_v9  ;;  %v1711_v55 = vsel %vm1461_vm2, %v1128_v57, -inf  ;;  %v1732_v59 = vsel %vm1461_vm2, %v1176_v53, -inf  ;;  %v1726_v38 = vsel %vm1461_vm2, %v1169_v48, -inf }
 0x17d   :  { %v7083_v19 = vpop.xlane.xlu0 %1796  ;;  %v7087_v15 = vpop.xlane.xlu1 %1790 }
 0x17e   :  { %v1720_v33 = vsel %vm1461_vm2, %v1126_v31, -inf }
 0x180   :  { %1700 = vmax.xlane.f32.xlu0 %v1699_v32  ;;  %1706 = vmax.xlane.f32.xlu1 %v1705_v39  ;;  %v1160_v32 = vrot.slane %v1146_v20, %v6624_v60  ;;  %v1193_v20 = vcombine.high %v1169_v48, %v9862_v1 }
 0x181   :  { %v1512_v50 = vpop.xlane.xlu0 %1511  ;;  %v1518_v3 = vpop.xlane.xlu1 %1517 }
 0x182   :  { %v1177_v16 = vcombine.low %v1145_v21, %v1160_v32  ;;  %v1729_v10 = vsel %vm1461_vm2, %v1193_v20, -inf }
 0x184   :  { %1712 = vmax.xlane.f32.xlu0 %v1711_v55  ;;  %1721 = vmax.xlane.f32.xlu1 %v1720_v33  ;;  %v1130_v55 = vcombine.high %v1126_v31, %v9862_v1 }
 0x185   :  { %v7097_v35 = vpop.xlane.xlu0 %1811  ;;  %v7101_v40 = vpop.xlane.xlu1 %1802 }
 0x186   :  { %v1723_v41 = vsel %vm1461_vm2, %v1130_v55, -inf }
 0x188   :  { %1715 = vmax.xlane.f32.xlu0 %v1714_v62  ;;  %1733 = vmax.xlane.f32.xlu1 %v1732_v59  ;;  %v1178_v62 = vcombine.high %v1145_v21, %v1160_v32  ;;  %v1194_v59 = vcombine.high %v1176_v53, %v9862_v1  ;;  %v2123_v21 = vrot.slane %v1512_v50, %v6989_v45 }
 0x189   :  { %v7107_v57 = vpop.xlane.xlu0 %1823  ;;  %v7111_v39 = vpop.xlane.xlu1 %1808  ;;  %v2131_v53 = vrot.slane %v1518_v3, %v6989_v45 }
 0x18a   :  { %v1192_v43 = vrot.slane %v1178_v62, %v6644_v9  ;;  %v1735_v32 = vsel %vm1461_vm2, %v1194_v59, -inf }
 0x18c   :  { %1727 = vmax.xlane.f32.xlu0 %v1726_v38  ;;  %1718 = vmax.xlane.f32.xlu1 %v1717_v11  ;;  %v1185_v38 = vrot.slane %v1177_v16, %v6644_v9  ;;  %v1744_v55 = vsel %vm1461_vm2, %v1192_v43, -inf  ;;  %v1196_v50 = vcombine.high %v1192_v43, %v9862_v1 }
 0x18d   :  { %v7116_v33 = vpop.xlane.xlu0 %1829  ;;  %v7119_v34 = vpop.xlane.xlu1 %1817 }
 0x18e   :  { %v1738_v16 = vsel %vm1461_vm2, %v1185_v38, -inf  ;;  %v1747_v43 = vsel %vm1461_vm2, %v1196_v50, -inf  ;;  %v2519_v50 = vrot.slane %v7111_v39, %v6989_v45 }
 0x190   :  { %1724 = vmax.xlane.f32.xlu0 %v1723_v41  ;;  %1730 = vmax.xlane.f32.xlu1 %v1729_v10  ;;  %v1195_v41 = vcombine.high %v1185_v38, %v9862_v1 }
 0x191   :  { %v7124_v31 = vpop.xlane.xlu0 %1820  ;;  %v1515_v48 = vpop.xlane.xlu1 %1514 }
 0x192   :  { %v2127_v11 = vrot.slane %v1515_v48, %v6989_v45  ;;  %v1741_v3 = vsel %vm1461_vm2, %v1195_v41, -inf }
 0x194   :  { %1736 = vmax.xlane.f32.xlu0 %v1735_v32  ;;  %v2589_v62 = vsel %vm2568_vm3, %v2127_v11, %v2123_v21  ;;  %1745 = vmax.xlane.f32.xlu1 %v1744_v55  ;;  %v730_v32 = vrot.slane %v716_v36, %v6644_v9  ;;  %v509_v21 = vrot.slane %v501_v56, %v6644_v9 }
 0x195   :  { %v7133_v20 = vpop.xlane.xlu0 %1535  ;;  %v7137_v10 = vpop.xlane.xlu1 %1814  ;;  %v7142_v59 = vsel %vm2570_vm4, %v2131_v53, %v2589_v62  ;;  %v657_v11 = vrot.slane %v649_v6, %v6644_v9  ;;  %v2511_v53 = vrot.slane %v7101_v40, %v6989_v45  ;;  %v2507_v56 = vrot.slane %v7073_v28, %v6989_v45 }
 0x196   :  { %9965 = vst [vmem:[#allocation6_spill] sm:$0xff] %v7133_v20  ;;  %9966 = vst [vmem:[#allocation7_spill] sm:$0xff] %v7142_v59  ;;  %v1576_v63 = vsel %vm1461_vm2, %v730_v32, -inf  ;;  %v533_v36 = vcombine.high %v509_v21, %v9862_v1  ;;  %v2479_v55 = vrot.slane %v7036_v17, %v6989_v45  ;;  %v600_v40 = vcombine.high %v6738_v30, %v9862_v1  ;;  %v4544_v59 = vld [vmem:[%s9852_s4] sm:$0xff] }
 0x197   :  { %v1546_v62 = vsel %vm1461_vm2, %v657_v11, -inf  ;;  %v667_v6 = vcombine.high %v657_v11, %v9862_v1  ;;  %v2539_v28 = vrot.slane %v7107_v57, %v6989_v45  ;;  %v2475_v17 = vrot.slane %v7030_v52, %v6989_v45 }
 0x198   :  { %1739 = vmax.xlane.f32.xlu0 %v1738_v16  ;;  %1742 = vmax.xlane.f32.xlu1 %v1741_v3  ;;  %v2673_v16 = vsel %vm2568_vm3, %v2511_v53, %v2507_v56  ;;  %v2547_v30 = vrot.slane %v7116_v33, %v6989_v45  ;;  %v1489_v11 = vsel %vm1461_vm2, %v533_v36, -inf  ;;  %v7194_v52 = vrot.slane %v502_v58, %v6644_v9 }
 0x199   :  { %v1833_v48 = vpop.xlane.xlu0 %1832  ;;  %v7153_v38 = vpop.xlane.xlu1 %1541  ;;  %v2666_v33 = vsel %vm2568_vm3, %v2479_v55, %v2475_v17  ;;  %v2527_v22 = vrot.slane %v7137_v10, %v6989_v45  ;;  %v2491_v58 = vrot.slane %v7056_v46, %v6989_v45  ;;  %v9981_v20 = vmov 0.0  }
 0x19a   :  { %9967 = vst [vmem:[#allocation8_spill] sm:$0xff] %v7153_v38  ;;  %v2551_v39 = vrot.slane %v1833_v48, %v6989_v45 }
 0x19c   :  { %1748 = vmax.xlane.f32.xlu0 %v1747_v43  ;;  %1577 = vmax.xlane.f32.xlu1 %v1576_v63  ;;  %v2515_v43 = vrot.slane %v7077_v29, %v6989_v45  ;;  %v1486_v63 = vsel %vm1461_vm2, %v509_v21, -inf  ;;  %v2483_v29 = vrot.slane %v7040_v24, %v6989_v45  ;;  %v2523_v24 = vrot.slane %v7097_v35, %v6989_v45 }
 0x19d   :  { %v1836_v13 = vpop.xlane.xlu0 %1835  ;;  %v1827_v41 = vpop.xlane.xlu1 %1826  ;;  %v1492_v35 = vsel %vm1461_vm2, %v7194_v52, -inf }
 0x19e   :  { %v2543_v3 = vrot.slane %v1827_v41, %v6989_v45  ;;  %v2674_v36 = vsel %vm2570_vm4, %v2515_v43, %v2673_v16  ;;  %v2487_v41 = vrot.slane %v7045_v54, %v6989_v45  ;;  %v2555_v55 = vrot.slane %v1836_v13, %v6989_v45 }
 0x19f   :  { %v2675_v21 = vsel %vm2572_vm5, %v2519_v50, %v2674_v36  ;;  %v2495_v54 = vrot.slane %v7087_v15, %v6989_v45  ;;  %v1519_v50 = vsel %vm1461_vm2, %v600_v40, -inf  ;;  %v2667_v46 = vsel %vm2570_vm4, %v2483_v29, %v2666_v33 }
 0x1a0   :  { %1547 = vmax.xlane.f32.xlu0 %v1546_v62  ;;  %v2680_v57 = vsel %vm2568_vm3, %v2543_v3, %v2539_v28  ;;  %1490 = vmax.xlane.f32.xlu1 %v1489_v11  ;;  %v1549_v62 = vsel %vm1461_vm2, %v667_v6, -inf  ;;  %v734_v28 = vcombine.high %v730_v32, %v9862_v1  ;;  %v2676_v6 = vsel %vm2574_vm6, %v2523_v24, %v2675_v21 }
 0x1a1   :  { %v7185_v53 = vpop.xlane.xlu0 %1544  ;;  %v2681_v48 = vsel %vm2570_vm4, %v2547_v30, %v2680_v57  ;;  %v1842_v56 = vpop.xlane.xlu1 %1841  ;;  %v2668_v15 = vsel %vm2572_vm5, %v2487_v41, %v2667_v46  ;;  %v664_v40 = vrot.slane %v650_v12, %v6644_v9  ;;  %v2677_v17 = vsel %vm2576_vm7, %v2527_v22, %v2676_v6 }
 0x1a2   :  { %9968 = vst [vmem:[#allocation9_spill] sm:$0xff] %v7185_v53  ;;  %v2682_v37 = vsel %vm2572_vm5, %v2551_v39, %v2681_v48  ;;  %v2669_v43 = vsel %vm2574_vm6, %v2491_v58, %v2668_v15  ;;  %v2531_v30 = vrot.slane %v7119_v34, %v6989_v45  ;;  %v2563_v11 = vrot.slane %v1842_v56, %v6989_v45 }
 0x1a3   :  { %v2683_v13 = vsel %vm2574_vm6, %v2555_v55, %v2682_v37  ;;  %v443_v57 = vrot.slane %v435_v7, %v6644_v9  ;;  %v1579_v26 = vsel %vm1461_vm2, %v734_v28, -inf  ;;  %v2670_v12 = vsel %vm2576_vm7, %v2495_v54, %v2669_v43 }
 0x1a4   :  { %1487 = vmax.xlane.f32.xlu0 %v1486_v63  ;;  %1550 = vmax.xlane.f32.xlu1 %v1549_v62  ;;  %v2499_v63 = vrot.slane %v7063_v27, %v6989_v45  ;;  %v2678_v33 = vsel %vm2578_vm8, %v2531_v30, %v2677_v17  ;;  %v591_v7 = vrot.slane %v583_v18, %v6644_v9  ;;  %v1552_v56 = vsel %vm1461_vm2, %v664_v40, -inf }
 0x1a5   :  { %v1839_v16 = vpop.xlane.xlu0 %1838  ;;  %v7219_v3 = vpop.xlane.xlu1 %1538  ;;  %v2535_v36 = vrot.slane %v7124_v31, %v6989_v45  ;;  %v467_v41 = vcombine.high %v443_v57, %v9862_v1  ;;  %v2503_v22 = vrot.slane %v7083_v19, %v6989_v45  ;;  %v534_v54 = vcombine.high %v7194_v52, %v9862_v1 }
 0x1a6   :  { %v2559_v10 = vrot.slane %v1839_v16, %v6989_v45  ;;  %9969 = vst [vmem:[#allocation10_spill] sm:$0xff] %v7219_v3  ;;  %v2671_v21 = vsel %vm2578_vm8, %v2499_v63, %v2670_v12  ;;  %v1522_v37 = vsel %vm1461_vm2, %v591_v7, -inf  ;;  %v601_v19 = vcombine.high %v591_v7, %v9862_v1  ;;  %v4545_v3 = vld [vmem:[%s9852_s4 + $0x8] sm:$0xff] }
 0x1a7   :  { %v2679_v18 = vsel %vm2580_vm9, %v2535_v36, %v2678_v33  ;;  %v2672_v58 = vsel %vm2580_vm9, %v2503_v22, %v2671_v21  ;;  %v1465_v24 = vsel %vm1461_vm2, %v467_v41, -inf  ;;  %v1462_v16 = vsel %vm1461_vm2, %v443_v57, -inf }
 0x1a8   :  { %1520 = vmax.xlane.f32.xlu0 %v1519_v50  ;;  %v2684_v32 = vsel %vm2576_vm7, %v2559_v10, %v2683_v13  ;;  %1493 = vmax.xlane.f32.xlu1 %v1492_v35  ;;  %v1525_v10 = vsel %vm1461_vm2, %v601_v19, -inf  ;;  %v450_v28 = vrot.slane %v436_v8, %v6644_v9  ;;  %v1495_v35 = vsel %vm1461_vm2, %v534_v54, -inf }
 0x1a9   :  { %v1845_v39 = vpop.xlane.xlu0 %1844  ;;  %v7245_v29 = vpop.xlane.xlu1 %1565  ;;  %v2685_v34 = vsel %vm2578_vm8, %v2563_v11, %v2684_v32  ;;  %v668_v13 = vcombine.high %v664_v40, %v9862_v1  ;;  %v598_v6 = vrot.slane %v584_v51, %v6644_v9  ;;  %v535_v32 = vcombine.high %v525_v2, %v9862_v1  ;;  %v1846_v2 = vld [vmem:[%s9850_s3] sm:$0xff] }
 0x1aa   :  { %v2567_v47 = vrot.slane %v1845_v39, %v6989_v45  ;;  %v468_v51 = vcombine.high %v450_v28, %v9862_v1  ;;  %v9973_v43 = vcombine.low %v6910_v23, %v6903_v5  ;;  %v9974_v33 = vcombine.high %v6915_v42, %v6918_v0  ;;  %6282 = vmatprep.mubr.f32.mxu0 %v1846_v2  ;;  %v6354_v2 = vld [vmem:[%s9849_s10 + $0x40] sm:$0xff] }
 0x1ab   :  { %v1555_v8 = vsel %vm1461_vm2, %v668_v13, -inf  ;;  %v1528_v15 = vsel %vm1461_vm2, %v598_v6, -inf  ;;  %v1501_v44 = vsel %vm1461_vm2, %v535_v32, -inf  ;;  %v602_v57 = vcombine.high %v598_v6, %v9862_v1  ;;  %v6344_v32 = vld [vmem:[%s9849_s10 + $0x78] sm:$0xff] }
 0x1ac   :  { %1580 = vmax.xlane.f32.xlu0 %v1579_v26  ;;  %v2686_v48 = vsel %vm2580_vm9, %v2567_v47, %v2685_v34  ;;  %1553 = vmax.xlane.f32.xlu1 %v1552_v56  ;;  %v459_v30 = vrot.slane %v9973_v43, %v6644_v9  ;;  %v1471_v39 = vsel %vm1461_vm2, %v468_v51, -inf  ;;  %v532_v7 = vrot.slane %v9974_v33, %v6644_v9  ;;  %v6346_v43 = vld [vmem:[%s9849_s10 + $0x70] sm:$0xff]  ;;  %v7414_v33 = vld [vmem:[%s9849_s10 + $0x58] sm:$0xff] }
 0x1ad   :  { %v7257_v27 = vpop.xlane.xlu0 %1559  ;;  %6250 = vmatprep.subr.mxu0 %v2686_v48  ;;  %v7264_v31 = vpop.xlane.xlu1 %1562  ;;  %v1531_v34 = vsel %vm1461_vm2, %v602_v57, -inf  ;;  %v9976_v56 = vcombine.high %v6910_v23, %v6903_v5  ;;  %v6347_v57 = vld [vmem:[%s9849_s10 + $0x60] sm:$0xff] }
 0x1ae   :  { %6251 = vmatpush3.msra.mxu0 %v2686_v48  ;;  %v1474_v47 = vsel %vm1461_vm2, %v459_v30, -inf  ;;  %v469_v12 = vcombine.high %v459_v30, %v9862_v1  ;;  %v1504_v22 = vsel %vm1461_vm2, %v532_v7, -inf }
 0x1af   :  { %6252 = vmatprep.subr.mxu0 %v2679_v18  ;;  %v466_v41 = vrot.slane %v9976_v56, %v6644_v9 }
 0x1b0   :  { %6253 = vmatpush3.msra.mxu0 %v2679_v18  ;;  %1523 = vmax.xlane.f32.xlu0 %v1522_v37  ;;  %v1477_v36 = vsel %vm1461_vm2, %v469_v12, -inf  ;;  %v536_v18 = vcombine.high %v532_v7, %v9862_v1  ;;  %v7420_v7 = vld [vmem:[%s9849_s10 + $0x18] sm:$0xff] }
 0x1b1   :  { %v7269_v55 = vpop.xlane.xlu0 %1568  ;;  %6254 = vmatprep.subr.mxu0 %v2672_v58  ;;  %1466 = vmax.xlane.f32.xlu1 %v1465_v24  ;;  %v7272_v62 = vpop.xlane.xlu1 %1589  ;;  %v1480_v42 = vsel %vm1461_vm2, %v466_v41, -inf  ;;  %v470_v5 = vcombine.high %v466_v41, %v9862_v1  ;;  %v6351_v41 = vld [vmem:[%s9849_s10 + $0x50] sm:$0xff]  ;;  %v6397_v1 = vmov 2  }
 0x1b2   :  { %6255 = vmatpush3.msra.mxu0 %v2672_v58  ;;  %v1507_v58 = vsel %vm1461_vm2, %v536_v18, -inf }
 0x1b3   :  { %6256 = vmatprep.subr.mxu0 %v7069_v14  ;;  %v1483_v19 = vsel %vm1461_vm2, %v470_v5, -inf }
 0x1b4   :  { %6257 = vmatpush3.msra.mxu0 %v7069_v14  ;;  %1463 = vmax.xlane.f32.xlu0 %v1462_v16  ;;  %v1468_v14 = vsel %vm1461_vm2, %v450_v28, -inf }
 0x1b5   :  { %v7280_v50 = vpop.xlane.xlu0 %1571  ;;  %1526 = vmax.xlane.f32.xlu1 %v1525_v10  ;;  %v7286_v46 = vpop.xlane.xlu1 %1574 }
 0x1b6   :  { %9970 = vst [vmem:[#allocation11_spill] sm:$0xff] %v7280_v50  ;;  %9971 = vst [vmem:[#allocation12_spill] sm:$0xff] %v7286_v46  ;;  %v4548_v50 = vld [vmem:[%s9852_s4 + $0x20] sm:$0xff] }
 0x1b8   :  { %1496 = vmax.xlane.f32.xlu0 %v1495_v35 }
 0x1b9   :  { %v7291_v52 = vpop.xlane.xlu0 %1583  ;;  %1469 = vmax.xlane.f32.xlu1 %v1468_v14  ;;  %v7301_v4 = vpop.xlane.xlu1 %1586 }
 0x1bc   :  { %1556 = vmax.xlane.f32.xlu0 %v1555_v8 }
 0x1bd   :  { %v7305_v40 = vpop.xlane.xlu0 %1592  ;;  %1529 = vmax.xlane.f32.xlu1 %v1528_v15  ;;  %v7308_v25 = vpop.xlane.xlu1 %1601  ;;  %v6396_v15 = vmov 1  }
 0x1be   :  { %9972 = vst [vmem:[#allocation13_spill] sm:$0xff] %v7308_v25  ;;  %6320 = vset.pattern.permute.xlu1 %v6396_v15  ;;  %6321 = vset.pattern.permute.xlu0 %v6396_v15 }
 0x1c0   :  { %1499 = vmax.xlane.f32.xlu0 %v1498_v61 }
 0x1c1   :  { %v7313_v17 = vpop.xlane.xlu0 %1595  ;;  %1502 = vmax.xlane.f32.xlu1 %v1501_v44  ;;  %v7319_v11 = vpop.xlane.xlu1 %1613  ;;  %v7388_v44 = vld [vmem:[%s9849_s10 + $0x68] sm:$0xff] }
 0x1c4   :  { %1472 = vmax.xlane.f32.xlu0 %v1471_v39 }
 0x1c5   :  { %v7324_v26 = vpop.xlane.xlu0 %1607  ;;  %1475 = vmax.xlane.f32.xlu1 %v1474_v47  ;;  %v7327_v63 = vpop.xlane.xlu1 %1598  ;;  %v7404_v47 = vld [vmem:[%s9849_s10 + $0x28] sm:$0xff] }
 0x1c8   :  { %1532 = vmax.xlane.f32.xlu0 %v1531_v34 }
 0x1c9   :  { %v7335_v48 = vpop.xlane.xlu0 %1604  ;;  %1478 = vmax.xlane.f32.xlu1 %v1477_v36  ;;  %v7341_v21 = vpop.xlane.xlu1 %1610 }
 0x1ca   :  { %9975 = vst [vmem:[#allocation14_spill] sm:$0xff] %v7335_v48 }
 0x1cc   :  { %1505 = vmax.xlane.f32.xlu0 %v1504_v22  ;;  %v6352_v22 = vld [vmem:[%s9849_s10 + $0x8] sm:$0xff] }
 0x1cd   :  { %v7346_v0 = vpop.xlane.xlu0 %1616  ;;  %1481 = vmax.xlane.f32.xlu1 %v1480_v42  ;;  %v7348_v37 = vpop.xlane.xlu1 %1625 }
 0x1ce   :  { %9977 = vst [vmem:[#allocation15_spill] sm:$0xff] %v7348_v37  ;;  %v2219_v37 = vrot.slane %v7291_v52, %v6989_v45  ;;  %v2187_v52 = vrot.slane %v7257_v27, %v6989_v45 }
 0x1d0   :  { %1508 = vmax.xlane.f32.xlu0 %v1507_v58  ;;  %v7440_v58 = vld [vmem:[%s9849_s10 + $0x48] sm:$0xff] }
 0x1d1   :  { %v7352_v23 = vpop.xlane.xlu0 %1619  ;;  %v7354_v24 = vpop.xlane.xlu1 %1637 }
 0x1d4   :  { %1484 = vmax.xlane.f32.xlu0 %v1483_v19 }
 0x1d5   :  { %v7357_v16 = vpop.xlane.xlu0 %1631  ;;  %v7359_v54 = vpop.xlane.xlu1 %1622 }
 0x1d9   :  { %v7361_v10 = vpop.xlane.xlu0 %1628  ;;  %v7363_v28 = vpop.xlane.xlu1 %1634 }
 0x1da   :  { %9978 = vst [vmem:[#allocation16_spill] sm:$0xff] %v7361_v10  ;;  %v2231_v10 = vrot.slane %v7305_v40, %v6989_v45  ;;  %v4549_v40 = vld [vmem:[%s9852_s4 + $0x28] sm:$0xff] }
 0x1dd   :  { %v7365_v35 = vpop.xlane.xlu0 %1640  ;;  %v7367_v13 = vpop.xlane.xlu1 %1649 }
 0x1de   :  { %9979 = vst [vmem:[#allocation17_spill] sm:$0xff] %v7367_v13  ;;  %1923 = vperm.xlu1 %6320, %v6344_v32   ;;  %v2227_v13 = vrot.slane %v7272_v62, %v6989_v45  ;;  %v2195_v62 = vrot.slane %v7245_v29, %v6989_v45 }
 0x1e1   :  { %v7369_v14 = vpop.xlane.xlu0 %1643  ;;  %v7371_v6 = vpop.xlane.xlu1 %1661 }
 0x1e2   :  { %1915 = vperm.xlu1 %6320, %v7388_v44  }
 0x1e5   :  { %v7376_v8 = vpop.xlane.xlu0 %1655  ;;  %v7381_v61 = vpop.xlane.xlu1 %1646 }
 0x1e6   :  { %1911 = vperm.xlu1 %6320, %v6347_v57  }
 0x1e9   :  { %v7383_v51 = vpop.xlane.xlu0 %1652  ;;  %v7394_v30 = vpop.xlane.xlu1 %1658 }
 0x1ea   :  { %9980 = vst [vmem:[#allocation18_spill] sm:$0xff] %v7383_v51  ;;  %1919 = vperm.xlu0 %6321, %v6346_v43   ;;  %1907 = vperm.xlu1 %6320, %v7414_v33   ;;  %v2287_v51 = vrot.slane %v7363_v28, %v6989_v45 }
 0x1ed   :  { %v7396_v39 = vpop.xlane.xlu0 %1664  ;;  %v7407_v12 = vpop.xlane.xlu1 %1673 }
 0x1ee   :  { %1883 = vperm.xlu0 %6321, %v7404_v47   ;;  %1903 = vperm.xlu1 %6320, %v6351_v41  }
 0x1f1   :  { %v7409_v34 = vpop.xlane.xlu0 %1667  ;;  %v7423_v36 = vpop.xlane.xlu1 %1685 }
 0x1f2   :  { %1875 = vperm.xlu0 %6321, %v7420_v7   ;;  %1899 = vperm.xlu1 %6320, %v7440_v58  }
 0x1f5   :  { %v7425_v56 = vpop.xlane.xlu0 %1679  ;;  %v7433_v18 = vpop.xlane.xlu1 %1670 }
 0x1f6   :  { %1867 = vperm.xlu0 %6321, %v6352_v22   ;;  %1895 = vperm.xlu1 %6320, %v6354_v2   ;;  %v4560_v22 = vld [vmem:[%s9851_s0] sm:$0xff] }
 0x1f7   :  { %v4626_v60 = vcombine.high %v4560_v22, %v4560_v22 }
 0x1f9   :  { %v7435_v42 = vpop.xlane.xlu0 %1676  ;;  %v7443_v5 = vpop.xlane.xlu1 %1682  ;;  %6197 = vmatprep.subr.msk.mxu1 %vm207_vm0, %v4626_v60 }
 0x1fa   :  { %6322 = vset.pattern.permute.xlu0 %v6397_v1  ;;  %1891 = vperm.xlu1 %6320, %v7460_v49  }
 0x1fb   :  { %4622 = vperm.xlu0 %6322, %v6344_v32   ;;  %6198 = vmatpush1.msk.msra.mxu1 %vm207_vm0, %v4560_v22  ;;  %v6356_v32 = vld [vmem:[%s9849_s10 + $0x30] sm:$0xff] }
 0x1fc   :  { %6199 = vmatmul.mubr.msk.f32.vlgmr.msra.gmra.mxu1 %vm158_vm1, %v4544_v59  ;;  %v6357_v59 = vld [vmem:[%s9849_s10 + $0x20] sm:$0xff] }
 0x1fd   :  { %v7445_v19 = vpop.xlane.xlu0 %1688  ;;  %v7450_v15 = vpop.xlane.xlu1 %1697  ;;  %4749 = vmatprep.mubr.f32.mxu1 %v9981_v20 }
 0x1fe   :  { %1887 = vperm.xlu1 %6320, %v6356_v32  }
 0x1ff   :  { %4618 = vperm.xlu0 %6322, %v6346_v43   ;;  %v4546_v43 = vld [vmem:[%s9852_s4 + $0x10] sm:$0xff] }
 0x200   :  { %6200 = vmatmul.mubr.msk.f32.gmra.mxu1 %vm158_vm1, %v4545_v3  ;;  %v6358_v3 = vld [vmem:[%s9849_s10 + $0x10] sm:$0xff] }
 0x201   :  { %v7455_v9 = vpop.xlane.xlu0 %1691  ;;  %v7466_v53 = vpop.xlane.xlu1 %1709  ;;  %4755 = vmatprep.mubr.f32.mxu1 %v9981_v20 }
 0x202   :  { %1879 = vperm.xlu1 %6320, %v6357_v59  }
 0x203   :  { %4610 = vperm.xlu0 %6322, %v6347_v57   ;;  %v4547_v57 = vld [vmem:[%s9852_s4 + $0x18] sm:$0xff] }
 0x204   :  { %6201 = vmatmul.mubr.msk.f32.gmra.mxu1 %vm158_vm1, %v4546_v43  ;;  %v2223_v43 = vrot.slane %v7301_v4, %v6989_v45 }
 0x205   :  { %v7470_v38 = vpop.xlane.xlu0 %1703  ;;  %v7480_v46 = vpop.xlane.xlu1 %1694  ;;  %4761 = vmatprep.mubr.f32.mxu1 %v9981_v20 }
 0x206   :  { %1871 = vperm.xlu1 %6320, %v6358_v3   ;;  %v6359_v3 = vld [vmem:[%s9849_s10] sm:$0xff] }
 0x207   :  { %4602 = vperm.xlu0 %6322, %v6351_v41  }
 0x208   :  { %6202 = vmatmul.mubr.msk.f32.gmra.mxu1 %vm158_vm1, %v4547_v57  ;;  %v2191_v57 = vrot.slane %v7264_v31, %v6989_v45  ;;  %v2251_v31 = vrot.slane %v7324_v26, %v6989_v45 }
 0x209   :  { %v7482_v60 = vpop.xlane.xlu0 %1700  ;;  %v7492_v22 = vpop.xlane.xlu1 %1706  ;;  %4767 = vmatprep.mubr.f32.mxu1 %v9981_v20 }
 0x20a   :  { %1863 = vperm.xlu1 %6320, %v6359_v3   ;;  %v2255_v3 = vrot.slane %v7341_v21, %v6989_v45  ;;  %v7551_v26 = vsel %vm2568_vm3, %v2191_v57, %v2187_v52  ;;  %v2235_v52 = vrot.slane %v7313_v17, %v6989_v45  ;;  %v2263_v57 = vrot.slane %v7346_v0, %v6989_v45  ;;  %v9983_v0 = vld [vmem:[#allocation17_spill] sm:$0xff] }
 0x20b   :  { %4594 = vperm.xlu0 %6322, %v6354_v2   ;;  %v2610_v2 = vsel %vm2568_vm3, %v2223_v43, %v2219_v37  ;;  %v2283_v37 = vrot.slane %v7357_v16, %v6989_v45  ;;  %v2295_v43 = vrot.slane %v7365_v35, %v6989_v45  ;;  %v4550_v35 = vld [vmem:[%s9852_s4 + $0x30] sm:$0xff] }
 0x20c   :  { %6203 = vmatmul.mubr.msk.f32.gmra.mxu1 %vm158_vm1, %v4548_v50  ;;  %v2611_v21 = vsel %vm2570_vm4, %v2227_v13, %v2610_v2  ;;  %v2259_v13 = vrot.slane %v7319_v11, %v6989_v45  ;;  %v2291_v11 = vrot.slane %v7354_v24, %v6989_v45  ;;  %v2271_v2 = vrot.slane %v7359_v54, %v6989_v45 }
 0x20d   :  { %v7494_v25 = vpop.xlane.xlu0 %1712  ;;  %v7504_v48 = vpop.xlane.xlu1 %1721  ;;  %4773 = vmatprep.mubr.f32.mxu1 %v9981_v20  ;;  %v2624_v16 = vsel %vm2568_vm3, %v2287_v51, %v2283_v37 }
 0x20e   :  { %6323 = vset.pattern.permute.xlu1 %v6397_v1  ;;  %v7556_v1 = vsel %vm2572_vm5, %v2231_v10, %v2611_v21  ;;  %v2239_v10 = vrot.slane %v7327_v63, %v6989_v45  ;;  %v2625_v24 = vsel %vm2570_vm4, %v2291_v11, %v2624_v16  ;;  %v2383_v21 = vrot.slane %v7492_v22, %v6989_v45 }
 0x20f   :  { %4586 = vperm.xlu0 %6322, %v6356_v32   ;;  %4614 = vperm.xlu1 %6323, %v7388_v44   ;;  %v2617_v32 = vsel %vm2568_vm3, %v2255_v3, %v2251_v31  ;;  %v2319_v3 = vrot.slane %v7394_v30, %v6989_v45  ;;  %v2315_v30 = vrot.slane %v7376_v8, %v6989_v45  ;;  %v4551_v8 = vld [vmem:[%s9852_s4 + $0x38] sm:$0xff] }
 0x210   :  { %6204 = vmatmul.mubr.msk.f32.gmra.mxu1 %vm158_vm1, %v4549_v40  ;;  %v7580_v51 = vsel %vm2570_vm4, %v2259_v13, %v2617_v32  ;;  %v2351_v40 = vrot.slane %v7443_v5, %v6989_v45  ;;  %v7596_v32 = vsel %vm2572_vm5, %v2295_v43, %v2625_v24  ;;  %v2299_v13 = vrot.slane %v7369_v14, %v6989_v45  ;;  %v9982_v14 = vld [vmem:[#allocation18_spill] sm:$0xff] }
 0x211   :  { %v7510_v41 = vpop.xlane.xlu0 %1715  ;;  %v7522_v4 = vpop.xlane.xlu1 %1733  ;;  %4779 = vmatprep.mubr.f32.mxu1 %v9981_v20  ;;  %v2323_v5 = vrot.slane %v7371_v6, %v6989_v45  ;;  %v2303_v22 = vrot.slane %v7381_v61, %v6989_v45  ;;  %v2347_v43 = vrot.slane %v7425_v56, %v6989_v45  ;;  %v2379_v11 = vrot.slane %v7470_v38, %v6989_v45 }
 0x212   :  { %v2327_v6 = vrot.slane %v7396_v39, %v6989_v45  ;;  %v2391_v28 = vrot.slane %v7494_v25, %v6989_v45  ;;  %v2355_v39 = vrot.slane %v7423_v36, %v6989_v45  ;;  %v2331_v25 = vrot.slane %v7409_v34, %v6989_v45 }
 0x213   :  { %4578 = vperm.xlu0 %6322, %v6357_v59   ;;  %v2267_v59 = vrot.slane %v7352_v23, %v6989_v45  ;;  %4606 = vperm.xlu1 %6323, %v7414_v33   ;;  %v2638_v38 = vsel %vm2568_vm3, %v2351_v40, %v2347_v43  ;;  %v2645_v56 = vsel %vm2568_vm3, %v2383_v21, %v2379_v11 }
 0x214   :  { %6205 = vmatmul.mubr.msk.f32.gmra.mxu1 %vm158_vm1, %v4550_v35  ;;  %v9989_v63 = vrot.slane %v7269_v55, %v6989_v45 }
 0x215   :  { %v1728_v27 = vpop.xlane.xlu0 %1727  ;;  %v7547_v50 = vpop.xlane.xlu1 %1718  ;;  %4785 = vmatprep.mubr.f32.mxu1 %v9981_v20 }
 0x216   :  { %v2411_v33 = vrot.slane %v1728_v27, %v6989_v45  ;;  %v2631_v27 = vsel %vm2568_vm3, %v2319_v3, %v2315_v30  ;;  %v2419_v3 = vrot.slane %v7522_v4, %v6989_v45  ;;  %v2387_v30 = vrot.slane %v7466_v53, %v6989_v45  ;;  %v4552_v53 = vld [vmem:[%s9852_s4 + $0x40] sm:$0xff] }
 0x217   :  { %4598 = vperm.xlu1 %6323, %v7440_v58   ;;  %v2395_v58 = vrot.slane %v7510_v41, %v6989_v45  ;;  %v2399_v4 = vrot.slane %v7547_v50, %v6989_v45  ;;  %v2363_v41 = vrot.slane %v7455_v9, %v6989_v45 }
 0x218   :  { %6206 = vmatmul.mubr.msk.f32.gmra.mxu1 %vm158_vm1, %v4551_v8  ;;  %v2646_v34 = vsel %vm2570_vm4, %v2387_v30, %v2645_v56 }
 0x219   :  { %v7564_v44 = vpop.xlane.xlu0 %1724  ;;  %v1731_v31 = vpop.xlane.xlu1 %1730  ;;  %4791 = vmatprep.mubr.f32.mxu1 %v9981_v20  ;;  %v2647_v43 = vsel %vm2572_vm5, %v2391_v28, %v2646_v34  ;;  %v2311_v34 = vrot.slane %v9982_v14, %v6989_v45 }
 0x21a   :  { %v2415_v37 = vrot.slane %v1731_v31, %v6989_v45 }
 0x21b   :  { %4590 = vperm.xlu1 %6323, %v7460_v49   ;;  %v2407_v49 = vrot.slane %v7564_v44, %v6989_v45 }
 0x21c   :  { %v2652_v35 = vsel %vm2568_vm3, %v2415_v37, %v2411_v33  ;;  %v2359_v37 = vrot.slane %v7445_v19, %v6989_v45  ;;  %v2639_v19 = vsel %vm2570_vm4, %v2355_v39, %v2638_v38  ;;  %v2648_v38 = vsel %vm2574_vm6, %v2395_v58, %v2647_v43  ;;  %6207 = vmatmul.mubr.msk.f32.gmra.mxu1 %vm158_vm1, %v4552_v53 }
 0x21d   :  { %v1737_v16 = vpop.xlane.xlu0 %1736  ;;  %v1746_v24 = vpop.xlane.xlu1 %1745  ;;  %v2653_v36 = vsel %vm2570_vm4, %v2419_v3, %v2652_v35  ;;  %v2335_v35 = vrot.slane %v7433_v18, %v6989_v45  ;;  %v2649_v3 = vsel %vm2576_vm7, %v2399_v4, %v2648_v38  ;;  %4797 = vmatprep.mubr.f32.mxu1 %v9981_v20  ;;  %v4553_v18 = vld [vmem:[%s9852_s4 + $0x48] sm:$0xff]  ;;  %v2613_v43 = vsel %vm2574_vm6, %v2235_v52, %v7556_v1  ;;  %v9988_v52 = vld [vmem:[#allocation13_spill] sm:$0xff] }
 0x21e   :  { %v2423_v31 = vrot.slane %v1737_v16, %v6989_v45  ;;  %v2367_v16 = vrot.slane %v7480_v46, %v6989_v45  ;;  %v2640_v9 = vsel %vm2572_vm5, %v2359_v37, %v2639_v19  ;;  %v2403_v37 = vrot.slane %v7504_v48, %v6989_v45 }
 0x21f   :  { %v2641_v39 = vsel %vm2574_vm6, %v2363_v41, %v2640_v9  ;;  %4582 = vperm.xlu1 %6323, %v7404_v47   ;;  %v2371_v48 = vrot.slane %v7450_v15, %v6989_v45  ;;  %v2343_v47 = vrot.slane %v7435_v42, %v6989_v45  ;;  %v4554_v15 = vld [vmem:[%s9852_s4 + $0x50] sm:$0xff]  ;;  %v2339_v42 = vrot.slane %v7407_v12, %v6989_v45 }
 0x220   :  { %v2654_v33 = vsel %vm2572_vm5, %v2423_v31, %v2653_v36  ;;  %v2435_v31 = vrot.slane %v1746_v24, %v6989_v45  ;;  %v2632_v24 = vsel %vm2570_vm4, %v2323_v5, %v2631_v27  ;;  %v2642_v5 = vsel %vm2576_vm7, %v2367_v16, %v2641_v39  ;;  %6208 = vmatmul.mubr.msk.f32.gmra.mxu1 %vm158_vm1, %v4553_v18 }
 0x221   :  { %v1740_v40 = vpop.xlane.xlu0 %1739  ;;  %v1743_v50 = vpop.xlane.xlu1 %1742  ;;  %v2633_v58 = vsel %vm2572_vm5, %v2327_v6, %v2632_v24  ;;  %4803 = vmatprep.mubr.f32.mxu1 %v9981_v20  ;;  %v2643_v19 = vsel %vm2578_vm8, %v2371_v48, %v2642_v5  ;;  %v2619_v41 = vsel %vm2572_vm5, %v2263_v57, %v7580_v51  ;;  %v2614_v17 = vsel %vm2576_vm7, %v2239_v10, %v2613_v43 }
 0x222   :  { %v2427_v21 = vrot.slane %v1740_v40, %v6989_v45  ;;  %v2431_v8 = vrot.slane %v1743_v50, %v6989_v45  ;;  %v2375_v40 = vrot.slane %v7482_v60, %v6989_v45  ;;  %v2634_v27 = vsel %vm2574_vm6, %v2331_v25, %v2633_v58  ;;  %v9985_v50 = vld [vmem:[#allocation11_spill] sm:$0xff] }
 0x223   :  { %v2635_v6 = vsel %vm2576_vm7, %v2335_v35, %v2634_v27  ;;  %v2627_v25 = vsel %vm2574_vm6, %v2299_v13, %v7596_v32  ;;  %4574 = vperm.xlu1 %6323, %v7420_v7   ;;  %v2620_v7 = vsel %vm2574_vm6, %v2267_v59, %v2619_v41  ;;  %v2307_v13 = vrot.slane %v9983_v0, %v6989_v45  ;;  %v4555_v59 = vld [vmem:[%s9852_s4 + $0x58] sm:$0xff] }
 0x224   :  { %v2655_v11 = vsel %vm2574_vm6, %v2427_v21, %v2654_v33  ;;  %v2650_v21 = vsel %vm2578_vm8, %v2403_v37, %v2649_v3  ;;  %v2644_v32 = vsel %vm2580_vm9, %v2375_v40, %v2643_v19  ;;  %v2628_v12 = vsel %vm2576_vm7, %v2303_v22, %v2627_v25  ;;  %6209 = vmatmul.mubr.msk.f32.gmra.mxu1 %vm158_vm1, %v4554_v15  ;;  %v9984_v33 = vld [vmem:[#allocation16_spill] sm:$0xff]  ;;  %v9987_v35 = vld [vmem:[#allocation14_spill] sm:$0xff] }
 0x225   :  { %v1749_v56 = vpop.xlane.xlu0 %1748  ;;  %v2656_v28 = vsel %vm2576_vm7, %v2431_v8, %v2655_v11  ;;  %v7677_v44 = vpop.xlane.xlu1 %1577  ;;  %v2651_v60 = vsel %vm2580_vm9, %v2407_v49, %v2650_v21  ;;  %v2636_v51 = vsel %vm2578_vm8, %v2339_v42, %v2635_v6  ;;  %v2279_v61 = vrot.slane %v9984_v33, %v6989_v45  ;;  %4809 = vmatprep.mubr.f32.mxu1 %v9981_v20  ;;  %v9986_v11 = vld [vmem:[#allocation15_spill] sm:$0xff]  ;;  %v9991_v27 = vld [vmem:[#allocation10_spill] sm:$0xff]  ;;  %v4558_v21 = vld [vmem:[%s9852_s4 + $0x70] sm:$0xff] }
 0x226   :  { %v2439_v46 = vrot.slane %v1749_v56, %v6989_v45  ;;  %v2657_v30 = vsel %vm2578_vm8, %v2435_v31, %v2656_v28  ;;  %v2637_v22 = vsel %vm2580_vm9, %v2343_v47, %v2636_v51  ;;  %v2621_v23 = vsel %vm2576_vm7, %v2271_v2, %v2620_v7  ;;  %v4559_v42 = vld [vmem:[%s9852_s4 + $0x78] sm:$0xff]  ;;  %v9993_v19 = vld [vmem:[#allocation8_spill] sm:$0xff] }
 0x227   :  { %v2203_v16 = vrot.slane %v9985_v50, %v6989_v45  ;;  %v2275_v54 = vrot.slane %v9986_v11, %v6989_v45  ;;  %v2629_v2 = vsel %vm2578_vm8, %v2307_v13, %v2628_v12  ;;  %v2247_v9 = vrot.slane %v9987_v35, %v6989_v45  ;;  %v9994_v7 = vld [vmem:[#allocation9_spill] sm:$0xff] }
 0x228   :  { %v2658_v4 = vsel %vm2580_vm9, %v2439_v46, %v2657_v30  ;;  %v2630_v38 = vsel %vm2580_vm9, %v2311_v34, %v2629_v2  ;;  %v2604_v1 = vsel %vm2570_vm4, %v2195_v62, %v7551_v26  ;;  %v2243_v31 = vrot.slane %v9988_v52, %v6989_v45  ;;  %6210 = vmatmul.mubr.msk.f32.gmra.mxu1 %vm158_vm1, %v4555_v59  ;;  %v9990_v46 = vld [vmem:[#allocation12_spill] sm:$0xff]  ;;  %v4556_v26 = vld [vmem:[%s9852_s4 + $0x60] sm:$0xff] }
 0x229   :  { %v7689_v36 = vpop.xlane.xlu0 %1547  ;;  %6258 = vmatprep.subr.mxu0 %v2658_v4  ;;  %v7708_v53 = vpop.xlane.xlu1 %1490  ;;  %v2622_v49 = vsel %vm2578_vm8, %v2275_v54, %v2621_v23  ;;  %v2605_v10 = vsel %vm2572_vm5, %v9989_v63, %v2604_v1  ;;  %v2207_v29 = vrot.slane %v9990_v46, %v6989_v45  ;;  %4815 = vmatprep.mubr.f32.mxu1 %v9981_v20  ;;  %v9995_v52 = vld [vmem:[#allocation7_spill] sm:$0xff] }
 0x22a   :  { %6259 = vmatpush3.msra.mxu0 %v2658_v4  ;;  %v2623_v62 = vsel %vm2580_vm9, %v2279_v61, %v2622_v49  ;;  %v2606_v28 = vsel %vm2574_vm6, %v2203_v16, %v2605_v10  ;;  %v2211_v3 = vrot.slane %v7677_v44, %v6989_v45  ;;  %v2615_v18 = vsel %vm2578_vm8, %v2243_v31, %v2614_v17  ;;  %v4557_v44 = vld [vmem:[%s9852_s4 + $0x68] sm:$0xff] }
 0x22b   :  { %6260 = vmatprep.subr.mxu0 %v2651_v60  ;;  %v2616_v24 = vsel %vm2580_vm9, %v2247_v9, %v2615_v18  ;;  %v2607_v30 = vsel %vm2576_vm7, %v2207_v29, %v2606_v28  ;;  %v2159_v48 = vrot.slane %v9991_v27, %v6989_v45  ;;  %v2163_v41 = vrot.slane %v9993_v19, %v6989_v45 }
 0x22c   :  { %6261 = vmatpush3.msra.mxu0 %v2651_v60  ;;  %6211 = vmatmul.mubr.msk.f32.gmra.mxu1 %vm158_vm1, %v4556_v26  ;;  %v2608_v40 = vsel %vm2578_vm8, %v2211_v3, %v2607_v30  ;;  %v9992_v60 = vld [vmem:[#allocation6_spill] sm:$0xff]  ;;  %v2167_v0 = vrot.slane %v9994_v7, %v6989_v45  ;;  %v2095_v10 = vrot.slane %v7708_v53, %v6989_v45 }
 0x22d   :  { %6262 = vmatprep.subr.mxu0 %v2644_v32  ;;  %v7730_v57 = vpop.xlane.xlu0 %1487  ;;  %v7754_v8 = vpop.xlane.xlu1 %1550  ;;  %4821 = vmatprep.mubr.f32.mxu1 %v9981_v20  ;;  %v2155_v6 = vrot.slane %v9992_v60, %v6989_v45 }
 0x22e   :  { %6263 = vmatpush3.msra.mxu0 %v2644_v32  ;;  %v2171_v32 = vrot.slane %v7689_v36, %v6989_v45  ;;  %v2175_v13 = vrot.slane %v7754_v8, %v6989_v45  ;;  %v2091_v1 = vrot.slane %v7730_v57, %v6989_v45 }
 0x22f   :  { %6264 = vmatprep.subr.mxu0 %v2637_v22  ;;  %v2596_v25 = vsel %vm2568_vm3, %v2159_v48, %v2155_v6 }
 0x230   :  { %6265 = vmatpush3.msra.mxu0 %v2637_v22  ;;  %6212 = vmatmul.mubr.msk.f32.gmra.mxu1 %vm158_vm1, %v4557_v44  ;;  %v2597_v34 = vsel %vm2570_vm4, %v2163_v41, %v2596_v25  ;;  %v2582_v3 = vsel %vm2568_vm3, %v2095_v10, %v2091_v1 }
 0x231   :  { %6266 = vmatprep.subr.mxu0 %v2630_v38  ;;  %v7771_v56 = vpop.xlane.xlu0 %1520  ;;  %v7789_v55 = vpop.xlane.xlu1 %1493  ;;  %4827 = vmatprep.mubr.f32.mxu1 %v9981_v20  ;;  %v2598_v61 = vsel %vm2572_vm5, %v2167_v0, %v2597_v34 }
 0x232   :  { %6267 = vmatpush3.msra.mxu0 %v2630_v38  ;;  %v2599_v22 = vsel %vm2574_vm6, %v2171_v32, %v2598_v61  ;;  %v2135_v8 = vrot.slane %v7771_v56, %v6989_v45  ;;  %v2099_v49 = vrot.slane %v7789_v55, %v6989_v45  ;;  %v1851_v61 = vld [vmem:[%s9850_s3 + $0x28] sm:$0xff] }
 0x233   :  { %6268 = vmatprep.subr.mxu0 %v2623_v62  ;;  %v2600_v59 = vsel %vm2576_vm7, %v2175_v13, %v2599_v22  ;;  %v1847_v13 = vld [vmem:[%s9850_s3 + $0x8] sm:$0xff]  ;;  %v1852_v22 = vld [vmem:[%s9850_s3 + $0x30] sm:$0xff] }
 0x234   :  { %6269 = vmatpush3.msra.mxu0 %v2623_v62  ;;  %6213 = vmatmul.mubr.msk.f32.gmra.mxu1 %vm158_vm1, %v4558_v21  ;;  %v2591_v31 = vsel %vm2572_vm5, %v2135_v8, %v9995_v52  ;;  %v1861_v8 = vld [vmem:[%s9850_s3 + $0x78] sm:$0xff] }
 0x235   :  { %6270 = vmatprep.subr.mxu0 %v2616_v24  ;;  %v1581_v39 = vpop.xlane.xlu0 %1580  ;;  %v1554_v58 = vpop.xlane.xlu1 %1553  ;;  %4833 = vmatprep.mubr.f32.mxu1 %v9981_v20 }
 0x236   :  { %v2215_v37 = vrot.slane %v1581_v39, %v6989_v45  ;;  %6271 = vmatpush3.msra.mxu0 %v2616_v24  ;;  %v2179_v51 = vrot.slane %v1554_v58, %v6989_v45  ;;  %v2583_v24 = vsel %vm2570_vm4, %v2099_v49, %v2582_v3 }
 0x238   :  { %v2609_v4 = vsel %vm2580_vm9, %v2215_v37, %v2608_v40  ;;  %6214 = vmatmul.mubr.msk.f32.gmra.mxu1 %vm158_vm1, %v4559_v42  ;;  %v2601_v16 = vsel %vm2578_vm8, %v2179_v51, %v2600_v59  ;;  %v1848_v51 = vld [vmem:[%s9850_s3 + $0x10] sm:$0xff]  ;;  %v1855_v59 = vld [vmem:[%s9850_s3 + $0x48] sm:$0xff] }
 0x239   :  { %6272 = vmatprep.subr.mxu0 %v2609_v4  ;;  %v1524_v5 = vpop.xlane.xlu0 %1523  ;;  %5321 = vmatprep.mubr.f32.mxu1 %v9981_v20 }
 0x23a   :  { %6273 = vmatpush3.msra.mxu0 %v2609_v4  ;;  %v7809_v47 = vpop.xlane.xlu1 %1466  ;;  %v2139_v2 = vrot.slane %v1524_v5, %v6989_v45 }
 0x23b   :  { %v2063_v37 = vrot.slane %v7809_v47, %v6989_v45 }
 0x23c   :  { %v2592_v63 = vsel %vm2574_vm6, %v2139_v2, %v2591_v31 }
 0x23d   :  { %v1464_v15 = vpop.xlane.xlu0 %1463 }
 0x23e   :  { %v1527_v14 = vpop.xlane.xlu1 %1526  ;;  %v2059_v55 = vrot.slane %v1464_v15, %v6989_v45 }
 0x23f   :  { %v2143_v9 = vrot.slane %v1527_v14, %v6989_v45 }
 0x240   :  { %v2569_v5 = vsel %vm2568_vm3, %v2063_v37, %v2059_v55 }
 0x241   :  { %v1497_v12 = vpop.xlane.xlu0 %1496  ;;  %v2593_v62 = vsel %vm2576_vm7, %v2143_v9, %v2592_v63 }
 0x242   :  { %v1470_v33 = vpop.xlane.xlu1 %1469  ;;  %v2103_v46 = vrot.slane %v1497_v12, %v6989_v45 }
 0x243   :  { %v2067_v53 = vrot.slane %v1470_v33, %v6989_v45  ;;  %v1850_v33 = vld [vmem:[%s9850_s3 + $0x20] sm:$0xff] }
 0x244   :  { %v2584_v30 = vsel %vm2572_vm5, %v2103_v46, %v2583_v24 }
 0x245   :  { %v1557_v23 = vpop.xlane.xlu0 %1556  ;;  %v2571_v48 = vsel %vm2570_vm4, %v2067_v53, %v2569_v5 }
 0x246   :  { %v2183_v36 = vrot.slane %v1557_v23, %v6989_v45  ;;  %v1530_v50 = vpop.xlane.xlu1 %1529  ;;  %v1853_v23 = vld [vmem:[%s9850_s3 + $0x38] sm:$0xff] }
 0x247   :  { %v2147_v38 = vrot.slane %v1530_v50, %v6989_v45  ;;  %v1856_v50 = vld [vmem:[%s9850_s3 + $0x50] sm:$0xff] }
 0x248   :  { %v2602_v43 = vsel %vm2580_vm9, %v2183_v36, %v2601_v16  ;;  %v1854_v36 = vld [vmem:[%s9850_s3 + $0x40] sm:$0xff]  ;;  %v1857_v16 = vld [vmem:[%s9850_s3 + $0x58] sm:$0xff] }
 0x249   :  { %6274 = vmatprep.subr.mxu0 %v2602_v43  ;;  %v1500_v11 = vpop.xlane.xlu0 %1499  ;;  %v2594_v28 = vsel %vm2578_vm8, %v2147_v38, %v2593_v62  ;;  %v9996_v62 = vld [vmem:[#allocation3_spill] sm:$0xff] }
 0x24a   :  { %6275 = vmatpush3.msra.mxu0 %v2602_v43  ;;  %v1503_v54 = vpop.xlane.xlu1 %1502  ;;  %v2107_v57 = vrot.slane %v1500_v11, %v6989_v45  ;;  %v1858_v43 = vld [vmem:[%s9850_s3 + $0x60] sm:$0xff]  ;;  %v1859_v11 = vld [vmem:[%s9850_s3 + $0x68] sm:$0xff]  ;;  %v7960_v55 = vsub.s32 3, %v9996_v62  ;;  %v7966_v24 = vsub.s32 4, %v9996_v62  ;;  %v7969_v53 = vsub.s32 6, %v9996_v62 }
 0x24b   :  { %v2111_v44 = vrot.slane %v1503_v54, %v6989_v45  ;;  %v1860_v54 = vld [vmem:[%s9850_s3 + $0x70] sm:$0xff]  ;;  %v7974_v37 = vsub.s32 7, %v9996_v62  ;;  %v7983_v5 = vsub.s32 2, %v9996_v62 }
 0x24c   :  { %v2585_v40 = vsel %vm2574_vm6, %v2107_v57, %v2584_v30  ;;  %v7954_v57 = vsub.s32 1, %v9996_v62 }
 0x24d   :  { %v1473_v35 = vpop.xlane.xlu0 %1472  ;;  %v2586_v25 = vsel %vm2576_vm7, %v2111_v44, %v2585_v40 }
 0x24e   :  { %v1476_v17 = vpop.xlane.xlu1 %1475  ;;  %v2071_v58 = vrot.slane %v1473_v35, %v6989_v45 }
 0x24f   :  { %v2075_v21 = vrot.slane %v1476_v17, %v6989_v45 }
 0x250   :  { %v2573_v47 = vsel %vm2572_vm5, %v2071_v58, %v2571_v48 }
 0x251   :  { %v1533_v56 = vpop.xlane.xlu0 %1532  ;;  %v2575_v14 = vsel %vm2574_vm6, %v2075_v21, %v2573_v47 }
 0x252   :  { %v2151_v29 = vrot.slane %v1533_v56, %v6989_v45  ;;  %v1479_v26 = vpop.xlane.xlu1 %1478 }
 0x253   :  { %v2079_v6 = vrot.slane %v1479_v26, %v6989_v45  ;;  %v7957_v26 = vsub.s32 0, %v9996_v62 }
 0x254   :  { %v2595_v18 = vsel %vm2580_vm9, %v2151_v29, %v2594_v28 }
 0x255   :  { %v1506_v39 = vpop.xlane.xlu0 %1505  ;;  %6276 = vmatprep.subr.mxu0 %v2595_v18  ;;  %v2577_v12 = vsel %vm2576_vm7, %v2079_v6, %v2575_v14  ;;  %9997 = vst [vmem:[#allocation18_spill] sm:$0xff] %v7957_v26 }
 0x256   :  { %6277 = vmatpush3.msra.mxu0 %v2595_v18  ;;  %v2115_v4 = vrot.slane %v1506_v39, %v6989_v45  ;;  %v1482_v27 = vpop.xlane.xlu1 %1481  ;;  %v7963_v18 = vsub.s32 5, %v9996_v62 }
 0x257   :  { %v2083_v42 = vrot.slane %v1482_v27, %v6989_v45 }
 0x258   :  { %v2587_v19 = vsel %vm2578_vm8, %v2115_v4, %v2586_v25 }
 0x259   :  { %v1509_v60 = vpop.xlane.xlu0 %1508  ;;  %v2579_v7 = vsel %vm2578_vm8, %v2083_v42, %v2577_v12 }
 0x25a   :  { %v2119_v15 = vrot.slane %v1509_v60, %v6989_v45  ;;  %v7929_v2 = vpop.permute.xlu1 %1923 }
 0x25c   :  { %v2588_v41 = vsel %vm2580_vm9, %v2119_v15, %v2587_v19 }
 0x25d   :  { %6278 = vmatprep.subr.mxu0 %v2588_v41  ;;  %v1485_v34 = vpop.xlane.xlu0 %1484 }
 0x25e   :  { %v2087_v32 = vrot.slane %v1485_v34, %v6989_v45  ;;  %6279 = vmatpush3.msra.mxu0 %v2588_v41  ;;  %v1849_v45 = vld [vmem:[%s9850_s3 + $0x18] sm:$0xff]  ;;  %v7931_v35 = vpop.permute.xlu1 %1915 }
 0x260   :  { %v2581_v0 = vsel %vm2580_vm9, %v2087_v32, %v2579_v7 }
 0x261   :  { %6280 = vmatprep.subr.mxu0 %v2581_v0 }
 0x262   :  { %6281 = vmatpush3.msra.mxu0 %v2581_v0  ;;  %v7933_v9 = vpop.permute.xlu1 %1911 }
 0x263   :  { %6283 = vmatmul.mubr.f32.vlgmr.msra.gmra.mxu0 %v1847_v13 }
 0x264   :  { %6285 = vmatprep.mubr.f32.mxu0 %v1848_v51 }
 0x265   :  { %v7945_v49 = vpop.permute.xlu0 %1919 }
 0x266   :  { %v7935_v38 = vpop.permute.xlu1 %1907 }
 0x267   :  { %6286 = vmatmul.mubr.f32.gmra.mxu0 %v1849_v45 }
 0x268   :  { %6288 = vmatprep.mubr.f32.mxu0 %v1850_v33 }
 0x269   :  { %v7949_v56 = vpop.permute.xlu0 %1883 }
 0x26a   :  { %v7937_v17 = vpop.permute.xlu1 %1903 }
 0x26b   :  { %6289 = vmatmul.mubr.f32.gmra.mxu0 %v1851_v61 }
 0x26c   :  { %6291 = vmatprep.mubr.f32.mxu0 %v1852_v22 }
 0x26d   :  { %v1876_v46 = vpop.permute.xlu0 %1875 }
 0x26e   :  { %v7939_v1 = vpop.permute.xlu1 %1899 }
 0x26f   :  { %6292 = vmatmul.mubr.f32.gmra.mxu0 %v1853_v23 }
 0x270   :  { %6294 = vmatprep.mubr.f32.mxu0 %v1854_v36 }
 0x271   :  { %v1868_v28 = vpop.permute.xlu0 %1867 }
 0x272   :  { %v7941_v52 = vpop.permute.xlu1 %1895 }
 0x273   :  { %6295 = vmatmul.mubr.f32.gmra.mxu0 %v1855_v59 }
 0x274   :  { %6297 = vmatprep.mubr.f32.mxu0 %v1856_v50 }
 0x276   :  { %v7943_v31 = vpop.permute.xlu1 %1891 }
 0x277   :  { %6298 = vmatmul.mubr.f32.gmra.mxu0 %v1857_v16 }
 0x278   :  { %6300 = vmatprep.mubr.f32.mxu0 %v1858_v43 }
 0x27a   :  { %v7947_v63 = vpop.permute.xlu1 %1887 }
 0x27b   :  { %6301 = vmatmul.mubr.f32.gmra.mxu0 %v1859_v11 }
 0x27c   :  { %6303 = vmatprep.mubr.f32.mxu0 %v1860_v54 }
 0x27e   :  { %v7951_v10 = vpop.permute.xlu1 %1879 }
 0x27f   :  { %6304 = vmatmul.mubr.f32.gmra.mxu0 %v1861_v8 }
 0x280   :  { %5064 = vmatprep.mubr.f32.mxu0 %v9981_v20 }
 0x282   :  { %v1872_v29 = vpop.permute.xlu1 %1871 }
 0x286   :  { %v1864_v30 = vpop.permute.xlu1 %1863 }
 0x323   :  { %v6284_v3 = vpop.f32.mrf.mxu0 }
 0x324   :  { %v7971_v39 = vadd.f32 %v6284_v3, %v1868_v28 }
 0x325   :  { %v2769_v44 = vpop.f32.mrf.mxu0 }
 0x326   :  { %v7976_v58 = vadd.f32 %v2769_v44, %v1864_v30  ;;  %v2914_v40 = vrot.slane %v7971_v39, %v7954_v57  ;;  %v2907_v4 = vrot.slane %v7971_v39, %v7957_v26  ;;  %v2921_v14 = vrot.slane %v7971_v39, %v7983_v5 }
 0x327   :  { %v6287_v27 = vpop.f32.mrf.mxu0 }
 0x328   :  { %v2785_v6 = vadd.f32 %v6287_v27, %v1876_v46  ;;  %2916 = vbcast.lane.b32.xlu1 %v2914_v40, 256  ;;  %2909 = vbcast.lane.b32.xlu0 %v2907_v4, 256 }
 0x329   :  { %v2779_v13 = vpop.f32.mrf.mxu0 }
 0x32a   :  { %v3026_v34 = vrot.slane %v2785_v6, %v7954_v57  ;;  %v3040_v32 = vrot.slane %v2785_v6, %v7960_v55  ;;  %v3019_v12 = vrot.slane %v2785_v6, %v7957_v26  ;;  %v3054_v7 = vrot.slane %v2785_v6, %v7963_v18 }
 0x32b   :  { %v3033_v0 = vrot.slane %v2785_v6, %v7983_v5  ;;  %v2780_v51 = vadd.f32 %v2779_v13, %v1872_v29  ;;  %v3068_v45 = vrot.slane %v2785_v6, %v7974_v37  ;;  %v3047_v33 = vrot.slane %v2785_v6, %v7966_v24  ;;  %v6290_v16 = vpop.f32.mrf.mxu0 }
 0x32c   :  { %2923 = vbcast.lane.b32.xlu0 %v2921_v14, 256  ;;  %3028 = vbcast.lane.b32.xlu1 %v3026_v34, 256  ;;  %v3061_v61 = vrot.slane %v2785_v6, %v7969_v53  ;;  %v2795_v43 = vadd.f32 %v6290_v16, %v7949_v56 }
 0x32d   :  { %v2963_v22 = vrot.slane %v2780_v51, %v7957_v26  ;;  %v2970_v23 = vrot.slane %v2780_v51, %v7954_v57  ;;  %v2977_v36 = vrot.slane %v2780_v51, %v7983_v5  ;;  %v2984_v59 = vrot.slane %v2780_v51, %v7960_v55  ;;  %v2789_v40 = vpop.f32.mrf.mxu0 }
 0x32e   :  { %v2991_v50 = vrot.slane %v2780_v51, %v7966_v24  ;;  %v2998_v11 = vrot.slane %v2780_v51, %v7963_v18  ;;  %v3005_v54 = vrot.slane %v2780_v51, %v7969_v53  ;;  %v3012_v8 = vrot.slane %v2780_v51, %v7974_v37 }
 0x32f   :  { %v3138_v46 = vrot.slane %v2795_v43, %v7954_v57  ;;  %v3131_v56 = vrot.slane %v2795_v43, %v7957_v26  ;;  %v3152_v3 = vrot.slane %v2795_v43, %v7960_v55  ;;  %v3145_v30 = vrot.slane %v2795_v43, %v7983_v5 }
 0x330   :  { %3042 = vbcast.lane.b32.xlu1 %v3040_v32, 256  ;;  %3021 = vbcast.lane.b32.xlu0 %v3019_v12, 256  ;;  %v3166_v44 = vrot.slane %v2795_v43, %v7963_v18  ;;  %v2790_v4 = vadd.f32 %v2789_v40, %v7951_v10  ;;  %v3159_v27 = vrot.slane %v2795_v43, %v7966_v24 }
 0x331   :  { %v3180_v6 = vrot.slane %v2795_v43, %v7974_v37  ;;  %v3173_v14 = vrot.slane %v2795_v43, %v7969_v53 }
 0x332   :  { %v3075_v34 = vrot.slane %v2790_v4, %v7957_v26  ;;  %v3082_v32 = vrot.slane %v2790_v4, %v7954_v57  ;;  %v3089_v12 = vrot.slane %v2790_v4, %v7983_v5  ;;  %v3096_v10 = vrot.slane %v2790_v4, %v7960_v55 }
 0x333   :  { %v3110_v51 = vrot.slane %v2790_v4, %v7963_v18 }
 0x334   :  { %3056 = vbcast.lane.b32.xlu1 %v3054_v7, 256  ;;  %3035 = vbcast.lane.b32.xlu0 %v3033_v0, 256  ;;  %v3103_v7 = vrot.slane %v2790_v4, %v7966_v24  ;;  %v6293_v0 = vpop.f32.mrf.mxu0 }
 0x335   :  { %v2805_v13 = vadd.f32 %v6293_v0, %v7943_v31 }
 0x337   :  { %v3257_v31 = vrot.slane %v2805_v13, %v7983_v5  ;;  %v3271_v43 = vrot.slane %v2805_v13, %v7966_v24 }
 0x338   :  { %3070 = vbcast.lane.b32.xlu1 %v3068_v45, 256  ;;  %3049 = vbcast.lane.b32.xlu0 %v3047_v33, 256  ;;  %v3117_v45 = vrot.slane %v2790_v4, %v7969_v53  ;;  %v3124_v33 = vrot.slane %v2790_v4, %v7974_v37 }
 0x33c   :  { %3063 = vbcast.lane.b32.xlu0 %v3061_v61, 256  ;;  %2965 = vbcast.lane.b32.xlu1 %v2963_v22, 256  ;;  %v3250_v61 = vrot.slane %v2805_v13, %v7954_v57  ;;  %v3243_v22 = vrot.slane %v2805_v13, %v7957_v26 }
 0x340   :  { %2972 = vbcast.lane.b32.xlu0 %v2970_v23, 256  ;;  %2979 = vbcast.lane.b32.xlu1 %v2977_v36, 256  ;;  %v3264_v23 = vrot.slane %v2805_v13, %v7960_v55  ;;  %v8049_v36 = vpop.permute.xlu0 %4622 }
 0x344   :  { %2986 = vbcast.lane.b32.xlu0 %v2984_v59, 256  ;;  %2993 = vbcast.lane.b32.xlu1 %v2991_v50, 256  ;;  %v3278_v59 = vrot.slane %v2805_v13, %v7963_v18  ;;  %v2799_v50 = vpop.f32.mrf.mxu0 }
 0x345   :  { %v2800_v16 = vadd.f32 %v2799_v50, %v7947_v63 }
 0x347   :  { %v3194_v63 = vrot.slane %v2800_v16, %v7954_v57  ;;  %v3208_v40 = vrot.slane %v2800_v16, %v7960_v55  ;;  %v3215_v4 = vrot.slane %v2800_v16, %v7966_v24  ;;  %v3236_v0 = vrot.slane %v2800_v16, %v7974_v37 }
 0x348   :  { %3000 = vbcast.lane.b32.xlu0 %v2998_v11, 256  ;;  %3007 = vbcast.lane.b32.xlu1 %v3005_v54, 256  ;;  %v3292_v11 = vrot.slane %v2805_v13, %v7974_v37  ;;  %v8056_v54 = vpop.permute.xlu0 %4618 }
 0x34c   :  { %3014 = vbcast.lane.b32.xlu0 %v3012_v8, 256  ;;  %3140 = vbcast.lane.b32.xlu1 %v3138_v46, 256  ;;  %v8058_v8 = vpop.permute.xlu1 %4614  ;;  %v3285_v46 = vrot.slane %v2805_v13, %v7969_v53 }
 0x350   :  { %3133 = vbcast.lane.b32.xlu0 %v3131_v56, 256  ;;  %3154 = vbcast.lane.b32.xlu1 %v3152_v3, 256  ;;  %v3187_v56 = vrot.slane %v2800_v16, %v7957_v26  ;;  %v8062_v3 = vpop.permute.xlu0 %4610 }
 0x354   :  { %3147 = vbcast.lane.b32.xlu0 %v3145_v30, 256  ;;  %3168 = vbcast.lane.b32.xlu1 %v3166_v44, 256  ;;  %v8064_v30 = vpop.permute.xlu1 %4606  ;;  %v3201_v44 = vrot.slane %v2800_v16, %v7983_v5 }
 0x358   :  { %3161 = vbcast.lane.b32.xlu0 %v3159_v27, 256  ;;  %3182 = vbcast.lane.b32.xlu1 %v3180_v6, 256  ;;  %v6296_v27 = vpop.f32.mrf.mxu0  ;;  %v8070_v6 = vpop.permute.xlu0 %4602 }
 0x35c   :  { %3175 = vbcast.lane.b32.xlu0 %v3173_v14, 256  ;;  %3077 = vbcast.lane.b32.xlu1 %v3075_v34, 256  ;;  %v8072_v14 = vpop.permute.xlu1 %4598  ;;  %v2815_v34 = vadd.f32 %v6296_v27, %v7939_v1 }
 0x35e   :  { %v3362_v13 = vrot.slane %v2815_v34, %v7954_v57  ;;  %v3376_v1 = vrot.slane %v2815_v34, %v7960_v55 }
 0x360   :  { %3084 = vbcast.lane.b32.xlu0 %v3082_v32, 256  ;;  %3091 = vbcast.lane.b32.xlu1 %v3089_v12, 256  ;;  %v3222_v32 = vrot.slane %v2800_v16, %v7963_v18  ;;  %v3229_v12 = vrot.slane %v2800_v16, %v7969_v53  ;;  %v3383_v16 = vrot.slane %v2815_v34, %v7966_v24 }
 0x364   :  { %3098 = vbcast.lane.b32.xlu0 %v3096_v10, 256  ;;  %3105 = vbcast.lane.b32.xlu1 %v3103_v7, 256  ;;  %v8077_v10 = vpop.permute.xlu0 %4594  ;;  %v8079_v7 = vpop.permute.xlu1 %4590 }
 0x368   :  { %3112 = vbcast.lane.b32.xlu0 %v3110_v51, 256  ;;  %3119 = vbcast.lane.b32.xlu1 %v3117_v45, 256  ;;  %v3355_v51 = vrot.slane %v2815_v34, %v7957_v26  ;;  %v8085_v45 = vpop.permute.xlu0 %4586 }
 0x36c   :  { %3126 = vbcast.lane.b32.xlu0 %v3124_v33, 256  ;;  %3252 = vbcast.lane.b32.xlu1 %v3250_v61, 256  ;;  %v8087_v33 = vpop.permute.xlu1 %4582  ;;  %v3369_v61 = vrot.slane %v2815_v34, %v7983_v5 }
 0x370   :  { %3245 = vbcast.lane.b32.xlu0 %v3243_v22, 256  ;;  %3266 = vbcast.lane.b32.xlu1 %v3264_v23, 256  ;;  %v3390_v22 = vrot.slane %v2815_v34, %v7963_v18  ;;  %v2809_v23 = vpop.f32.mrf.mxu0  ;;  %v8094_v50 = vpop.permute.xlu1 %4574 }
 0x374   :  { %3259 = vbcast.lane.b32.xlu0 %v3257_v31, 256  ;;  %3280 = vbcast.lane.b32.xlu1 %v3278_v59, 256  ;;  %v2810_v31 = vadd.f32 %v2809_v23, %v7941_v52  ;;  %v8092_v59 = vpop.permute.xlu0 %4578 }
 0x378   :  { %3273 = vbcast.lane.b32.xlu0 %v3271_v43, 256  ;;  %3294 = vbcast.lane.b32.xlu1 %v3292_v11, 256  ;;  %v3404_v43 = vrot.slane %v2815_v34, %v7974_v37 }
 0x37c   :  { %3287 = vbcast.lane.b32.xlu0 %v3285_v46, 256  ;;  %3189 = vbcast.lane.b32.xlu1 %v3187_v56, 256  ;;  %v3397_v56 = vrot.slane %v2815_v34, %v7969_v53  ;;  %v3320_v34 = vrot.slane %v2810_v31, %v7960_v55 }
 0x380   :  { %3196 = vbcast.lane.b32.xlu0 %v3194_v63, 256  ;;  %3203 = vbcast.lane.b32.xlu1 %v3201_v44, 256  ;;  %v3299_v63 = vrot.slane %v2810_v31, %v7957_v26 }
 0x384   :  { %3210 = vbcast.lane.b32.xlu0 %v3208_v40, 256  ;;  %3217 = vbcast.lane.b32.xlu1 %v3215_v4, 256  ;;  %v3306_v40 = vrot.slane %v2810_v31, %v7954_v57  ;;  %v3313_v4 = vrot.slane %v2810_v31, %v7983_v5 }
 0x388   :  { %3224 = vbcast.lane.b32.xlu0 %v3222_v32, 256  ;;  %3231 = vbcast.lane.b32.xlu1 %v3229_v12, 256  ;;  %v3327_v12 = vrot.slane %v2810_v31, %v7966_v24 }
 0x38c   :  { %3238 = vbcast.lane.b32.xlu0 %v3236_v0, 256  ;;  %3364 = vbcast.lane.b32.xlu1 %v3362_v13, 256  ;;  %v6299_v0 = vpop.f32.mrf.mxu0 }
 0x38d   :  { %v2825_v13 = vadd.f32 %v6299_v0, %v7935_v38 }
 0x38f   :  { %v3502_v0 = vrot.slane %v2825_v13, %v7963_v18  ;;  %v3509_v29 = vrot.slane %v2825_v13, %v7969_v53 }
 0x390   :  { %3357 = vbcast.lane.b32.xlu0 %v3355_v51, 256  ;;  %3378 = vbcast.lane.b32.xlu1 %v3376_v1, 256 }
 0x394   :  { %3371 = vbcast.lane.b32.xlu0 %v3369_v61, 256  ;;  %3392 = vbcast.lane.b32.xlu1 %v3390_v22, 256  ;;  %v3334_v61 = vrot.slane %v2810_v31, %v7963_v18  ;;  %v3341_v22 = vrot.slane %v2810_v31, %v7969_v53 }
 0x398   :  { %3385 = vbcast.lane.b32.xlu0 %v3383_v16, 256  ;;  %3406 = vbcast.lane.b32.xlu1 %v3404_v43, 256  ;;  %v3348_v43 = vrot.slane %v2810_v31, %v7974_v37  ;;  %v3481_v31 = vrot.slane %v2825_v13, %v7983_v5 }
 0x39a   :  { %v8098_v11 = vpop.permute.xlu0 %2909  ;;  %v8100_v46 = vpop.permute.xlu1 %2916 }
 0x39b   :  { %9998 = vst [vmem:[#allocation17_spill] sm:$0xff] %v8098_v11  ;;  %9999 = vst [vmem:[#allocation16_spill] sm:$0xff] %v8100_v46 }
 0x39c   :  { %3399 = vbcast.lane.b32.xlu0 %v3397_v56, 256  ;;  %3301 = vbcast.lane.b32.xlu1 %v3299_v63, 256  ;;  %v3474_v56 = vrot.slane %v2825_v13, %v7954_v57 }
 0x39e   :  { %v8104_v52 = vpop.permute.xlu0 %2923  ;;  %v8106_v44 = vpop.permute.xlu1 %3028 }
 0x39f   :  { %10000 = vst [vmem:[#allocation11_spill] sm:$0xff] %v8104_v52 }
 0x3a0   :  { %3308 = vbcast.lane.b32.xlu0 %v3306_v40, 256  ;;  %3315 = vbcast.lane.b32.xlu1 %v3313_v4, 256  ;;  %v3467_v40 = vrot.slane %v2825_v13, %v7957_v26  ;;  %v3488_v4 = vrot.slane %v2825_v13, %v7960_v55 }
 0x3a2   :  { %v8110_v27 = vpop.permute.xlu0 %3021  ;;  %v8112_v32 = vpop.permute.xlu1 %3042 }
 0x3a4   :  { %3322 = vbcast.lane.b32.xlu0 %v3320_v34, 256  ;;  %3329 = vbcast.lane.b32.xlu1 %v3327_v12, 256 }
 0x3a6   :  { %v8117_v51 = vpop.permute.xlu0 %3035  ;;  %v8119_v1 = vpop.permute.xlu1 %3056 }
 0x3a8   :  { %3336 = vbcast.lane.b32.xlu0 %v3334_v61, 256  ;;  %3343 = vbcast.lane.b32.xlu1 %v3341_v22, 256  ;;  %v2819_v61 = vpop.f32.mrf.mxu0 }
 0x3a9   :  { %v2820_v22 = vadd.f32 %v2819_v61, %v7937_v17 }
 0x3aa   :  { %v8123_v23 = vpop.permute.xlu0 %3049  ;;  %v8125_v16 = vpop.permute.xlu1 %3070 }
 0x3ab   :  { %v3418_v61 = vrot.slane %v2820_v22, %v7954_v57  ;;  %v3425_v41 = vrot.slane %v2820_v22, %v7983_v5  ;;  %v3439_v19 = vrot.slane %v2820_v22, %v7966_v24  ;;  %v3460_v60 = vrot.slane %v2820_v22, %v7974_v37 }
 0x3ac   :  { %3350 = vbcast.lane.b32.xlu0 %v3348_v43, 256  ;;  %3476 = vbcast.lane.b32.xlu1 %v3474_v56, 256 }
 0x3ae   :  { %v8129_v38 = vpop.permute.xlu0 %3063  ;;  %v8131_v63 = vpop.permute.xlu1 %2965 }
 0x3b0   :  { %3469 = vbcast.lane.b32.xlu0 %v3467_v40, 256  ;;  %3490 = vbcast.lane.b32.xlu1 %v3488_v4, 256  ;;  %v3495_v40 = vrot.slane %v2825_v13, %v7966_v24  ;;  %v3516_v4 = vrot.slane %v2825_v13, %v7974_v37  ;;  %v3432_v13 = vrot.slane %v2820_v22, %v7960_v55 }
 0x3b2   :  { %v8135_v34 = vpop.permute.xlu0 %2972  ;;  %v8137_v12 = vpop.permute.xlu1 %2979 }
 0x3b4   :  { %3483 = vbcast.lane.b32.xlu0 %v3481_v31, 256  ;;  %3504 = vbcast.lane.b32.xlu1 %v3502_v0, 256  ;;  %v3411_v31 = vrot.slane %v2820_v22, %v7957_v26 }
 0x3b6   :  { %v8142_v43 = vpop.permute.xlu0 %2986  ;;  %v8144_v56 = vpop.permute.xlu1 %2993 }
 0x3b7   :  { %10001 = vst [vmem:[#allocation15_spill] sm:$0xff] %v8144_v56 }
 0x3b8   :  { %3497 = vbcast.lane.b32.xlu0 %v3495_v40, 256  ;;  %3518 = vbcast.lane.b32.xlu1 %v3516_v4, 256 }
 0x3ba   :  { %v8148_v28 = vpop.permute.xlu0 %3000  ;;  %v8150_v62 = vpop.permute.xlu1 %3007 }
 0x3bb   :  { %10002 = vst [vmem:[#allocation14_spill] sm:$0xff] %v8148_v28  ;;  %10003 = vst [vmem:[#allocation13_spill] sm:$0xff] %v8150_v62 }
 0x3bc   :  { %3511 = vbcast.lane.b32.xlu0 %v3509_v29, 256  ;;  %3413 = vbcast.lane.b32.xlu1 %v3411_v31, 256  ;;  %v6302_v29 = vpop.f32.mrf.mxu0 }
 0x3bd   :  { %v2835_v31 = vadd.f32 %v6302_v29, %v7931_v35 }
 0x3be   :  { %v8154_v17 = vpop.permute.xlu0 %3014  ;;  %v8156_v0 = vpop.permute.xlu1 %3140 }
 0x3bf   :  { %10004 = vst [vmem:[#allocation12_spill] sm:$0xff] %v8154_v17  ;;  %10005 = vst [vmem:[#allocation10_spill] sm:$0xff] %v8156_v0  ;;  %v3593_v29 = vrot.slane %v2835_v31, %v7983_v5  ;;  %v3586_v21 = vrot.slane %v2835_v31, %v7954_v57  ;;  %v3600_v48 = vrot.slane %v2835_v31, %v7960_v55 }
 0x3c0   :  { %3420 = vbcast.lane.b32.xlu0 %v3418_v61, 256  ;;  %3427 = vbcast.lane.b32.xlu1 %v3425_v41, 256  ;;  %v3446_v61 = vrot.slane %v2820_v22, %v7963_v18  ;;  %v3453_v41 = vrot.slane %v2820_v22, %v7969_v53  ;;  %v3607_v22 = vrot.slane %v2835_v31, %v7966_v24 }
 0x3c2   :  { %v8160_v40 = vpop.permute.xlu0 %3133  ;;  %v8162_v4 = vpop.permute.xlu1 %3154 }
 0x3c3   :  { %10006 = vst [vmem:[#allocation6_spill] sm:$0xff] %v8162_v4 }
 0x3c4   :  { %3434 = vbcast.lane.b32.xlu0 %v3432_v13, 256  ;;  %3441 = vbcast.lane.b32.xlu1 %v3439_v19, 256  ;;  %v3579_v19 = vrot.slane %v2835_v31, %v7957_v26 }
 0x3c6   :  { %v8167_v42 = vpop.permute.xlu0 %3147  ;;  %v8169_v25 = vpop.permute.xlu1 %3168 }
 0x3c8   :  { %3448 = vbcast.lane.b32.xlu0 %v3446_v61, 256  ;;  %3455 = vbcast.lane.b32.xlu1 %v3453_v41, 256 }
 0x3ca   :  { %v8173_v15 = vpop.permute.xlu0 %3161  ;;  %v8175_v47 = vpop.permute.xlu1 %3182 }
 0x3cc   :  { %3462 = vbcast.lane.b32.xlu0 %v3460_v60, 256  ;;  %3581 = vbcast.lane.b32.xlu1 %v3579_v19, 256  ;;  %v2829_v60 = vpop.f32.mrf.mxu0 }
 0x3cd   :  { %v2830_v19 = vadd.f32 %v2829_v60, %v7933_v9 }
 0x3ce   :  { %v8179_v35 = vpop.permute.xlu0 %3175  ;;  %v8181_v13 = vpop.permute.xlu1 %3077 }
 0x3cf   :  { %10007 = vst [vmem:[#allocation8_spill] sm:$0xff] %v8181_v13  ;;  %v3544_v60 = vrot.slane %v2830_v19, %v7960_v55 }
 0x3d0   :  { %3595 = vbcast.lane.b32.xlu0 %v3593_v29, 256  ;;  %3588 = vbcast.lane.b32.xlu1 %v3586_v21, 256  ;;  %v3621_v29 = vrot.slane %v2835_v31, %v7969_v53  ;;  %v3614_v21 = vrot.slane %v2835_v31, %v7963_v18 }
 0x3d2   :  { %v8185_v61 = vpop.permute.xlu0 %3084  ;;  %v8187_v41 = vpop.permute.xlu1 %3091 }
 0x3d3   :  { %10008 = vst [vmem:[#allocation9_spill] sm:$0xff] %v8185_v61  ;;  %10009 = vst [vmem:[#allocation7_spill] sm:$0xff] %v8187_v41  ;;  %v3530_v41 = vrot.slane %v2830_v19, %v7954_v57 }
 0x3d4   :  { %3609 = vbcast.lane.b32.xlu0 %v3607_v22, 256  ;;  %3602 = vbcast.lane.b32.xlu1 %v3600_v48, 256  ;;  %v3628_v48 = vrot.slane %v2835_v31, %v7974_v37  ;;  %v3537_v31 = vrot.slane %v2830_v19, %v7983_v5 }
 0x3d6   :  { %v8192_v20 = vpop.permute.xlu0 %3098  ;;  %v8194_v46 = vpop.permute.xlu1 %3105 }
 0x3d7   :  { %10010 = vst [vmem:[#allocation3_spill] sm:$0xff] %v8192_v20  ;;  %10011 = vst [vmem:[#allocation19_spill] sm:$0xff] %v8194_v46  ;;  %v3523_v20 = vrot.slane %v2830_v19, %v7957_v26  ;;  %v3558_v46 = vrot.slane %v2830_v19, %v7963_v18 }
 0x3d8   :  { %3623 = vbcast.lane.b32.xlu0 %v3621_v29, 256  ;;  %3616 = vbcast.lane.b32.xlu1 %v3614_v21, 256 }
 0x3da   :  { %v8198_v61 = vpop.permute.xlu0 %3112  ;;  %v8200_v13 = vpop.permute.xlu1 %3119 }
 0x3db   :  { %10012 = vst [vmem:[#allocation20_spill] sm:$0xff] %v8200_v13 }
 0x3dc   :  { %3532 = vbcast.lane.b32.xlu0 %v3530_v41, 256  ;;  %3630 = vbcast.lane.b32.xlu1 %v3628_v48, 256  ;;  %v6305_v41 = vpop.f32.mrf.mxu0  ;;  %v8216_v48 = vpop.f32.mrf.mxu1 }
 0x3dd   :  { %10016 = vst [vmem:[#allocation24_spill] sm:$0xff] %v8216_v48 }
 0x3de   :  { %v8204_v9 = vpop.permute.xlu0 %3126  ;;  %v8206_v22 = vpop.permute.xlu1 %3252 }
 0x3df   :  { %10013 = vst [vmem:[#allocation21_spill] sm:$0xff] %v8206_v22  ;;  %v2845_v22 = vadd.f32 %v6305_v41, %v7929_v2  ;;  %v3565_v2 = vrot.slane %v2830_v19, %v7969_v53 }
 0x3e0   :  { %3546 = vbcast.lane.b32.xlu0 %v3544_v60, 256  ;;  %3525 = vbcast.lane.b32.xlu1 %v3523_v20, 256  ;;  %v3572_v20 = vrot.slane %v2830_v19, %v7974_v37  ;;  %v3551_v60 = vrot.slane %v2830_v19, %v7966_v24 }
 0x3e1   :  { %v3719_v19 = vrot.slane %v2845_v22, %v7966_v24 }
 0x3e2   :  { %v8210_v29 = vpop.permute.xlu0 %3245  ;;  %v8212_v21 = vpop.permute.xlu1 %3266 }
 0x3e3   :  { %10014 = vst [vmem:[#allocation22_spill] sm:$0xff] %v8210_v29  ;;  %10015 = vst [vmem:[#allocation23_spill] sm:$0xff] %v8212_v21  ;;  %v8225_v29 = vpop.f32.mrf.mxu1 }
 0x3e4   :  { %3560 = vbcast.lane.b32.xlu0 %v3558_v46, 256  ;;  %3539 = vbcast.lane.b32.xlu1 %v3537_v31, 256  ;;  %10019 = vst [vmem:[#allocation27_spill] sm:$0xff] %v8225_v29  ;;  %v3691_v46 = vrot.slane %v2845_v22, %v7957_v26  ;;  %v3705_v29 = vrot.slane %v2845_v22, %v7983_v5 }
 0x3e5   :  { %v8233_v31 = vpop.f32.mrf.mxu1 }
 0x3e6   :  { %v8219_v13 = vpop.permute.xlu0 %3259  ;;  %v8221_v28 = vpop.permute.xlu1 %3280  ;;  %10022 = vst [vmem:[#allocation30_spill] sm:$0xff] %v8233_v31 }
 0x3e7   :  { %10017 = vst [vmem:[#allocation25_spill] sm:$0xff] %v8219_v13  ;;  %10018 = vst [vmem:[#allocation26_spill] sm:$0xff] %v8221_v28 }
 0x3e8   :  { %3574 = vbcast.lane.b32.xlu0 %v3572_v20, 256  ;;  %3553 = vbcast.lane.b32.xlu1 %v3551_v60, 256  ;;  %v3698_v20 = vrot.slane %v2845_v22, %v7954_v57  ;;  %v8241_v60 = vpop.f32.mrf.mxu1 }
 0x3e9   :  { %10025 = vst [vmem:[#allocation33_spill] sm:$0xff] %v8241_v60 }
 0x3ea   :  { %v8227_v21 = vpop.permute.xlu0 %3273  ;;  %v8229_v17 = vpop.permute.xlu1 %3294 }
 0x3eb   :  { %10020 = vst [vmem:[#allocation28_spill] sm:$0xff] %v8227_v21  ;;  %10021 = vst [vmem:[#allocation29_spill] sm:$0xff] %v8229_v17  ;;  %v8249_v31 = vpop.f32.mrf.mxu1 }
 0x3ec   :  { %3693 = vbcast.lane.b32.xlu0 %v3691_v46, 256  ;;  %3567 = vbcast.lane.b32.xlu1 %v3565_v2, 256  ;;  %v3712_v46 = vrot.slane %v2845_v22, %v7960_v55  ;;  %v2839_v2 = vpop.f32.mrf.mxu0  ;;  %10028 = vst [vmem:[#allocation36_spill] sm:$0xff] %v8249_v31 }
 0x3ee   :  { %v8235_v41 = vpop.permute.xlu0 %3287  ;;  %v8237_v48 = vpop.permute.xlu1 %3189 }
 0x3ef   :  { %10023 = vst [vmem:[#allocation31_spill] sm:$0xff] %v8235_v41  ;;  %10024 = vst [vmem:[#allocation32_spill] sm:$0xff] %v8237_v48  ;;  %v2840_v48 = vadd.f32 %v2839_v2, %v7945_v49  ;;  %v3740_v49 = vrot.slane %v2845_v22, %v7974_v37 }
 0x3f0   :  { %3707 = vbcast.lane.b32.xlu0 %v3705_v29, 256  ;;  %3700 = vbcast.lane.b32.xlu1 %v3698_v20, 256  ;;  %v3733_v29 = vrot.slane %v2845_v22, %v7969_v53  ;;  %v3726_v20 = vrot.slane %v2845_v22, %v7963_v18 }
 0x3f1   :  { %v3663_v22 = vrot.slane %v2840_v48, %v7966_v24 }
 0x3f2   :  { %v8243_v28 = vpop.permute.xlu0 %3196  ;;  %v8245_v17 = vpop.permute.xlu1 %3203 }
 0x3f3   :  { %10026 = vst [vmem:[#allocation34_spill] sm:$0xff] %v8243_v28  ;;  %10027 = vst [vmem:[#allocation35_spill] sm:$0xff] %v8245_v17  ;;  %v8258_v28 = vpop.f32.mrf.mxu1 }
 0x3f4   :  { %3721 = vbcast.lane.b32.xlu0 %v3719_v19, 256  ;;  %3714 = vbcast.lane.b32.xlu1 %v3712_v46, 256  ;;  %10031 = vst [vmem:[#allocation39_spill] sm:$0xff] %v8258_v28  ;;  %v3635_v19 = vrot.slane %v2840_v48, %v7957_v26  ;;  %v3649_v28 = vrot.slane %v2840_v48, %v7983_v5 }
 0x3f5   :  { %v8266_v46 = vpop.f32.mrf.mxu1 }
 0x3f6   :  { %v8252_v21 = vpop.permute.xlu0 %3210  ;;  %v8254_v60 = vpop.permute.xlu1 %3217 }
 0x3f7   :  { %10029 = vst [vmem:[#allocation37_spill] sm:$0xff] %v8252_v21  ;;  %10030 = vst [vmem:[#allocation38_spill] sm:$0xff] %v8254_v60 }
 0x3f8   :  { %3735 = vbcast.lane.b32.xlu0 %v3733_v29, 256  ;;  %3728 = vbcast.lane.b32.xlu1 %v3726_v20, 256  ;;  %v3642_v29 = vrot.slane %v2840_v48, %v7954_v57  ;;  %v8274_v20 = vpop.f32.mrf.mxu1 }
 0x3fa   :  { %v8260_v17 = vpop.permute.xlu0 %3224  ;;  %v8262_v41 = vpop.permute.xlu1 %3231 }
 0x3fb   :  { %10032 = vst [vmem:[#allocation40_spill] sm:$0xff] %v8260_v17  ;;  %10033 = vst [vmem:[#allocation41_spill] sm:$0xff] %v8262_v41  ;;  %v3677_v17 = vrot.slane %v2840_v48, %v7969_v53 }
 0x3fc   :  { %3637 = vbcast.lane.b32.xlu0 %v3635_v19, 256  ;;  %3742 = vbcast.lane.b32.xlu1 %v3740_v49, 256  ;;  %v3656_v19 = vrot.slane %v2840_v48, %v7960_v55  ;;  %v8282_v49 = vpop.f32.mrf.mxu1 }
 0x3fe   :  { %v8268_v2 = vpop.permute.xlu0 %3238  ;;  %v8270_v31 = vpop.permute.xlu1 %3364 }
 0x3ff   :  { %10034 = vst [vmem:[#allocation42_spill] sm:$0xff] %v8268_v2  ;;  %10035 = vst [vmem:[#allocation43_spill] sm:$0xff] %v8270_v31  ;;  %v3684_v2 = vrot.slane %v2840_v48, %v7974_v37 }
 0x400   :  { %3651 = vbcast.lane.b32.xlu0 %v3649_v28, 256  ;;  %3644 = vbcast.lane.b32.xlu1 %v3642_v29, 256  ;;  %v3670_v28 = vrot.slane %v2840_v48, %v7963_v18  ;;  %v8290_v29 = vpop.f32.mrf.mxu1  ;;  %v10046_v48 = vrot.slane %v7971_v39, %v7960_v55 }
 0x402   :  { %v8276_v21 = vpop.permute.xlu0 %3357  ;;  %v8278_v60 = vpop.permute.xlu1 %3378 }
 0x403   :  { %10036 = vst [vmem:[#allocation44_spill] sm:$0xff] %v8276_v21  ;;  %10037 = vst [vmem:[#allocation45_spill] sm:$0xff] %v8278_v60 }
 0x404   :  { %3665 = vbcast.lane.b32.xlu0 %v3663_v22, 256  ;;  %3658 = vbcast.lane.b32.xlu1 %v3656_v19, 256  ;;  %v8297_v22 = vpop.f32.mrf.mxu1  ;;  %v10042_v19 = vrot.slane %v7971_v39, %v7966_v24 }
 0x406   :  { %v8284_v31 = vpop.permute.xlu0 %3371  ;;  %v8286_v41 = vpop.permute.xlu1 %3392 }
 0x407   :  { %10038 = vst [vmem:[#allocation46_spill] sm:$0xff] %v8284_v31  ;;  %10039 = vst [vmem:[#allocation47_spill] sm:$0xff] %v8286_v41  ;;  %v8306_v13 = vpop.f32.mrf.mxu1 }
 0x408   :  { %3679 = vbcast.lane.b32.xlu0 %v3677_v17, 256  ;;  %3672 = vbcast.lane.b32.xlu1 %v3670_v28, 256  ;;  %v10045_v17 = vrot.slane %v7971_v39, %v7969_v53 }
 0x40a   :  { %v8292_v60 = vpop.permute.xlu0 %3385  ;;  %v8294_v21 = vpop.permute.xlu1 %3406 }
 0x40b   :  { %10040 = vst [vmem:[#allocation48_spill] sm:$0xff] %v8292_v60  ;;  %10041 = vst [vmem:[#allocation49_spill] sm:$0xff] %v8294_v21  ;;  %v10054_v60 = vrot.slane %v7971_v39, %v7974_v37 }
 0x40c   :  { %2937 = vbcast.lane.b32.xlu0 %v10042_v19, 256  ;;  %3686 = vbcast.lane.b32.xlu1 %v3684_v2, 256  ;;  %v8318_v19 = vpop.f32.mrf.mxu1  ;;  %v8323_v2 = vld [vmem:[%s9849_s10 + $0x10] sm:$0xff] }
 0x40d   :  { %10049 = vst [vmem:[#allocation54_spill] sm:$0xff] %v8323_v2 }
 0x40e   :  { %v8302_v41 = vpop.permute.xlu0 %3399  ;;  %v8304_v31 = vpop.permute.xlu1 %3301 }
 0x40f   :  { %10043 = vst [vmem:[#allocation50_spill] sm:$0xff] %v8302_v41  ;;  %10044 = vst [vmem:[#allocation51_spill] sm:$0xff] %v8304_v31 }
 0x410   :  { %2951 = vbcast.lane.b32.xlu0 %v10045_v17, 256  ;;  %2930 = vbcast.lane.b32.xlu1 %v10046_v48, 256  ;;  %v10050_v17 = vrot.slane %v7971_v39, %v7963_v18 }
 0x412   :  { %v8314_v28 = vpop.permute.xlu0 %3308  ;;  %v8316_v21 = vpop.permute.xlu1 %3315 }
 0x413   :  { %10047 = vst [vmem:[#allocation52_spill] sm:$0xff] %v8314_v28  ;;  %10048 = vst [vmem:[#allocation53_spill] sm:$0xff] %v8316_v21  ;;  %v8333_v28 = vpop.f32.mrf.mxu1  ;;  %v10053_v21 = vrot.slane %v7976_v58, %v7954_v57 }
 0x414   :  { %4570 = vperm.xlu0 %6322, %v8323_v2   ;;  %2944 = vbcast.lane.b32.xlu1 %v10050_v17, 256  ;;  %v2851_v17 = vrot.slane %v7976_v58, %v7957_v26  ;;  %v10061_v26 = vrot.slane %v7976_v58, %v7983_v5 }
 0x416   :  { %v8329_v31 = vpop.permute.xlu0 %3322  ;;  %v8331_v48 = vpop.permute.xlu1 %3329 }
 0x417   :  { %10051 = vst [vmem:[#allocation55_spill] sm:$0xff] %v8329_v31  ;;  %10052 = vst [vmem:[#allocation56_spill] sm:$0xff] %v8331_v48  ;;  %v8347_v31 = vpop.f32.mrf.mxu1  ;;  %v10057_v48 = vrot.slane %v7976_v58, %v7960_v55 }
 0x418   :  { %2860 = vbcast.lane.b32.xlu0 %v10053_v21, 256  ;;  %2958 = vbcast.lane.b32.xlu1 %v10054_v60, 256  ;;  %v10060_v60 = vrot.slane %v7976_v58, %v7963_v18 }
 0x419   :  { %v8356_v39 = vpop.f32.mrf.mxu1 }
 0x41a   :  { %v8341_v41 = vpop.permute.xlu0 %3336  ;;  %v8343_v2 = vpop.permute.xlu1 %3343 }
 0x41b   :  { %10055 = vst [vmem:[#allocation57_spill] sm:$0xff] %v8341_v41  ;;  %10056 = vst [vmem:[#allocation58_spill] sm:$0xff] %v8343_v2  ;;  %v8368_v55 = vpop.f32.mrf.mxu1 }
 0x41c   :  { %2874 = vbcast.lane.b32.xlu0 %v10057_v48, 256  ;;  %2853 = vbcast.lane.b32.xlu1 %v2851_v17, 256  ;;  %v10064_v48 = vrot.slane %v7976_v58, %v7974_v37  ;;  %v10065_v17 = vrot.slane %v7976_v58, %v7966_v24  ;;  %v10069_v37 = vrot.slane %v7976_v58, %v7969_v53 }
 0x41d   :  { %v8380_v5 = vpop.f32.mrf.mxu1 }
 0x41e   :  { %v8352_v57 = vpop.permute.xlu0 %3350  ;;  %v8354_v21 = vpop.permute.xlu1 %3476 }
 0x41f   :  { %10058 = vst [vmem:[#allocation59_spill] sm:$0xff] %v8352_v57  ;;  %10059 = vst [vmem:[#allocation60_spill] sm:$0xff] %v8354_v21 }
 0x420   :  { %2888 = vbcast.lane.b32.xlu0 %v10060_v60, 256  ;;  %2867 = vbcast.lane.b32.xlu1 %v10061_v26, 256  ;;  %v8385_v26 = vld [vmem:[%s9849_s10] sm:$0xff] }
 0x421   :  { %10068 = vst [vmem:[#allocation65_spill] sm:$0xff] %v8385_v26 }
 0x422   :  { %v8364_v41 = vpop.permute.xlu0 %3469  ;;  %v8366_v2 = vpop.permute.xlu1 %3490 }
 0x423   :  { %10062 = vst [vmem:[#allocation61_spill] sm:$0xff] %v8364_v41  ;;  %10063 = vst [vmem:[#allocation62_spill] sm:$0xff] %v8366_v2 }
 0x424   :  { %2902 = vbcast.lane.b32.xlu0 %v10064_v48, 256  ;;  %2881 = vbcast.lane.b32.xlu1 %v10065_v17, 256  ;;  %v4799_v17 = vpop.f32.mrf.mxu1 }
 0x426   :  { %v8376_v18 = vpop.permute.xlu0 %3483  ;;  %v8378_v60 = vpop.permute.xlu1 %3504 }
 0x427   :  { %10066 = vst [vmem:[#allocation63_spill] sm:$0xff] %v8376_v18  ;;  %10067 = vst [vmem:[#allocation64_spill] sm:$0xff] %v8378_v60  ;;  %v8398_v60 = vld [vmem:[%s9849_s10 + $0x8] sm:$0xff] }
 0x428   :  { %4562 = vperm.xlu0 %6322, %v8385_v26   ;;  %2895 = vbcast.lane.b32.xlu1 %v10069_v37, 256  ;;  %10072 = vst [vmem:[#allocation68_spill] sm:$0xff] %v8398_v60  ;;  %v4801_v26 = vpop.f32.mrf.mxu1 }
 0x42a   :  { %v8391_v48 = vpop.permute.xlu0 %3497  ;;  %v8393_v24 = vpop.permute.xlu1 %3518 }
 0x42b   :  { %10070 = vst [vmem:[#allocation66_spill] sm:$0xff] %v8391_v48  ;;  %10071 = vst [vmem:[#allocation67_spill] sm:$0xff] %v8393_v24  ;;  %v4805_v58 = vpop.f32.mrf.mxu1 }
 0x42c   :  { %4566 = vperm.xlu1 %6323, %v8398_v60  }
 0x42d   :  { %v4807_v48 = vpop.f32.mrf.mxu1 }
 0x42e   :  { %v8401_v57 = vpop.permute.xlu0 %3511  ;;  %v8403_v41 = vpop.permute.xlu1 %3413 }
 0x42f   :  { %10073 = vst [vmem:[#allocation69_spill] sm:$0xff] %v8401_v57  ;;  %10074 = vst [vmem:[#allocation70_spill] sm:$0xff] %v8403_v41  ;;  %v4811_v60 = vpop.f32.mrf.mxu1 }
 0x431   :  { %v4813_v41 = vpop.f32.mrf.mxu1 }
 0x432   :  { %v8405_v18 = vpop.permute.xlu0 %3420  ;;  %v8407_v53 = vpop.permute.xlu1 %3427 }
 0x433   :  { %10075 = vst [vmem:[#allocation71_spill] sm:$0xff] %v8405_v18  ;;  %10076 = vst [vmem:[#allocation72_spill] sm:$0xff] %v8407_v53  ;;  %v4817_v53 = vpop.f32.mrf.mxu1 }
 0x436   :  { %v8409_v37 = vpop.permute.xlu0 %3434  ;;  %v8411_v24 = vpop.permute.xlu1 %3441 }
 0x437   :  { %10077 = vst [vmem:[#allocation73_spill] sm:$0xff] %v8409_v37  ;;  %10078 = vst [vmem:[#allocation74_spill] sm:$0xff] %v8411_v24  ;;  %v4819_v24 = vpop.f32.mrf.mxu1 }
 0x43a   :  { %v8413_v21 = vpop.permute.xlu0 %3448  ;;  %v8415_v2 = vpop.permute.xlu1 %3455 }
 0x43b   :  { %10079 = vst [vmem:[#allocation75_spill] sm:$0xff] %v8413_v21  ;;  %10080 = vst [vmem:[#allocation76_spill] sm:$0xff] %v8415_v2  ;;  %v4823_v2 = vpop.f32.mrf.mxu1 }
 0x43e   :  { %v8417_v11 = vpop.permute.xlu0 %3462  ;;  %v8419_v57 = vpop.permute.xlu1 %3581 }
 0x43f   :  { %10081 = vst [vmem:[#allocation77_spill] sm:$0xff] %v8417_v11  ;;  %10082 = vst [vmem:[#allocation78_spill] sm:$0xff] %v8419_v57  ;;  %v4825_v57 = vpop.f32.mrf.mxu1 }
 0x442   :  { %v8421_v52 = vpop.permute.xlu0 %3595  ;;  %v8423_v18 = vpop.permute.xlu1 %3588 }
 0x443   :  { %10083 = vst [vmem:[#allocation79_spill] sm:$0xff] %v8421_v52  ;;  %10084 = vst [vmem:[#allocation80_spill] sm:$0xff] %v8423_v18  ;;  %v3910_v52 = vcombine.low %v8123_v23, %v8129_v38  ;;  %v8456_v23 = vld [vmem:[%s9849_s10 + $0x70] sm:$0xff] }
 0x444   :  { %10094 = vst [vmem:[#allocation90_spill] sm:$0xff] %v8456_v23 }
 0x446   :  { %v8425_v0 = vpop.permute.xlu0 %3609  ;;  %v8427_v37 = vpop.permute.xlu1 %3602 }
 0x447   :  { %10085 = vst [vmem:[#allocation81_spill] sm:$0xff] %v8425_v0  ;;  %10086 = vst [vmem:[#allocation82_spill] sm:$0xff] %v8427_v37  ;;  %v4829_v0 = vpop.f32.mrf.mxu1  ;;  %v3894_v37 = vcombine.low %v8110_v27, %v8117_v51  ;;  %v3902_v27 = vcombine.low %v8106_v44, %v8112_v32  ;;  %v10095_v51 = vld [vmem:[#allocation4_spill] sm:$0xff]  ;;  %v8481_v44 = vadd.f32 %v4807_v48, %v8070_v6 }
 0x448   :  { %v8486_v32 = vld [vmem:[%s9849_s10 + $0x68] sm:$0xff] }
 0x449   :  { %10097 = vst [vmem:[#allocation91_spill] sm:$0xff] %v8486_v32 }
 0x44a   :  { %v8429_v4 = vpop.permute.xlu0 %3623  ;;  %v8431_v21 = vpop.permute.xlu1 %3616 }
 0x44b   :  { %10087 = vst [vmem:[#allocation83_spill] sm:$0xff] %v8429_v4  ;;  %10088 = vst [vmem:[#allocation84_spill] sm:$0xff] %v8431_v21  ;;  %v3918_v4 = vcombine.low %v8119_v1, %v8125_v16  ;;  %v6398_v21 = vmov 3   ;;  %v3917_v1 = vrot.slane %v3910_v52, %v10095_v51  ;;  %v8478_v52 = vadd.f32 %v4805_v58, %v8070_v6 }
 0x44c   :  { %6324 = vset.pattern.permute.xlu1 %v6398_v21  ;;  %6325 = vset.pattern.permute.xlu0 %v6398_v21  ;;  %v4831_v21 = vpop.f32.mrf.mxu1  ;;  %v8499_v6 = vadd.f32 %v4801_v26, %v8072_v14  ;;  %v8507_v58 = vadd.f32 %v4819_v24, %v8062_v3 }
 0x44d   :  { %4993 = vperm.xlu0 %6325, %v8456_v23   ;;  %v3925_v23 = vrot.slane %v3918_v4, %v10095_v51  ;;  %10096 = vst [vmem:[#allocation4_spill] sm:$0xff] %v8478_v52  ;;  %v8496_v4 = vadd.f32 %v4799_v17, %v8072_v14  ;;  %v8514_v17 = vadd.f32 %v8368_v55, %v8077_v10 }
 0x44e   :  { %v8433_v56 = vpop.permute.xlu0 %3532  ;;  %v8435_v11 = vpop.permute.xlu1 %3630  ;;  %10100 = vst [vmem:[#allocation94_spill] sm:$0xff] %v8499_v6  ;;  %v8518_v14 = vadd.f32 %v8380_v5, %v8077_v10  ;;  %v8532_v55 = vadd.f32 %v4829_v0, %v8056_v54  ;;  %v8536_v10 = vadd.f32 %v8318_v19, %v8085_v45  ;;  %v4010_v5 = vcombine.low %v8173_v15, %v8179_v35  ;;  %v10111_v0 = vld [vmem:[#allocation5_spill] sm:$0xff]  ;;  %v10196_v6 = vld [vmem:[#allocation78_spill] sm:$0xff] }
 0x44f   :  { %10089 = vst [vmem:[#allocation85_spill] sm:$0xff] %v8433_v56  ;;  %10090 = vst [vmem:[#allocation86_spill] sm:$0xff] %v8435_v11  ;;  %v8450_v56 = vld [vmem:[%s9849_s10 + $0x78] sm:$0xff]  ;;  %v8475_v11 = vadd.f32 %v4817_v53, %v8062_v3  ;;  %v4835_v26 = vpop.f32.mrf.mxu1  ;;  %v8526_v3 = vadd.f32 %v8356_v39, %v8079_v7  ;;  %v8558_v15 = vadd.f32 %v8297_v22, %v8087_v33 }
 0x450   :  { %10093 = vst [vmem:[#allocation89_spill] sm:$0xff] %v8450_v56  ;;  %4997 = vperm.xlu1 %6324, %v8450_v56   ;;  %v8470_v56 = vadd.f32 %v4813_v41, %v8064_v30  ;;  %10099 = vst [vmem:[#allocation93_spill] sm:$0xff] %v8496_v4  ;;  %v3909_v41 = vrot.slane %v3902_v27, %v10095_v51  ;;  %v8570_v39 = vadd.f32 %v4831_v21, %v8056_v54 }
 0x451   :  { %10101 = vst [vmem:[#allocation95_spill] sm:$0xff] %v8514_v17  ;;  %10102 = vst [vmem:[#allocation96_spill] sm:$0xff] %v8518_v14  ;;  %v8577_v22 = vadd.f32 %v8282_v49, %v8092_v59  ;;  %v4764_v27 = vadd.f32 %v8266_v46, %v8094_v50  ;;  %v3852_v49 = vcombine.low %v8135_v34, %v8142_v43  ;;  %v10184_v17 = vld [vmem:[#allocation58_spill] sm:$0xff]  ;;  %v10187_v14 = vld [vmem:[#allocation57_spill] sm:$0xff] }
 0x452   :  { %v8439_v18 = vpop.permute.xlu0 %3546  ;;  %v8441_v62 = vpop.permute.xlu1 %3525  ;;  %10104 = vst [vmem:[#allocation98_spill] sm:$0xff] %v8526_v3  ;;  %10105 = vst [vmem:[#allocation99_spill] sm:$0xff] %v8536_v10  ;;  %v3994_v21 = vcombine.low %v8160_v40, %v8167_v42  ;;  %v3968_v34 = vcombine.low %v8198_v61, %v8204_v9  ;;  %v10123_v61 = vld [vmem:[#allocation12_spill] sm:$0xff]  ;;  %v10124_v9 = vld [vmem:[#allocation14_spill] sm:$0xff] }
 0x453   :  { %10091 = vst [vmem:[#allocation87_spill] sm:$0xff] %v8439_v18  ;;  %10092 = vst [vmem:[#allocation88_spill] sm:$0xff] %v8441_v62  ;;  %v8467_v18 = vadd.f32 %v4811_v60, %v8064_v30  ;;  %v3901_v62 = vrot.slane %v3894_v37, %v10095_v51  ;;  %v8492_v30 = vld [vmem:[%s9849_s10 + $0x58] sm:$0xff]  ;;  %v3934_v60 = vcombine.low %v3917_v1, %v3925_v23  ;;  %v10183_v3 = vld [vmem:[#allocation84_spill] sm:$0xff] }
 0x454   :  { %4989 = vperm.xlu1 %6324, %v8486_v32   ;;  %10098 = vst [vmem:[#allocation92_spill] sm:$0xff] %v8492_v30  ;;  %4981 = vperm.xlu0 %6325, %v8492_v30   ;;  %v8510_v37 = vadd.f32 %v4823_v2, %v8058_v8  ;;  %v8522_v23 = vadd.f32 %v8347_v31, %v8079_v7  ;;  %v8543_v31 = vld [vmem:[%s9849_s10 + $0x60] sm:$0xff]  ;;  %10109 = vst [vmem:[#allocation103_spill] sm:$0xff] %v8558_v15  ;;  %v10125_v30 = vld [vmem:[#allocation20_spill] sm:$0xff] }
 0x455   :  { %v8529_v2 = vadd.f32 %v4825_v57, %v8058_v8  ;;  %v3926_v24 = vcombine.low %v3901_v62, %v3909_v41  ;;  %10106 = vst [vmem:[#allocation100_spill] sm:$0xff] %v8543_v31  ;;  %v8549_v62 = vld [vmem:[%s9849_s10 + $0x48] sm:$0xff]  ;;  %v8554_v8 = vadd.f32 %v8333_v28, %v8085_v45  ;;  %v8562_v7 = vadd.f32 %v8306_v13, %v8087_v33  ;;  %v4837_v28 = vpop.f32.mrf.mxu1  ;;  %v10140_v32 = vld [vmem:[#allocation21_spill] sm:$0xff] }
 0x456   :  { %v8462_v16 = vpop.permute.xlu0 %3560  ;;  %v8464_v38 = vpop.permute.xlu1 %3539  ;;  %10103 = vst [vmem:[#allocation97_spill] sm:$0xff] %v8522_v23  ;;  %10107 = vst [vmem:[#allocation101_spill] sm:$0xff] %v8549_v62  ;;  %v3941_v35 = vrot.slane %v3934_v60, %v10111_v0  ;;  %v8573_v45 = vadd.f32 %v4835_v26, %v8049_v36  ;;  %v4018_v33 = vcombine.low %v8169_v25, %v8175_v47  ;;  %v8598_v25 = vld [vmem:[%s9849_s10 + $0x50] sm:$0xff]  ;;  %v10117_v41 = vld [vmem:[#allocation15_spill] sm:$0xff] }
 0x457   :  { %10108 = vst [vmem:[#allocation102_spill] sm:$0xff] %v8554_v8  ;;  %10110 = vst [vmem:[#allocation104_spill] sm:$0xff] %v8562_v7  ;;  %v8583_v13 = vadd.f32 %v8290_v29, %v8092_v59  ;;  %v3933_v54 = vrot.slane %v3926_v24, %v10111_v0  ;;  %v3844_v1 = vcombine.low %v8131_v63, %v8137_v12  ;;  %v8604_v59 = vld [vmem:[%s9849_s10 + $0x38] sm:$0xff] }
 0x458   :  { %4985 = vperm.xlu1 %6324, %v8543_v31   ;;  %4973 = vperm.xlu0 %6325, %v8549_v62   ;;  %10112 = vst [vmem:[#allocation5_spill] sm:$0xff] %v8577_v22  ;;  %v4017_v47 = vrot.slane %v4010_v5, %v10095_v51  ;;  %10114 = vst [vmem:[#allocation106_spill] sm:$0xff] %v8598_v25  ;;  %v4766_v63 = vadd.f32 %v8274_v20, %v8094_v50  ;;  %v10116_v29 = vld [vmem:[#allocation13_spill] sm:$0xff]  ;;  %v10118_v26 = vld [vmem:[#allocation6_spill] sm:$0xff] }
 0x459   :  { %10113 = vst [vmem:[#allocation105_spill] sm:$0xff] %v8583_v13  ;;  %10115 = vst [vmem:[#allocation107_spill] sm:$0xff] %v8604_v59  ;;  %v8610_v42 = vadd.f32 %v4837_v28, %v8049_v36  ;;  %v3943_v40 = vcombine.high %v3933_v54, %v3941_v35  ;;  %v3942_v46 = vcombine.low %v3933_v54, %v3941_v35  ;;  %v10119_v24 = vld [vmem:[#allocation10_spill] sm:$0xff]  ;;  %v10162_v13 = vld [vmem:[#allocation48_spill] sm:$0xff] }
 0x45a   :  { %v8502_v48 = vpop.permute.xlu0 %3574  ;;  %v8504_v53 = vpop.permute.xlu1 %3553  ;;  %v3860_v60 = vcombine.low %v10117_v41, %v10116_v29  ;;  %v4002_v5 = vcombine.low %v10119_v24, %v10118_v26  ;;  %v8624_v28 = vrot.slane %v3844_v1, %v10095_v51  ;;  %v3868_v62 = vcombine.low %v10124_v9, %v10123_v61  ;;  %v8645_v1 = vld [vmem:[%s9849_s10 + $0x28] sm:$0xff]  ;;  %v10134_v26 = vld [vmem:[#allocation9_spill] sm:$0xff] }
 0x45b   :  { %v8631_v54 = vrot.slane %v3852_v49, %v10095_v51  ;;  %v8634_v29 = vrot.slane %v3994_v21, %v10095_v51  ;;  %10130 = vst [vmem:[#allocation12_spill] sm:$0xff] %v8645_v1  ;;  %v10132_v49 = vld [vmem:[#allocation8_spill] sm:$0xff]  ;;  %v10133_v21 = vld [vmem:[#allocation3_spill] sm:$0xff]  ;;  %v8655_v9 = vadd.f32 %v4766_v63, %v3943_v40  ;;  %v10145_v63 = vld [vmem:[#allocation22_spill] sm:$0xff] }
 0x45c   :  { %4977 = vperm.xlu1 %6324, %v8598_v25   ;;  %4965 = vperm.xlu0 %6325, %v8604_v59   ;;  %v4025_v59 = vrot.slane %v4018_v33, %v10095_v51  ;;  %10122 = vst [vmem:[#allocation13_spill] sm:$0xff] %v8624_v28  ;;  %v10126_v25 = vld [vmem:[#allocation19_spill] sm:$0xff]  ;;  %v8658_v36 = vrot.slane %v3860_v60, %v10095_v51  ;;  %v10147_v60 = vld [vmem:[#allocation28_spill] sm:$0xff]  ;;  %v10163_v7 = vld [vmem:[#allocation45_spill] sm:$0xff] }
 0x45d   :  { %v3960_v35 = vcombine.low %v10126_v25, %v10125_v30  ;;  %10127 = vst [vmem:[#allocation15_spill] sm:$0xff] %v8631_v54  ;;  %10128 = vst [vmem:[#allocation6_spill] sm:$0xff] %v8634_v29  ;;  %v8639_v33 = vld [vmem:[%s9849_s10 + $0x40] sm:$0xff]  ;;  %v10177_v23 = vld [vmem:[#allocation61_spill] sm:$0xff] }
 0x45e   :  { %v8565_v19 = vpop.permute.xlu0 %3693  ;;  %v8567_v57 = vpop.permute.xlu1 %3567  ;;  %v4034_v41 = vcombine.low %v4017_v47, %v4025_v59  ;;  %10129 = vst [vmem:[#allocation10_spill] sm:$0xff] %v8639_v33  ;;  %v10131_v30 = vld [vmem:[#allocation7_spill] sm:$0xff]  ;;  %v3952_v47 = vcombine.low %v10134_v26, %v10133_v21  ;;  %v8653_v59 = vrot.slane %v3968_v34, %v10095_v51  ;;  %10136 = vst [vmem:[#allocation20_spill] sm:$0xff] %v8655_v9  ;;  %v10144_v21 = vld [vmem:[#allocation25_spill] sm:$0xff] }
 0x45f   :  { %v3944_v25 = vcombine.low %v10132_v49, %v10131_v30  ;;  %10137 = vst [vmem:[#allocation19_spill] sm:$0xff] %v8658_v36  ;;  %v8665_v30 = vadd.f32 %v4764_v27, %v3942_v46  ;;  %v8668_v49 = vrot.slane %v3868_v62, %v10095_v51  ;;  %v8671_v34 = vrot.slane %v3960_v35, %v10095_v51  ;;  %v10146_v26 = vld [vmem:[#allocation31_spill] sm:$0xff]  ;;  %v8685_v62 = vld [vmem:[%s9849_s10 + $0x30] sm:$0xff]  ;;  %v8691_v27 = vld [vmem:[%s9849_s10 + $0x18] sm:$0xff] }
 0x460   :  { %4969 = vperm.xlu1 %6324, %v8639_v33   ;;  %4957 = vperm.xlu0 %6325, %v8645_v1   ;;  %10135 = vst [vmem:[#allocation14_spill] sm:$0xff] %v8653_v59  ;;  %v8661_v33 = vrot.slane %v4002_v5, %v10095_v51  ;;  %v10139_v1 = vld [vmem:[#allocation23_spill] sm:$0xff]  ;;  %v4094_v40 = vcombine.low %v10145_v63, %v10144_v21  ;;  %10149 = vst [vmem:[#allocation21_spill] sm:$0xff] %v8685_v62  ;;  %v10156_v5 = vld [vmem:[#allocation40_spill] sm:$0xff] }
 0x461   :  { %v4102_v31 = vcombine.low %v10140_v32, %v10139_v1  ;;  %10141 = vst [vmem:[#allocation8_spill] sm:$0xff] %v8665_v30  ;;  %10142 = vst [vmem:[#allocation3_spill] sm:$0xff] %v8668_v49  ;;  %v4110_v9 = vcombine.low %v10147_v60, %v10146_v26  ;;  %v8680_v50 = vrot.slane %v4034_v41, %v10111_v0  ;;  %v10153_v41 = vld [vmem:[#allocation29_spill] sm:$0xff]  ;;  %v10154_v1 = vld [vmem:[#allocation26_spill] sm:$0xff] }
 0x462   :  { %v8614_v12 = vpop.permute.xlu0 %3707  ;;  %v3701_v43 = vpop.permute.xlu1 %3700  ;;  %10138 = vst [vmem:[#allocation7_spill] sm:$0xff] %v8661_v33  ;;  %10143 = vst [vmem:[#allocation9_spill] sm:$0xff] %v8671_v34  ;;  %v8695_v46 = vrot.slane %v3944_v25, %v10095_v51  ;;  %v8698_v35 = vrot.slane %v3952_v47, %v10095_v51  ;;  %v10155_v60 = vld [vmem:[#allocation42_spill] sm:$0xff]  ;;  %v10158_v25 = vld [vmem:[#allocation44_spill] sm:$0xff]  ;;  %v8714_v20 = vrot.slane %v4094_v40, %v10095_v51 }
 0x463   :  { %10148 = vst [vmem:[#allocation23_spill] sm:$0xff] %v8680_v50  ;;  %10150 = vst [vmem:[#allocation25_spill] sm:$0xff] %v8691_v27  ;;  %v8705_v26 = vrot.slane %v4102_v31, %v10095_v51  ;;  %v4494_v47 = vcombine.low %v8565_v19, %v8614_v12  ;;  %v10161_v31 = vld [vmem:[#allocation50_spill] sm:$0xff]  ;;  %v10166_v12 = vld [vmem:[#allocation68_spill] sm:$0xff] }
 0x464   :  { %4961 = vperm.xlu1 %6324, %v8685_v62   ;;  %4949 = vperm.xlu0 %6325, %v8691_v27   ;;  %10151 = vst [vmem:[#allocation22_spill] sm:$0xff] %v8695_v46  ;;  %10152 = vst [vmem:[#allocation31_spill] sm:$0xff] %v8698_v35  ;;  %v4068_v27 = vcombine.low %v10156_v5, %v10155_v60  ;;  %v10157_v62 = vld [vmem:[#allocation46_spill] sm:$0xff]  ;;  %v4210_v15 = vcombine.low %v10162_v13, %v10161_v31  ;;  %v10164_v5 = vld [vmem:[#allocation43_spill] sm:$0xff] }
 0x465   :  { %v4194_v30 = vcombine.low %v10158_v25, %v10157_v62  ;;  %v4202_v60 = vcombine.low %v10164_v5, %v10163_v7  ;;  %v8729_v19 = vld [vmem:[%s9849_s10 + $0x20] sm:$0xff]  ;;  %v10168_v13 = vld [vmem:[#allocation32_spill] sm:$0xff]  ;;  %v10180_v54 = vld [vmem:[#allocation69_spill] sm:$0xff] }
 0x466   :  { %v3722_v24 = vpop.permute.xlu0 %3721  ;;  %v3715_v61 = vpop.permute.xlu1 %3714  ;;  %10165 = vst [vmem:[#allocation28_spill] sm:$0xff] %v8729_v19  ;;  %v10167_v40 = vld [vmem:[#allocation35_spill] sm:$0xff]  ;;  %v10170_v7 = vld [vmem:[#allocation34_spill] sm:$0xff]  ;;  %v8745_v8 = vrot.slane %v4068_v27, %v10095_v51  ;;  %v10185_v36 = vld [vmem:[#allocation56_spill] sm:$0xff] }
 0x467   :  { %v4502_v32 = vcombine.low %v3701_v43, %v3715_v61  ;;  %v4118_v61 = vcombine.low %v10154_v1, %v10153_v41  ;;  %v8717_v43 = vrot.slane %v4110_v9, %v10095_v51  ;;  %v10159_v41 = vld [vmem:[#allocation41_spill] sm:$0xff]  ;;  %v10160_v1 = vld [vmem:[#allocation38_spill] sm:$0xff]  ;;  %v8762_v27 = vrot.slane %v4202_v60, %v10095_v51 }
 0x468   :  { %v4060_v22 = vcombine.low %v10160_v1, %v10159_v41  ;;  %4953 = vperm.xlu1 %6324, %v8729_v19   ;;  %4941 = vperm.xlu0 %6325, %v10166_v12   ;;  %v4044_v41 = vcombine.low %v10168_v13, %v10167_v40  ;;  %v10169_v1 = vld [vmem:[#allocation37_spill] sm:$0xff]  ;;  %v8748_v12 = vrot.slane %v4194_v30, %v10095_v51  ;;  %v10175_v40 = vld [vmem:[#allocation60_spill] sm:$0xff]  ;;  %v10176_v13 = vld [vmem:[#allocation63_spill] sm:$0xff] }
 0x469   :  { %v4509_v62 = vrot.slane %v4502_v32, %v10095_v51  ;;  %v8734_v9 = vrot.slane %v4118_v61, %v10095_v51  ;;  %v4052_v31 = vcombine.low %v10170_v7, %v10169_v1  ;;  %v10171_v32 = vld [vmem:[#allocation49_spill] sm:$0xff]  ;;  %v4501_v61 = vrot.slane %v4494_v47, %v10095_v51  ;;  %v10182_v50 = vld [vmem:[#allocation86_spill] sm:$0xff] }
 0x46a   :  { %v3736_v21 = vpop.permute.xlu0 %3735  ;;  %v3729_v63 = vpop.permute.xlu1 %3728  ;;  %v8756_v1 = vrot.slane %v4060_v22, %v10095_v51  ;;  %v8759_v7 = vrot.slane %v4210_v15, %v10095_v51  ;;  %v8768_v47 = vrot.slane %v4044_v41, %v10095_v51  ;;  %v10174_v22 = vld [vmem:[#allocation62_spill] sm:$0xff]  ;;  %v4294_v60 = vcombine.low %v10177_v23, %v10176_v13  ;;  %v10188_v41 = vld [vmem:[#allocation65_spill] sm:$0xff] }
 0x46b   :  { %v4510_v25 = vcombine.low %v3722_v24, %v3736_v21  ;;  %v10172_v24 = vld [vmem:[#allocation47_spill] sm:$0xff]  ;;  %v4526_v30 = vcombine.low %v4501_v61, %v4509_v62  ;;  %v4302_v15 = vcombine.low %v10175_v40, %v10174_v22  ;;  %v10179_v40 = vld [vmem:[#allocation52_spill] sm:$0xff]  ;;  %v10181_v23 = vld [vmem:[#allocation66_spill] sm:$0xff] }
 0x46c   :  { %v4218_v21 = vcombine.low %v10172_v24, %v10171_v32  ;;  %v4310_v13 = vcombine.low %v10181_v23, %v10180_v54  ;;  %v8803_v54 = vrot.slane %v4294_v60, %v10095_v51  ;;  %v10189_v23 = vld [vmem:[#allocation82_spill] sm:$0xff]  ;;  %v10191_v22 = vld [vmem:[#allocation83_spill] sm:$0xff]  ;;  %v10192_v49 = vld [vmem:[#allocation81_spill] sm:$0xff] }
 0x46d   :  { %v4517_v32 = vrot.slane %v4510_v25, %v10095_v51  ;;  %v8778_v25 = vrot.slane %v4052_v31, %v10095_v51  ;;  %v4418_v31 = vcombine.low %v10183_v3, %v10182_v50  ;;  %v10190_v3 = vld [vmem:[#allocation80_spill] sm:$0xff]  ;;  %v4410_v34 = vcombine.low %v10192_v49, %v10191_v22  ;;  %v10195_v60 = vld [vmem:[#allocation79_spill] sm:$0xff] }
 0x46e   :  { %v8742_v5 = vpop.permute.xlu0 %3637  ;;  %v3743_v10 = vpop.permute.xlu1 %3742  ;;  %v8771_v24 = vrot.slane %v4218_v21, %v10095_v51  ;;  %v8800_v21 = vrot.slane %v4302_v15, %v10095_v51  ;;  %v4402_v50 = vcombine.low %v10190_v3, %v10189_v23  ;;  %v4317_v29 = vrot.slane %v4310_v13, %v10095_v51  ;;  %v10197_v3 = vld [vmem:[#allocation88_spill] sm:$0xff]  ;;  %v10201_v13 = vld [vmem:[#allocation75_spill] sm:$0xff] }
 0x46f   :  { %v4518_v19 = vcombine.low %v3729_v63, %v3743_v10  ;;  %v10173_v63 = vld [vmem:[#allocation54_spill] sm:$0xff]  ;;  %v4394_v52 = vcombine.low %v10196_v6, %v10195_v60  ;;  %v4425_v23 = vrot.slane %v4418_v31, %v10095_v51  ;;  %v4344_v49 = vcombine.low %v10197_v3, %v8464_v38 }
 0x470   :  { %4945 = vperm.xlu1 %6324, %v10173_v63   ;;  %v10178_v63 = vld [vmem:[#allocation55_spill] sm:$0xff]  ;;  %v4368_v22 = vcombine.low %v8462_v16, %v8502_v48  ;;  %v4409_v6 = vrot.slane %v4402_v50, %v10095_v51  ;;  %v4417_v31 = vrot.slane %v4410_v34, %v10095_v51  ;;  %v10207_v50 = vld [vmem:[#allocation74_spill] sm:$0xff] }
 0x471   :  { %v4525_v10 = vrot.slane %v4518_v19, %v10095_v51  ;;  %v10186_v19 = vld [vmem:[#allocation59_spill] sm:$0xff]  ;;  %v4401_v34 = vrot.slane %v4394_v52, %v10095_v51 }
 0x472   :  { %v3652_v28 = vpop.permute.xlu0 %3651  ;;  %v3645_v62 = vpop.permute.xlu1 %3644  ;;  %v4168_v59 = vcombine.low %v10187_v14, %v10186_v19  ;;  %v10193_v19 = vld [vmem:[#allocation67_spill] sm:$0xff] }
 0x473   :  { %v4534_v61 = vcombine.low %v4517_v32, %v4525_v10  ;;  %v4533_v32 = vrot.slane %v4526_v30, %v10111_v0  ;;  %v10194_v30 = vld [vmem:[#allocation64_spill] sm:$0xff]  ;;  %v4444_v48 = vcombine.low %v8742_v5, %v3652_v28 }
 0x474   :  { %4937 = vperm.xlu1 %6324, %v10188_v41   ;;  %v4318_v33 = vcombine.low %v10194_v30, %v10193_v19  ;;  %v4360_v41 = vcombine.low %v8504_v53, %v8567_v57  ;;  %v10200_v57 = vld [vmem:[#allocation77_spill] sm:$0xff] }
 0x475   :  { %v4541_v10 = vrot.slane %v4534_v61, %v10111_v0  ;;  %v10203_v30 = vld [vmem:[#allocation85_spill] sm:$0xff] }
 0x476   :  { %v3666_v4 = vpop.permute.xlu0 %3665  ;;  %v3659_v14 = vpop.permute.xlu1 %3658  ;;  %v4367_v16 = vrot.slane %v4360_v41, %v10095_v51  ;;  %v4325_v5 = vrot.slane %v4318_v33, %v10095_v51 }
 0x477   :  { %v4542_v61 = vcombine.low %v4533_v32, %v4541_v10  ;;  %v4543_v15 = vcombine.high %v4533_v32, %v4541_v10  ;;  %v4452_v46 = vcombine.low %v3645_v62, %v3659_v14  ;;  %v4268_v32 = vcombine.low %v10201_v13, %v10200_v57  ;;  %v10202_v10 = vld [vmem:[#allocation87_spill] sm:$0xff]  ;;  %v10204_v62 = vld [vmem:[#allocation73_spill] sm:$0xff] }
 0x478   :  { %v4352_v38 = vcombine.low %v10203_v30, %v10202_v10  ;;  %v10205_v14 = vld [vmem:[#allocation71_spill] sm:$0xff]  ;;  %v4434_v13 = vcombine.low %v4417_v31, %v4425_v23  ;;  %v4351_v10 = vrot.slane %v4344_v49, %v10095_v51  ;;  %v4375_v30 = vrot.slane %v4368_v22, %v10095_v51 }
 0x479   :  { %v8822_v19 = vadd.f32 %v8610_v42, %v4543_v15  ;;  %v8825_v53 = vadd.f32 %v8573_v45, %v4542_v61  ;;  %v4252_v61 = vcombine.low %v10205_v14, %v10204_v62  ;;  %v10206_v15 = vld [vmem:[#allocation76_spill] sm:$0xff]  ;;  %v4459_v41 = vrot.slane %v4452_v46, %v10095_v51 }
 0x47a   :  { %v3680_v60 = vpop.permute.xlu0 %3679  ;;  %v3673_v3 = vpop.permute.xlu1 %3672  ;;  %v4260_v57 = vcombine.low %v10207_v50, %v10206_v15  ;;  %v4275_v62 = vrot.slane %v4268_v32, %v10095_v51  ;;  %v4426_v14 = vcombine.low %v4401_v34, %v4409_v6  ;;  %v4359_v52 = vrot.slane %v4352_v38, %v10095_v51  ;;  %v10210_v6 = vld [vmem:[#allocation53_spill] sm:$0xff] }
 0x47b   :  { %10198 = vst [vmem:[#allocation29_spill] sm:$0xff] %v8822_v19  ;;  %10199 = vst [vmem:[#allocation26_spill] sm:$0xff] %v8825_v53  ;;  %v4935_v42 = vmax.f32 %v8822_v19, 0.0  ;;  %v4934_v45 = vmax.f32 %v8825_v53, 0.0  ;;  %v4460_v28 = vcombine.low %v3666_v4, %v3680_v60  ;;  %v10208_v19 = vld [vmem:[#allocation72_spill] sm:$0xff]  ;;  %v10209_v53 = vld [vmem:[#allocation70_spill] sm:$0xff]  ;;  %v4384_v23 = vcombine.low %v4367_v16, %v4375_v30 }
 0x47c   :  { %v4244_v35 = vcombine.low %v10209_v53, %v10208_v19  ;;  %v4451_v49 = vrot.slane %v4444_v48, %v10095_v51  ;;  %v4334_v31 = vcombine.low %v4317_v29, %v4325_v5  ;;  %v4259_v4 = vrot.slane %v4252_v61, %v10095_v51 }
 0x47d   :  { %5000 = vmatprep.subr.mxu0 %v4935_v42  ;;  %v4267_v46 = vrot.slane %v4260_v57, %v10095_v51  ;;  %v4441_v33 = vrot.slane %v4434_v13, %v10111_v0  ;;  %v4376_v60 = vcombine.low %v4351_v10, %v4359_v52  ;;  %v4467_v53 = vrot.slane %v4460_v28, %v10095_v51  ;;  %v10211_v42 = vld [vmem:[#allocation51_spill] sm:$0xff] }
 0x47e   :  { %v3687_v15 = vpop.permute.xlu1 %3686  ;;  %5001 = vmatpush1.msra.mxu0 %v4934_v45  ;;  %v4476_v19 = vcombine.low %v4451_v49, %v4459_v41  ;;  %v4144_v38 = vcombine.low %v10211_v42, %v10210_v6  ;;  %v4175_v16 = vrot.slane %v4168_v59, %v10095_v51  ;;  %v4326_v29 = vcombine.low %v8803_v54, %v8800_v21  ;;  %v8877_v41 = vpop.permute.xlu0 %2937 }
 0x47f   :  { %v4468_v22 = vcombine.low %v3673_v3, %v3687_v15  ;;  %v4251_v3 = vrot.slane %v4244_v35, %v10095_v51  ;;  %v4284_v45 = vcombine.low %v4267_v46, %v4275_v62  ;;  %v4433_v61 = vrot.slane %v4426_v14, %v10111_v0 }
 0x480   :  { %v4391_v50 = vrot.slane %v4384_v23, %v10111_v0  ;;  %v10212_v34 = vcombine.low %v10179_v40, %v10178_v63  ;;  %v10213_v59 = vcombine.low %v10185_v36, %v10184_v17  ;;  %v4341_v35 = vrot.slane %v4334_v31, %v10111_v0 }
 0x481   :  { %v4475_v32 = vrot.slane %v4468_v22, %v10095_v51  ;;  %v4276_v54 = vcombine.low %v4251_v3, %v4259_v4  ;;  %v4383_v10 = vrot.slane %v4376_v60, %v10111_v0  ;;  %v4483_v30 = vrot.slane %v4476_v19, %v10111_v0 }
 0x482   :  { %v8862_v48 = vpop.permute.xlu1 %2930  ;;  %v4159_v13 = vrot.slane %v10212_v34, %v10095_v51  ;;  %v4167_v21 = vrot.slane %v10213_v59, %v10095_v51  ;;  %v4443_v5 = vcombine.high %v4433_v61, %v4441_v33  ;;  %v4151_v63 = vrot.slane %v4144_v38, %v10095_v51 }
 0x483   :  { %v4484_v57 = vcombine.low %v4467_v53, %v4475_v32  ;;  %v4333_v62 = vrot.slane %v4326_v29, %v10111_v0  ;;  %v4442_v14 = vcombine.low %v4433_v61, %v4441_v33  ;;  %v4291_v36 = vrot.slane %v4284_v45, %v10111_v0 }
 0x484   :  { %v4184_v40 = vcombine.low %v4167_v21, %v4175_v16  ;;  %v4393_v23 = vcombine.high %v4383_v10, %v4391_v50  ;;  %v10214_v49 = vcombine.low %v8759_v7, %v8771_v24  ;;  %v4176_v31 = vcombine.low %v4151_v63, %v4159_v13  ;;  %v10228_v63 = vld [vmem:[#allocation94_spill] sm:$0xff] }
 0x485   :  { %v4491_v28 = vrot.slane %v4484_v57, %v10111_v0  ;;  %v4392_v4 = vcombine.low %v4383_v10, %v4391_v50  ;;  %v4343_v46 = vcombine.high %v4333_v62, %v4341_v35  ;;  %v4283_v60 = vrot.slane %v4276_v54, %v10111_v0  ;;  %v10225_v54 = vld [vmem:[#allocation22_spill] sm:$0xff] }
 0x486   :  { %v8882_v17 = vpop.permute.xlu1 %2944  ;;  %v4241_v22 = vrot.slane %v10214_v49, %v10111_v0  ;;  %v8897_v53 = vadd.f32 %v8529_v2, %v4443_v5  ;;  %v10215_v32 = vcombine.low %v8748_v12, %v8762_v27  ;;  %v4191_v24 = vrot.slane %v4184_v40, %v10111_v0 }
 0x487   :  { %v4492_v15 = vcombine.low %v4483_v30, %v4491_v28  ;;  %v4493_v52 = vcombine.high %v4483_v30, %v4491_v28  ;;  %v4342_v6 = vcombine.low %v4333_v62, %v4341_v35  ;;  %v8907_v38 = vadd.f32 %v8510_v37, %v4442_v14  ;;  %v10224_v35 = vld [vmem:[#allocation31_spill] sm:$0xff]  ;;  %v10226_v28 = vld [vmem:[#allocation4_spill] sm:$0xff]  ;;  %v10230_v62 = vld [vmem:[#allocation6_spill] sm:$0xff] }
 0x488   :  { %v4233_v7 = vrot.slane %v10215_v32, %v10111_v0  ;;  %v8914_v16 = vadd.f32 %v8507_v58, %v4393_v23  ;;  %v4293_v29 = vcombine.high %v4283_v60, %v4291_v36  ;;  %v10217_v12 = vcombine.low %v8717_v43, %v8734_v9  ;;  %v10231_v14 = vld [vmem:[#allocation7_spill] sm:$0xff] }
 0x489   :  { %v8891_v19 = vadd.f32 %v8570_v39, %v4493_v52  ;;  %v8894_v33 = vadd.f32 %v8532_v55, %v4492_v15  ;;  %v8909_v39 = vpop.permute.xlu0 %2951  ;;  %v4076_v3 = vcombine.low %v8768_v47, %v8778_v25  ;;  %v4292_v37 = vcombine.low %v4283_v60, %v4291_v36 }
 0x48a   :  { %v8904_v42 = vpop.permute.xlu1 %2958  ;;  %10216 = vst [vmem:[#allocation42_spill] sm:$0xff] %v8914_v16  ;;  %v4141_v27 = vrot.slane %v10217_v12, %v10111_v0  ;;  %v8923_v45 = vadd.f32 %v8475_v11, %v4392_v4  ;;  %v4183_v61 = vrot.slane %v4176_v31, %v10111_v0  ;;  %v4931_v50 = vmax.f32 %v8897_v53, 0.0  ;;  %v10235_v4 = vld [vmem:[#allocation9_spill] sm:$0xff]  ;;  %v10241_v12 = vld [vmem:[#allocation19_spill] sm:$0xff] }
 0x48b   :  { %v4933_v55 = vmax.f32 %v8891_v19, 0.0  ;;  %v4932_v2 = vmax.f32 %v8894_v33, 0.0  ;;  %v8928_v58 = vadd.f32 %v8470_v56, %v4343_v46  ;;  %v4243_v57 = vcombine.high %v4233_v7, %v4241_v22  ;;  %v10236_v46 = vld [vmem:[#allocation14_spill] sm:$0xff] }
 0x48c   :  { %10218 = vst [vmem:[#allocation40_spill] sm:$0xff] %v8923_v45  ;;  %v10220_v43 = vcombine.low %v8714_v20, %v8705_v26  ;;  %v4242_v34 = vcombine.low %v4233_v7, %v4241_v22  ;;  %v4930_v11 = vmax.f32 %v8907_v38, 0.0  ;;  %v8938_v25 = vadd.f32 %v8467_v18, %v4342_v6  ;;  %v10233_v22 = vld [vmem:[#allocation93_spill] sm:$0xff]  ;;  %v10238_v6 = vld [vmem:[#allocation96_spill] sm:$0xff] }
 0x48d   :  { %5002 = vmatprep.subr.mxu0 %v4933_v55  ;;  %10219 = vst [vmem:[#allocation46_spill] sm:$0xff] %v8928_v58  ;;  %v10222_v56 = vcombine.low %v8756_v1, %v8745_v8  ;;  %v4929_v20 = vmax.f32 %v8914_v16, 0.0  ;;  %v8948_v26 = vadd.f32 %v8481_v44, %v4293_v29  ;;  %v4193_v21 = vcombine.high %v4183_v61, %v4191_v24  ;;  %v10240_v29 = vld [vmem:[#allocation3_spill] sm:$0xff] }
 0x48e   :  { %v4133_v9 = vrot.slane %v10220_v43, %v10111_v0  ;;  %v8934_v47 = vpop.permute.xlu1 %2853  ;;  %5003 = vmatpush1.msra.mxu0 %v4932_v2  ;;  %10221 = vst [vmem:[#allocation44_spill] sm:$0xff] %v8938_v25  ;;  %v3976_v10 = vcombine.low %v10225_v54, %v10224_v35  ;;  %v4192_v30 = vcombine.low %v4183_v61, %v4191_v24  ;;  %v4928_v18 = vmax.f32 %v8923_v45, 0.0  ;;  %v10242_v61 = vld [vmem:[#allocation95_spill] sm:$0xff] }
 0x48f   :  { %v4091_v13 = vrot.slane %v10222_v56, %v10111_v0  ;;  %v8944_v59 = vpop.permute.xlu0 %4570  ;;  %5004 = vmatprep.subr.mxu0 %v4931_v50  ;;  %10223 = vst [vmem:[#allocation41_spill] sm:$0xff] %v8948_v26  ;;  %v8954_v5 = vadd.f32 %v10226_v28, %v4292_v37  ;;  %v4083_v8 = vrot.slane %v4076_v3, %v10111_v0  ;;  %v4927_v1 = vmax.f32 %v8928_v58, 0.0 }
 0x490   :  { %5005 = vmatpush1.msra.mxu0 %v4930_v11  ;;  %v8959_v40 = vadd.f32 %v10228_v63, %v4243_v57  ;;  %v4143_v44 = vcombine.high %v4133_v9, %v4141_v27  ;;  %v10232_v36 = vcombine.low %v10230_v62, %v10231_v14  ;;  %v4142_v52 = vcombine.low %v4133_v9, %v4141_v27  ;;  %v10244_v9 = vld [vmem:[#allocation98_spill] sm:$0xff]  ;;  %v10246_v11 = vld [vmem:[#allocation23_spill] sm:$0xff] }
 0x491   :  { %10227 = vst [vmem:[#allocation38_spill] sm:$0xff] %v8954_v5  ;;  %5006 = vmatprep.subr.mxu0 %v4929_v20  ;;  %v4926_v49 = vmax.f32 %v8938_v25, 0.0  ;;  %v8969_v31 = vadd.f32 %v10233_v22, %v4242_v34  ;;  %v10237_v60 = vcombine.low %v10235_v4, %v10236_v46  ;;  %v4925_v24 = vmax.f32 %v8948_v26, 0.0  ;;  %v10247_v20 = vld [vmem:[#allocation15_spill] sm:$0xff]  ;;  %v10251_v63 = vld [vmem:[#allocation102_spill] sm:$0xff]  ;;  %v10256_v46 = vld [vmem:[#allocation104_spill] sm:$0xff] }
 0x492   :  { %10229 = vst [vmem:[#allocation50_spill] sm:$0xff] %v8959_v40  ;;  %v4033_v15 = vrot.slane %v10232_v36, %v10111_v0  ;;  %v8965_v23 = vpop.permute.xlu1 %2867  ;;  %5007 = vmatpush1.msra.mxu0 %v4928_v18  ;;  %v8977_v55 = vadd.f32 %v10238_v6, %v4193_v21  ;;  %v4093_v2 = vcombine.high %v4083_v8, %v4091_v13  ;;  %v4924_v37 = vmax.f32 %v8954_v5, 0.0  ;;  %v10248_v21 = vld [vmem:[#allocation13_spill] sm:$0xff] }
 0x493   :  { %10234 = vst [vmem:[#allocation48_spill] sm:$0xff] %v8969_v31  ;;  %v3991_v32 = vrot.slane %v10237_v60, %v10111_v0  ;;  %v2861_v7 = vpop.permute.xlu0 %2860  ;;  %5008 = vmatprep.subr.mxu0 %v4927_v1  ;;  %v3884_v27 = vcombine.low %v10241_v12, %v10240_v29  ;;  %v4092_v3 = vcombine.low %v4083_v8, %v4091_v13  ;;  %v4923_v43 = vmax.f32 %v8959_v40, 0.0  ;;  %v10249_v18 = vld [vmem:[#allocation97_spill] sm:$0xff] }
 0x494   :  { %10239 = vst [vmem:[#allocation45_spill] sm:$0xff] %v8977_v55  ;;  %5009 = vmatpush1.msra.mxu0 %v4926_v49  ;;  %v8983_v50 = vadd.f32 %v10242_v61, %v4192_v30  ;;  %v3983_v57 = vrot.slane %v3976_v10, %v10111_v0  ;;  %v8988_v34 = vadd.f32 %v10244_v9, %v4143_v44  ;;  %v4922_v30 = vmax.f32 %v8969_v31, 0.0  ;;  %v10253_v49 = vld [vmem:[#allocation99_spill] sm:$0xff] }
 0x495   :  { %5010 = vmatprep.subr.mxu0 %v4925_v24  ;;  %v4043_v56 = vcombine.high %v4033_v15, %v10246_v11  ;;  %v3876_v35 = vcombine.low %v10248_v21, %v10247_v20  ;;  %v4042_v13 = vcombine.low %v4033_v15, %v10246_v11  ;;  %v8998_v10 = vadd.f32 %v10249_v18, %v4142_v52  ;;  %v10264_v11 = vld [vmem:[#allocation5_spill] sm:$0xff] }
 0x496   :  { %10243 = vst [vmem:[#allocation43_spill] sm:$0xff] %v8983_v50  ;;  %10245 = vst [vmem:[#allocation68_spill] sm:$0xff] %v8988_v34  ;;  %v8994_v54 = vpop.permute.xlu1 %2881  ;;  %5011 = vmatpush1.msra.mxu0 %v4924_v37  ;;  %v3818_v28 = vcombine.low %v8882_v17, %v8904_v42  ;;  %v4921_v1 = vmax.f32 %v8977_v55, 0.0  ;;  %v9004_v44 = vadd.f32 %v10251_v63, %v4093_v2  ;;  %v4920_v15 = vmax.f32 %v8983_v50, 0.0  ;;  %v10255_v42 = vld [vmem:[#allocation16_spill] sm:$0xff]  ;;  %v10258_v2 = vld [vmem:[#allocation103_spill] sm:$0xff] }
 0x497   :  { %10250 = vst [vmem:[#allocation35_spill] sm:$0xff] %v8998_v10  ;;  %v2875_v8 = vpop.permute.xlu0 %2874  ;;  %5012 = vmatprep.subr.mxu0 %v4923_v43  ;;  %v3993_v62 = vcombine.high %v3983_v57, %v3991_v32  ;;  %v3992_v14 = vcombine.low %v3983_v57, %v3991_v32  ;;  %v3891_v36 = vrot.slane %v3884_v27, %v10111_v0  ;;  %v4919_v4 = vmax.f32 %v8988_v34, 0.0  ;;  %v10261_v37 = vld [vmem:[#allocation105_spill] sm:$0xff] }
 0x498   :  { %10252 = vst [vmem:[#allocation32_spill] sm:$0xff] %v9004_v44  ;;  %5013 = vmatpush1.msra.mxu0 %v4922_v30  ;;  %v9009_v52 = vadd.f32 %v10253_v49, %v4092_v3  ;;  %v3810_v17 = vcombine.low %v8877_v41, %v8909_v39  ;;  %v3802_v22 = vcombine.low %v10255_v42, %v8862_v48  ;;  %v4918_v6 = vmax.f32 %v8998_v10, 0.0  ;;  %v10260_v39 = vld [vmem:[#allocation39_spill] sm:$0xff] }
 0x499   :  { %5014 = vmatprep.subr.mxu0 %v4921_v1  ;;  %v9017_v60 = vadd.f32 %v10256_v46, %v4043_v56  ;;  %v3883_v32 = vrot.slane %v3876_v35, %v10111_v0  ;;  %v3752_v24 = vcombine.low %v2861_v7, %v2875_v8  ;;  %v9022_v29 = vadd.f32 %v10258_v2, %v4042_v13  ;;  %v10263_v7 = vld [vmem:[#allocation36_spill] sm:$0xff] }
 0x49a   :  { %10254 = vst [vmem:[#allocation37_spill] sm:$0xff] %v9009_v52  ;;  %5015 = vmatpush1.msra.mxu0 %v4920_v15  ;;  %v3825_v41 = vrot.slane %v3818_v28, %v10095_v51  ;;  %v4760_v48 = vadd.f32 %v10260_v39, %v8944_v59  ;;  %v2896_v12 = vpop.permute.xlu1 %2895  ;;  %v4917_v3 = vmax.f32 %v9004_v44, 0.0  ;;  %v9029_v61 = vadd.f32 %v10261_v37, %v3993_v62  ;;  %v10267_v28 = vld [vmem:[#allocation11_spill] sm:$0xff] }
 0x49b   :  { %10257 = vst [vmem:[#allocation34_spill] sm:$0xff] %v9017_v60  ;;  %10259 = vst [vmem:[#allocation49_spill] sm:$0xff] %v9022_v29  ;;  %v2889_v27 = vpop.permute.xlu0 %2888  ;;  %5016 = vmatprep.subr.mxu0 %v4919_v4  ;;  %v4758_v57 = vadd.f32 %v10263_v7, %v8944_v59  ;;  %v3744_v43 = vcombine.low %v8934_v47, %v8965_v23  ;;  %v4916_v9 = vmax.f32 %v9009_v52, 0.0  ;;  %v4915_v13 = vmax.f32 %v9017_v60, 0.0  ;;  %v10266_v23 = vld [vmem:[#allocation17_spill] sm:$0xff]  ;;  %v10273_v7 = vld [vmem:[#allocation27_spill] sm:$0xff] }
 0x49c   :  { %10262 = vst [vmem:[#allocation47_spill] sm:$0xff] %v9029_v61  ;;  %5017 = vmatpush1.msra.mxu0 %v4918_v6  ;;  %v9037_v56 = vadd.f32 %v10264_v11, %v3992_v14  ;;  %v3817_v20 = vrot.slane %v3810_v17, %v10095_v51  ;;  %v3809_v21 = vrot.slane %v3802_v22, %v10095_v51  ;;  %v4914_v47 = vmax.f32 %v9022_v29, 0.0  ;;  %v10271_v22 = vld [vmem:[#allocation20_spill] sm:$0xff] }
 0x49d   :  { %v3893_v35 = vcombine.high %v3883_v32, %v3891_v36  ;;  %5018 = vmatprep.subr.mxu0 %v4917_v3  ;;  %v3892_v30 = vcombine.low %v3883_v32, %v3891_v36  ;;  %v3759_v59 = vrot.slane %v3752_v24, %v10095_v51  ;;  %v3760_v18 = vcombine.low %v8994_v54, %v2896_v12  ;;  %v10272_v6 = vld [vmem:[#allocation8_spill] sm:$0xff] }
 0x49e   :  { %10265 = vst [vmem:[#allocation54_spill] sm:$0xff] %v9037_v56  ;;  %5019 = vmatpush1.msra.mxu0 %v4916_v9  ;;  %v10268_v8 = vcombine.low %v10266_v23, %v10267_v28  ;;  %v3834_v63 = vcombine.low %v3817_v20, %v3825_v41  ;;  %v4913_v15 = vmax.f32 %v9029_v61, 0.0  ;;  %v3751_v49 = vrot.slane %v3744_v43, %v10095_v51 }
 0x49f   :  { %v9049_v62 = vadd.f32 %v4760_v48, %v3893_v35  ;;  %v2903_v14 = vpop.permute.xlu0 %2902  ;;  %5020 = vmatprep.subr.mxu0 %v4915_v13  ;;  %v9052_v36 = vadd.f32 %v4758_v57, %v3892_v30  ;;  %v4912_v17 = vmax.f32 %v9037_v56, 0.0  ;;  %v4911_v4 = vmax.f32 %v10271_v22, 0.0  ;;  %v10274_v35 = vld [vmem:[#allocation30_spill] sm:$0xff]  ;;  %v10275_v30 = vld [vmem:[#allocation33_spill] sm:$0xff] }
 0x4a0   :  { %v3801_v1 = vrot.slane %v10268_v8, %v10095_v51  ;;  %v3768_v54 = vcombine.low %v2889_v27, %v2903_v14  ;;  %5021 = vmatpush1.msra.mxu0 %v4914_v47  ;;  %v3776_v46 = vcombine.low %v3751_v49, %v3759_v59  ;;  %v3767_v32 = vrot.slane %v3760_v18, %v10095_v51  ;;  %v10276_v18 = vld [vmem:[#allocation24_spill] sm:$0xff]  ;;  %v4872_v49 = vld [vmem:[%s9853_s5] sm:$0xff] }
 0x4a1   :  { %10269 = vst [vmem:[#allocation62_spill] sm:$0xff] %v9049_v62  ;;  %10270 = vst [vmem:[#allocation60_spill] sm:$0xff] %v9052_v36  ;;  %5022 = vmatprep.subr.mxu0 %v4913_v15  ;;  %v4910_v2 = vmax.f32 %v10272_v6, 0.0  ;;  %v3841_v41 = vrot.slane %v3834_v63, %v10111_v0  ;;  %v4909_v39 = vmax.f32 %v9049_v62, 0.0  ;;  %v4908_v48 = vmax.f32 %v9052_v36, 0.0 }
 0x4a2   :  { %v3826_v42 = vcombine.low %v3801_v1, %v3809_v21  ;;  %v3775_v24 = vrot.slane %v3768_v54, %v10095_v51  ;;  %5023 = vmatpush1.msra.mxu0 %v4912_v17  ;;  %v3783_v37 = vrot.slane %v3776_v46, %v10111_v0  ;;  %v10281_v54 = vmov 0.0   ;;  %v4873_v17 = vld [vmem:[%s9853_s5 + $0x8] sm:$0xff]  ;;  %v4876_v46 = vld [vmem:[%s9853_s5 + $0x20] sm:$0xff] }
 0x4a3   :  { %5024 = vmatprep.subr.mxu0 %v4911_v4  ;;  %v4563_v27 = vpop.permute.xlu0 %4562  ;;  %v4875_v4 = vld [vmem:[%s9853_s5 + $0x18] sm:$0xff] }
 0x4a4   :  { %v3784_v12 = vcombine.low %v3767_v32, %v3775_v24  ;;  %5025 = vmatpush1.msra.mxu0 %v4910_v2  ;;  %v3833_v3 = vrot.slane %v3826_v42, %v10111_v0  ;;  %v4748_v57 = vadd.f32 %v10273_v7, %v4563_v27  ;;  %v4746_v47 = vadd.f32 %v10276_v18, %v4563_v27  ;;  %v4874_v42 = vld [vmem:[%s9853_s5 + $0x10] sm:$0xff]  ;;  %v4877_v32 = vld [vmem:[%s9853_s5 + $0x28] sm:$0xff]  ;;  %v4879_v2 = vld [vmem:[%s9853_s5 + $0x38] sm:$0xff] }
 0x4a5   :  { %5026 = vmatprep.subr.mxu0 %v4909_v39  ;;  %v4878_v24 = vld [vmem:[%s9853_s5 + $0x30] sm:$0xff]  ;;  %v4881_v39 = vld [vmem:[%s9853_s5 + $0x48] sm:$0xff]  ;;  %v4884_v27 = vld [vmem:[%s9853_s5 + $0x60] sm:$0xff] }
 0x4a6   :  { %v3791_v51 = vrot.slane %v3784_v12, %v10111_v0  ;;  %5027 = vmatpush1.msra.mxu0 %v4908_v48  ;;  %v3842_v43 = vcombine.low %v3833_v3, %v3841_v41  ;;  %v3843_v9 = vcombine.high %v3833_v3, %v3841_v41  ;;  %v4880_v41 = vld [vmem:[%s9853_s5 + $0x40] sm:$0xff]  ;;  %v4882_v48 = vld [vmem:[%s9853_s5 + $0x50] sm:$0xff]  ;;  %v4883_v12 = vld [vmem:[%s9853_s5 + $0x58] sm:$0xff] }
 0x4a7   :  { %v4567_v11 = vpop.permute.xlu1 %4566  ;;  %v4885_v3 = vld [vmem:[%s9853_s5 + $0x68] sm:$0xff] }
 0x4a8   :  { %v3792_v20 = vcombine.low %v3783_v37, %v3791_v51  ;;  %v3793_v21 = vcombine.high %v3783_v37, %v3791_v51  ;;  %v4752_v13 = vadd.f32 %v10274_v35, %v4567_v11  ;;  %v4754_v59 = vadd.f32 %v10275_v30, %v4567_v11  ;;  %v4886_v37 = vld [vmem:[%s9853_s5 + $0x70] sm:$0xff]  ;;  %v4887_v51 = vld [vmem:[%s9853_s5 + $0x78] sm:$0xff] }
 0x4a9   :  { %v10282_v35 = vld [vmem:[#allocation89_spill] sm:$0xff]  ;;  %v10284_v18 = vld [vmem:[#allocation100_spill] sm:$0xff] }
 0x4aa   :  { %v9070_v23 = vadd.f32 %v4748_v57, %v3793_v21  ;;  %v9072_v28 = vadd.f32 %v4752_v13, %v3842_v43  ;;  %v9074_v8 = vadd.f32 %v4754_v59, %v3843_v9  ;;  %v9076_v0 = vadd.f32 %v4746_v47, %v3792_v20  ;;  %v10283_v13 = vld [vmem:[#allocation90_spill] sm:$0xff]  ;;  %v10285_v47 = vld [vmem:[#allocation91_spill] sm:$0xff] }
 0x4ab   :  { %v6399_v20 = vmov 4  }
 0x4ac   :  { %10277 = vst [vmem:[#allocation63_spill] sm:$0xff] %v9070_v23  ;;  %10278 = vst [vmem:[#allocation61_spill] sm:$0xff] %v9072_v28  ;;  %v4906_v1 = vmax.f32 %v9072_v28, 0.0  ;;  %v4907_v63 = vmax.f32 %v9074_v8, 0.0  ;;  %v4905_v14 = vmax.f32 %v9070_v23, 0.0  ;;  %v4904_v15 = vmax.f32 %v9076_v0, 0.0  ;;  %6326 = vset.pattern.permute.xlu0 %v6399_v20  ;;  %6327 = vset.pattern.permute.xlu1 %v6399_v20 }
 0x4ad   :  { %10279 = vst [vmem:[#allocation55_spill] sm:$0xff] %v9074_v8  ;;  %10280 = vst [vmem:[#allocation52_spill] sm:$0xff] %v9076_v0  ;;  %5254 = vperm.xlu0 %6326, %v10282_v35   ;;  %5250 = vperm.xlu1 %6327, %v10283_v13   ;;  %v9204_v13 = vld [vmem:[%s9849_s10] sm:$0xff] }
 0x4ae   :  { %5028 = vmatprep.subr.mxu0 %v4907_v63  ;;  %10296 = vst [vmem:[#allocation66_spill] sm:$0xff] %v9204_v13 }
 0x4af   :  { %5029 = vmatpush1.msra.mxu0 %v4906_v1 }
 0x4b0   :  { %5030 = vmatprep.subr.mxu0 %v4905_v14  ;;  %v10286_v14 = vld [vmem:[#allocation106_spill] sm:$0xff] }
 0x4b1   :  { %5031 = vmatpush1.msra.mxu0 %v4904_v15  ;;  %5242 = vperm.xlu0 %6326, %v10284_v18   ;;  %v10287_v15 = vld [vmem:[#allocation92_spill] sm:$0xff] }
 0x4b2   :  { %5065 = vmatmul.mubr.f32.vlgmr.msra.gmra.mxu0 %v4872_v49  ;;  %5246 = vperm.xlu1 %6327, %v10285_v47   ;;  %v9210_v18 = vld [vmem:[%s9849_s10 + $0x8] sm:$0xff] }
 0x4b3   :  { %5070 = vmatprep.mubr.f32.mxu0 %v10281_v54  ;;  %10297 = vst [vmem:[#allocation86_spill] sm:$0xff] %v9210_v18 }
 0x4b5   :  { %5234 = vperm.xlu0 %6326, %v10286_v14  }
 0x4b6   :  { %5071 = vmatmul.mubr.f32.gmra.mxu0 %v4873_v17  ;;  %5238 = vperm.xlu1 %6327, %v10287_v15  }
 0x4b7   :  { %5076 = vmatprep.mubr.f32.mxu0 %v10281_v54 }
 0x4ba   :  { %5077 = vmatmul.mubr.f32.gmra.mxu0 %v4874_v42  ;;  %v10288_v42 = vld [vmem:[#allocation10_spill] sm:$0xff] }
 0x4bb   :  { %5082 = vmatprep.mubr.f32.mxu0 %v10281_v54  ;;  %5226 = vperm.xlu0 %6326, %v10288_v42  }
 0x4be   :  { %5083 = vmatmul.mubr.f32.gmra.mxu0 %v4875_v4  ;;  %v10289_v4 = vld [vmem:[#allocation101_spill] sm:$0xff] }
 0x4bf   :  { %5088 = vmatprep.mubr.f32.mxu0 %v10281_v54  ;;  %5230 = vperm.xlu1 %6327, %v10289_v4  }
 0x4c2   :  { %5089 = vmatmul.mubr.f32.gmra.mxu0 %v4876_v46 }
 0x4c3   :  { %5094 = vmatprep.mubr.f32.mxu0 %v10281_v54 }
 0x4c6   :  { %5095 = vmatmul.mubr.f32.gmra.mxu0 %v4877_v32 }
 0x4c7   :  { %5100 = vmatprep.mubr.f32.mxu0 %v10281_v54 }
 0x4ca   :  { %5101 = vmatmul.mubr.f32.gmra.mxu0 %v4878_v24  ;;  %v10290_v24 = vld [vmem:[#allocation21_spill] sm:$0xff] }
 0x4cb   :  { %5106 = vmatprep.mubr.f32.mxu0 %v10281_v54  ;;  %5218 = vperm.xlu0 %6326, %v10290_v24   ;;  %v4998_v14 = vpop.permute.xlu1 %4997 }
 0x4ce   :  { %5107 = vmatmul.mubr.f32.gmra.mxu0 %v4879_v2  ;;  %v10291_v2 = vld [vmem:[#allocation107_spill] sm:$0xff] }
 0x4cf   :  { %5112 = vmatprep.mubr.f32.mxu0 %v10281_v54  ;;  %5222 = vperm.xlu1 %6327, %v10291_v2   ;;  %v4990_v24 = vpop.permute.xlu1 %4989 }
 0x4d2   :  { %5113 = vmatmul.mubr.f32.gmra.mxu0 %v4880_v41 }
 0x4d3   :  { %5118 = vmatprep.mubr.f32.mxu0 %v10281_v54  ;;  %v4986_v0 = vpop.permute.xlu1 %4985 }
 0x4d6   :  { %5119 = vmatmul.mubr.f32.gmra.mxu0 %v4881_v39 }
 0x4d7   :  { %5124 = vmatprep.mubr.f32.mxu0 %v10281_v54  ;;  %v4978_v62 = vpop.permute.xlu1 %4977 }
 0x4da   :  { %5125 = vmatmul.mubr.f32.gmra.mxu0 %v4882_v48  ;;  %v10292_v48 = vld [vmem:[#allocation28_spill] sm:$0xff] }
 0x4db   :  { %5130 = vmatprep.mubr.f32.mxu0 %v10281_v54  ;;  %5210 = vperm.xlu0 %6326, %v10292_v48   ;;  %v4970_v44 = vpop.permute.xlu1 %4969 }
 0x4de   :  { %5131 = vmatmul.mubr.f32.gmra.mxu0 %v4883_v12  ;;  %v10293_v12 = vld [vmem:[#allocation12_spill] sm:$0xff] }
 0x4df   :  { %5136 = vmatprep.mubr.f32.mxu0 %v10281_v54  ;;  %5214 = vperm.xlu1 %6327, %v10293_v12   ;;  %v4994_v12 = vpop.permute.xlu0 %4993 }
 0x4e2   :  { %5137 = vmatmul.mubr.f32.gmra.mxu0 %v4884_v27 }
 0x4e3   :  { %5142 = vmatprep.mubr.f32.mxu0 %v10281_v54  ;;  %v4982_v8 = vpop.permute.xlu0 %4981 }
 0x4e6   :  { %5143 = vmatmul.mubr.f32.gmra.mxu0 %v4885_v3 }
 0x4e7   :  { %5148 = vmatprep.mubr.f32.mxu0 %v10281_v54  ;;  %v4974_v61 = vpop.permute.xlu0 %4973 }
 0x4ea   :  { %5149 = vmatmul.mubr.f32.gmra.mxu0 %v4886_v37  ;;  %v9197_v37 = vld [vmem:[%s9849_s10 + $0x10] sm:$0xff] }
 0x4eb   :  { %5154 = vmatprep.mubr.f32.mxu0 %v10281_v54  ;;  %10294 = vst [vmem:[#allocation69_spill] sm:$0xff] %v9197_v37  ;;  %5202 = vperm.xlu0 %6326, %v9197_v37   ;;  %v4966_v25 = vpop.permute.xlu0 %4965 }
 0x4ee   :  { %5155 = vmatmul.mubr.f32.gmra.mxu0 %v4887_v51  ;;  %v10295_v51 = vld [vmem:[#allocation25_spill] sm:$0xff] }
 0x4ef   :  { %5642 = vmatprep.mubr.f32.mxu0 %v10281_v54  ;;  %5206 = vperm.xlu1 %6327, %v10295_v51  }
 0x4f0   :  { %5194 = vperm.xlu0 %6326, %v9204_v13  }
 0x4f3   :  { %5198 = vperm.xlu1 %6327, %v9210_v18  }
 0x572   :  { %v9146_v7 = vpop.f32.mrf.mxu0 }
 0x574   :  { %v9148_v57 = vpop.f32.mrf.mxu0 }
 0x576   :  { %v9150_v43 = vpop.f32.mrf.mxu0 }
 0x578   :  { %v9152_v9 = vpop.f32.mrf.mxu0 }
 0x57a   :  { %v9154_v11 = vpop.f32.mrf.mxu0 }
 0x57c   :  { %v9156_v21 = vpop.f32.mrf.mxu0 }
 0x57e   :  { %v9160_v30 = vpop.f32.mrf.mxu0 }
 0x580   :  { %v9162_v59 = vpop.f32.mrf.mxu0 }
 0x582   :  { %v9166_v1 = vpop.f32.mrf.mxu0 }
 0x584   :  { %v9168_v63 = vpop.f32.mrf.mxu0 }
 0x586   :  { %v9172_v49 = vpop.f32.mrf.mxu0 }
 0x588   :  { %v9174_v17 = vpop.f32.mrf.mxu0 }
 0x58a   :  { %v9178_v46 = vpop.f32.mrf.mxu0 }
 0x58c   :  { %v9180_v32 = vpop.f32.mrf.mxu0 }
 0x58e   :  { %v9184_v41 = vpop.f32.mrf.mxu0 }
 0x590   :  { %v9186_v39 = vpop.f32.mrf.mxu0 }
 0x592   :  { %v9190_v27 = vpop.f32.mrf.mxu0 }
 0x594   :  { %v9192_v3 = vpop.f32.mrf.mxu0 }
 0x596   :  { %v5120_v20 = vpop.f32.mrf.mxu0 }
 0x598   :  { %v5122_v35 = vpop.f32.mrf.mxu0 }
 0x59a   :  { %v5126_v47 = vpop.f32.mrf.mxu0 }
 0x59c   :  { %v5128_v15 = vpop.f32.mrf.mxu0 }
 0x59e   :  { %v5132_v42 = vpop.f32.mrf.mxu0 }
 0x5a0   :  { %v5134_v4 = vpop.f32.mrf.mxu0 }
 0x5a1   :  { %v5135_v58 = vadd.f32 %v5134_v4, %v4982_v8 }
 0x5a2   :  { %v5138_v2 = vpop.f32.mrf.mxu0 }
 0x5a3   :  { %v5139_v5 = vadd.f32 %v5138_v2, %v4986_v0 }
 0x5a4   :  { %v5140_v48 = vpop.f32.mrf.mxu0 }
 0x5a5   :  { %v5141_v31 = vadd.f32 %v5140_v48, %v4986_v0 }
 0x5a6   :  { %v5144_v51 = vpop.f32.mrf.mxu0 }
 0x5a7   :  { %v5145_v50 = vadd.f32 %v5144_v51, %v4990_v24 }
 0x5a8   :  { %v5146_v23 = vpop.f32.mrf.mxu0 }
 0x5a9   :  { %v5147_v10 = vadd.f32 %v5146_v23, %v4990_v24  ;;  %v5187_v16 = vmax.f32 %v5145_v50, 0.0  ;;  %v5185_v23 = vmax.f32 %v5139_v5, 0.0 }
 0x5aa   :  { %v5150_v28 = vpop.f32.mrf.mxu0 }
 0x5ab   :  { %v5151_v52 = vadd.f32 %v5150_v28, %v4994_v12  ;;  %v5188_v45 = vmax.f32 %v5147_v10, 0.0  ;;  %v5186_v28 = vmax.f32 %v5141_v31, 0.0  ;;  %v5117_v10 = vadd.f32 %v9192_v3, %v4970_v44 }
 0x5ac   :  { %v5152_v36 = vpop.f32.mrf.mxu0 }
 0x5ad   :  { %v5153_v29 = vadd.f32 %v5152_v36, %v4994_v12  ;;  %v5189_v26 = vmax.f32 %v5151_v52, 0.0  ;;  %v5129_v36 = vadd.f32 %v5128_v15, %v4978_v62 }
 0x5ae   :  { %v5156_v6 = vpop.f32.mrf.mxu0 }
 0x5af   :  { %v5157_v22 = vadd.f32 %v5156_v6, %v4998_v14  ;;  %v5190_v40 = vmax.f32 %v5153_v29, 0.0  ;;  %v5133_v6 = vadd.f32 %v5132_v42, %v4982_v8  ;;  %v5184_v29 = vmax.f32 %v5135_v58, 0.0 }
 0x5b0   :  { %v5158_v56 = vpop.f32.mrf.mxu0 }
 0x5b1   :  { %v5159_v60 = vadd.f32 %v5158_v56, %v4998_v14  ;;  %v5191_v55 = vmax.f32 %v5157_v22, 0.0  ;;  %v4962_v56 = vpop.permute.xlu1 %4961  ;;  %v5123_v22 = vadd.f32 %v5122_v35, %v4974_v61  ;;  %v5183_v52 = vmax.f32 %v5133_v6, 0.0 }
 0x5b2   :  { %v5103_v8 = vadd.f32 %v9178_v46, %v4962_v56 }
 0x5b3   :  { %v5192_v34 = vmax.f32 %v5159_v60, 0.0  ;;  %v5127_v60 = vadd.f32 %v5126_v47, %v4978_v62  ;;  %v5180_v5 = vmax.f32 %v5123_v22, 0.0  ;;  %v5178_v62 = vmax.f32 %v5117_v10, 0.0  ;;  %v4894_v22 = vld [vmem:[%s9854_s6 + $0x30] sm:$0xff]  ;;  %v4899_v10 = vld [vmem:[%s9854_s6 + $0x58] sm:$0xff] }
 0x5b4   :  { %v5173_v47 = vmax.f32 %v5103_v8, 0.0  ;;  %v9308_v8 = vld [vmem:[%s9849_s10 + $0x78] sm:$0xff] }
 0x5b5   :  { %5257 = vmatprep.subr.mxu1 %v5192_v34  ;;  %v5121_v34 = vadd.f32 %v5120_v20, %v4974_v61  ;;  %v5181_v50 = vmax.f32 %v5127_v60, 0.0  ;;  %v4954_v31 = vpop.permute.xlu1 %4953  ;;  %v5105_v61 = vadd.f32 %v9180_v32, %v4962_v56  ;;  %v4892_v60 = vld [vmem:[%s9854_s6 + $0x20] sm:$0xff] }
 0x5b6   :  { %5258 = vmatpush1.msra.mxu1 %v5191_v55  ;;  %v4958_v55 = vpop.permute.xlu0 %4957  ;;  %v5091_v32 = vadd.f32 %v9166_v1, %v4954_v31 }
 0x5b7   :  { %5259 = vmatprep.subr.mxu1 %v5190_v40  ;;  %v5182_v40 = vmax.f32 %v5129_v36, 0.0  ;;  %v5179_v58 = vmax.f32 %v5121_v34, 0.0  ;;  %v5174_v35 = vmax.f32 %v5105_v61, 0.0  ;;  %v4896_v34 = vld [vmem:[%s9854_s6 + $0x40] sm:$0xff]  ;;  %v6400_v61 = vmov 5  }
 0x5b8   :  { %5260 = vmatpush1.msra.mxu1 %v5189_v26  ;;  %v5115_v26 = vadd.f32 %v9190_v27, %v4970_v44  ;;  %v5099_v27 = vadd.f32 %v9174_v17, %v4958_v55  ;;  %v5169_v24 = vmax.f32 %v5091_v32, 0.0  ;;  %6328 = vset.pattern.permute.xlu1 %v6400_v61 }
 0x5b9   :  { %5261 = vmatprep.subr.mxu1 %v5188_v45  ;;  %v5111_v45 = vadd.f32 %v9186_v39, %v4966_v25  ;;  %v5097_v39 = vadd.f32 %v9172_v49, %v4958_v55  ;;  %v4898_v55 = vld [vmem:[%s9854_s6 + $0x50] sm:$0xff]  ;;  %6329 = vset.pattern.permute.xlu0 %v6400_v61 }
 0x5ba   :  { %5262 = vmatpush1.msra.mxu1 %v5187_v16  ;;  %v5109_v16 = vadd.f32 %v9184_v41, %v4966_v25  ;;  %v5177_v0 = vmax.f32 %v5115_v26, 0.0  ;;  %v4950_v44 = vpop.permute.xlu0 %4949  ;;  %v4946_v25 = vpop.permute.xlu1 %4945  ;;  %v5093_v41 = vadd.f32 %v9168_v63, %v4954_v31  ;;  %v5172_v14 = vmax.f32 %v5099_v27, 0.0  ;;  %v4901_v26 = vld [vmem:[%s9854_s6 + $0x68] sm:$0xff]  ;;  %v4903_v31 = vld [vmem:[%s9854_s6 + $0x78] sm:$0xff]  ;;  %5575 = vperm.xlu1 %6328, %v9308_v8  }
 0x5bb   :  { %5263 = vmatprep.subr.mxu1 %v5186_v28  ;;  %v5176_v3 = vmax.f32 %v5111_v45, 0.0  ;;  %v5087_v46 = vadd.f32 %v9162_v59, %v4950_v44  ;;  %v5085_v17 = vadd.f32 %v9160_v30, %v4950_v44  ;;  %v5171_v15 = vmax.f32 %v5097_v39, 0.0  ;;  %v4891_v28 = vld [vmem:[%s9854_s6 + $0x18] sm:$0xff] }
 0x5bc   :  { %5264 = vmatpush1.msra.mxu1 %v5185_v23  ;;  %v5175_v20 = vmax.f32 %v5109_v16, 0.0  ;;  %v5081_v42 = vadd.f32 %v9156_v21, %v4946_v25  ;;  %v5170_v4 = vmax.f32 %v5093_v41, 0.0  ;;  %v5079_v63 = vadd.f32 %v9154_v11, %v4946_v25  ;;  %v4893_v23 = vld [vmem:[%s9854_s6 + $0x28] sm:$0xff]  ;;  %v9330_v39 = vld [vmem:[%s9849_s10 + $0x58] sm:$0xff]  ;;  %v9340_v41 = vld [vmem:[%s9849_s10 + $0x60] sm:$0xff] }
 0x5bd   :  { %5265 = vmatprep.subr.mxu1 %v5184_v29  ;;  %v5168_v48 = vmax.f32 %v5087_v46, 0.0  ;;  %v5167_v12 = vmax.f32 %v5085_v17, 0.0  ;;  %v4895_v29 = vld [vmem:[%s9854_s6 + $0x38] sm:$0xff]  ;;  %v9356_v46 = vld [vmem:[%s9849_s10 + $0x50] sm:$0xff] }
 0x5be   :  { %5266 = vmatpush1.msra.mxu1 %v5183_v52  ;;  %v4942_v49 = vpop.permute.xlu0 %4941  ;;  %v4938_v1 = vpop.permute.xlu1 %4937  ;;  %v5166_v51 = vmax.f32 %v5081_v42, 0.0  ;;  %v5165_v6 = vmax.f32 %v5079_v63, 0.0  ;;  %v4897_v52 = vld [vmem:[%s9854_s6 + $0x48] sm:$0xff] }
 0x5bf   :  { %5267 = vmatprep.subr.mxu1 %v5182_v40  ;;  %v5075_v2 = vadd.f32 %v9152_v9, %v4942_v49  ;;  %v5073_v59 = vadd.f32 %v9150_v43, %v4942_v49  ;;  %v5069_v30 = vadd.f32 %v9148_v57, %v4938_v1  ;;  %v5067_v21 = vadd.f32 %v9146_v7, %v4938_v1  ;;  %v4888_v43 = vld [vmem:[%s9854_s6] sm:$0xff]  ;;  %v4889_v7 = vld [vmem:[%s9854_s6 + $0x8] sm:$0xff]  ;;  %v4890_v57 = vld [vmem:[%s9854_s6 + $0x10] sm:$0xff] }
 0x5c0   :  { %5268 = vmatpush1.msra.mxu1 %v5181_v50  ;;  %v4900_v40 = vld [vmem:[%s9854_s6 + $0x60] sm:$0xff]  ;;  %v4902_v50 = vld [vmem:[%s9854_s6 + $0x70] sm:$0xff]  ;;  %v9378_v42 = vld [vmem:[%s9849_s10 + $0x28] sm:$0xff] }
 0x5c1   :  { %5269 = vmatprep.subr.mxu1 %v5180_v5  ;;  %v5164_v11 = vmax.f32 %v5075_v2, 0.0  ;;  %v5163_v56 = vmax.f32 %v5073_v59, 0.0  ;;  %v5162_v36 = vmax.f32 %v5069_v30, 0.0  ;;  %v5161_v9 = vmax.f32 %v5067_v21, 0.0  ;;  %v9372_v49 = vld [vmem:[%s9849_s10 + $0x40] sm:$0xff]  ;;  %10301 = vst [vmem:[#allocation59_spill] sm:$0xff] %v9378_v42 }
 0x5c2   :  { %5270 = vmatpush1.msra.mxu1 %v5179_v58  ;;  %10300 = vst [vmem:[#allocation56_spill] sm:$0xff] %v9372_v49  ;;  %v9394_v1 = vld [vmem:[%s9849_s10 + $0x18] sm:$0xff]  ;;  %v9404_v59 = vld [vmem:[%s9849_s10 + $0x20] sm:$0xff] }
 0x5c3   :  { %5271 = vmatprep.subr.mxu1 %v5178_v62  ;;  %10303 = vst [vmem:[#allocation65_spill] sm:$0xff] %v9394_v1  ;;  %10304 = vst [vmem:[#allocation82_spill] sm:$0xff] %v9404_v59 }
 0x5c4   :  { %5272 = vmatpush1.msra.mxu1 %v5177_v0  ;;  %v9314_v0 = vld [vmem:[%s9849_s10 + $0x70] sm:$0xff] }
 0x5c5   :  { %5273 = vmatprep.subr.mxu1 %v5176_v3  ;;  %5571 = vperm.xlu0 %6329, %v9314_v0   ;;  %v9324_v3 = vld [vmem:[%s9849_s10 + $0x68] sm:$0xff] }
 0x5c6   :  { %5274 = vmatpush1.msra.mxu1 %v5175_v20  ;;  %5567 = vperm.xlu1 %6328, %v9324_v3  }
 0x5c7   :  { %5275 = vmatprep.subr.mxu1 %v5174_v35  ;;  %v9346_v35 = vld [vmem:[%s9849_s10 + $0x48] sm:$0xff] }
 0x5c8   :  { %5276 = vmatpush1.msra.mxu1 %v5173_v47  ;;  %10298 = vst [vmem:[#allocation84_spill] sm:$0xff] %v9346_v35 }
 0x5c9   :  { %5277 = vmatprep.subr.mxu1 %v5172_v14  ;;  %5559 = vperm.xlu0 %6329, %v9330_v39   ;;  %v9362_v14 = vld [vmem:[%s9849_s10 + $0x38] sm:$0xff] }
 0x5ca   :  { %5278 = vmatpush1.msra.mxu1 %v5171_v15  ;;  %5563 = vperm.xlu1 %6328, %v9340_v41   ;;  %10299 = vst [vmem:[#allocation58_spill] sm:$0xff] %v9362_v14 }
 0x5cb   :  { %5279 = vmatprep.subr.mxu1 %v5170_v4 }
 0x5cc   :  { %5280 = vmatpush1.msra.mxu1 %v5169_v24  ;;  %v9388_v24 = vld [vmem:[%s9849_s10 + $0x30] sm:$0xff] }
 0x5cd   :  { %5281 = vmatprep.subr.mxu1 %v5168_v48  ;;  %5551 = vperm.xlu0 %6329, %v9346_v35   ;;  %10302 = vst [vmem:[#allocation57_spill] sm:$0xff] %v9388_v24 }
 0x5ce   :  { %5282 = vmatpush1.msra.mxu1 %v5167_v12  ;;  %5555 = vperm.xlu1 %6328, %v9356_v46  }
 0x5cf   :  { %5283 = vmatprep.subr.mxu1 %v5166_v51 }
 0x5d0   :  { %5284 = vmatpush1.msra.mxu1 %v5165_v6 }
 0x5d1   :  { %5285 = vmatprep.subr.mxu1 %v5164_v11  ;;  %5543 = vperm.xlu0 %6329, %v9362_v14   ;;  %v5251_v11 = vpop.permute.xlu1 %5250 }
 0x5d2   :  { %5286 = vmatpush1.msra.mxu1 %v5163_v56  ;;  %5547 = vperm.xlu1 %6328, %v9372_v49  }
 0x5d3   :  { %5287 = vmatprep.subr.mxu1 %v5162_v36  ;;  %v5255_v36 = vpop.permute.xlu0 %5254 }
 0x5d4   :  { %5288 = vmatpush1.msra.mxu1 %v5161_v9 }
 0x5d5   :  { %5322 = vmatmul.mubr.f32.vlgmr.msra.gmra.mxu1 %v4888_v43  ;;  %5535 = vperm.xlu0 %6329, %v9378_v42  }
 0x5d6   :  { %5327 = vmatprep.mubr.f32.mxu1 %v10281_v54  ;;  %5539 = vperm.xlu1 %6328, %v9388_v24   ;;  %v10306_v24 = vld [vmem:[#allocation29_spill] sm:$0xff] }
 0x5d9   :  { %5328 = vmatmul.mubr.f32.gmra.mxu1 %v4889_v7  ;;  %5527 = vperm.xlu0 %6329, %v9394_v1   ;;  %v5247_v7 = vpop.permute.xlu1 %5246 }
 0x5da   :  { %5333 = vmatprep.mubr.f32.mxu1 %v10281_v54  ;;  %5531 = vperm.xlu1 %6328, %v9404_v59  }
 0x5dd   :  { %5334 = vmatmul.mubr.f32.gmra.mxu1 %v4890_v57  ;;  %5519 = vperm.xlu0 %6329, %v9210_v18  }
 0x5de   :  { %5339 = vmatprep.mubr.f32.mxu1 %v10281_v54  ;;  %5523 = vperm.xlu1 %6328, %v9197_v37   ;;  %v10305_v37 = vld [vmem:[#allocation26_spill] sm:$0xff] }
 0x5e1   :  { %5340 = vmatmul.mubr.f32.gmra.mxu1 %v4891_v28  ;;  %v5243_v28 = vpop.permute.xlu0 %5242 }
 0x5e2   :  { %5345 = vmatprep.mubr.f32.mxu1 %v10281_v54  ;;  %5515 = vperm.xlu1 %6328, %v9204_v13  }
 0x5e5   :  { %5346 = vmatmul.mubr.f32.gmra.mxu1 %v4892_v60 }
 0x5e6   :  { %5351 = vmatprep.mubr.f32.mxu1 %v10281_v54 }
 0x5e9   :  { %5352 = vmatmul.mubr.f32.gmra.mxu1 %v4893_v23 }
 0x5ea   :  { %5357 = vmatprep.mubr.f32.mxu1 %v10281_v54 }
 0x5ed   :  { %5358 = vmatmul.mubr.f32.gmra.mxu1 %v4894_v22  ;;  %v5239_v22 = vpop.permute.xlu1 %5238 }
 0x5ee   :  { %5363 = vmatprep.mubr.f32.mxu1 %v10281_v54 }
 0x5f1   :  { %5364 = vmatmul.mubr.f32.gmra.mxu1 %v4895_v29 }
 0x5f2   :  { %5369 = vmatprep.mubr.f32.mxu1 %v10281_v54 }
 0x5f5   :  { %5370 = vmatmul.mubr.f32.gmra.mxu1 %v4896_v34  ;;  %v5235_v34 = vpop.permute.xlu0 %5234 }
 0x5f6   :  { %5375 = vmatprep.mubr.f32.mxu1 %v10281_v54 }
 0x5f9   :  { %5376 = vmatmul.mubr.f32.gmra.mxu1 %v4897_v52  ;;  %v5227_v61 = vpop.permute.xlu0 %5226 }
 0x5fa   :  { %5381 = vmatprep.mubr.f32.mxu1 %v10281_v54 }
 0x5fd   :  { %5382 = vmatmul.mubr.f32.gmra.mxu1 %v4898_v55 }
 0x5fe   :  { %5387 = vmatprep.mubr.f32.mxu1 %v10281_v54 }
 0x601   :  { %5388 = vmatmul.mubr.f32.gmra.mxu1 %v4899_v10  ;;  %v5231_v10 = vpop.permute.xlu1 %5230 }
 0x602   :  { %5393 = vmatprep.mubr.f32.mxu1 %v10281_v54 }
 0x605   :  { %5394 = vmatmul.mubr.f32.gmra.mxu1 %v4900_v40 }
 0x606   :  { %5399 = vmatprep.mubr.f32.mxu1 %v10281_v54 }
 0x609   :  { %5400 = vmatmul.mubr.f32.gmra.mxu1 %v4901_v26 }
 0x60a   :  { %5405 = vmatprep.mubr.f32.mxu1 %v10281_v54 }
 0x60d   :  { %5406 = vmatmul.mubr.f32.gmra.mxu1 %v4902_v50 }
 0x60e   :  { %5411 = vmatprep.mubr.f32.mxu1 %v10281_v54 }
 0x611   :  { %5412 = vmatmul.mubr.f32.gmra.mxu1 %v4903_v31 }
 0x612   :  { %5899 = vmatprep.mubr.f32.mxu1 %v10281_v54 }
 0x695   :  { %v9295_v45 = vpop.f32.mrf.mxu1 }
 0x697   :  { %v9297_v5 = vpop.f32.mrf.mxu1 }
 0x699   :  { %v9299_v16 = vpop.f32.mrf.mxu1 }
 0x69b   :  { %v9301_v58 = vpop.f32.mrf.mxu1 }
 0x69d   :  { %v9303_v62 = vpop.f32.mrf.mxu1 }
 0x69f   :  { %v9317_v44 = vpop.f32.mrf.mxu1 }
 0x6a1   :  { %v9319_v27 = vpop.f32.mrf.mxu1 }
 0x6a3   :  { %v9333_v20 = vpop.f32.mrf.mxu1 }
 0x6a5   :  { %v9335_v25 = vpop.f32.mrf.mxu1 }
 0x6a7   :  { %v9349_v32 = vpop.f32.mrf.mxu1 }
 0x6a9   :  { %v9351_v47 = vpop.f32.mrf.mxu1 }
 0x6ab   :  { %v9365_v17 = vpop.f32.mrf.mxu1 }
 0x6ad   :  { %v9367_v15 = vpop.f32.mrf.mxu1 }
 0x6af   :  { %v9381_v4 = vpop.f32.mrf.mxu1 }
 0x6b1   :  { %v9383_v63 = vpop.f32.mrf.mxu1 }
 0x6b3   :  { %v9397_v2 = vpop.f32.mrf.mxu1 }
 0x6b5   :  { %v9399_v48 = vpop.f32.mrf.mxu1 }
 0x6b7   :  { %v5373_v12 = vpop.f32.mrf.mxu1 }
 0x6b9   :  { %v5377_v30 = vpop.f32.mrf.mxu1 }
 0x6bb   :  { %v5379_v51 = vpop.f32.mrf.mxu1 }
 0x6bd   :  { %v5383_v21 = vpop.f32.mrf.mxu1 }
 0x6bf   :  { %v5385_v6 = vpop.f32.mrf.mxu1 }
 0x6c1   :  { %v5389_v56 = vpop.f32.mrf.mxu1 }
 0x6c3   :  { %v5391_v9 = vpop.f32.mrf.mxu1 }
 0x6c5   :  { %v5395_v43 = vpop.f32.mrf.mxu1 }
 0x6c6   :  { %v5396_v49 = vadd.f32 %v5395_v43, %v5243_v28 }
 0x6c7   :  { %v5397_v57 = vpop.f32.mrf.mxu1 }
 0x6c8   :  { %v5398_v59 = vadd.f32 %v5397_v57, %v5243_v28  ;;  %v5219_v57 = vpop.permute.xlu0 %5218  ;;  %v10308_v28 = vld [vmem:[#allocation40_spill] sm:$0xff] }
 0x6c9   :  { %v5401_v60 = vpop.f32.mrf.mxu1 }
 0x6ca   :  { %v5402_v1 = vadd.f32 %v5401_v60, %v5247_v7  ;;  %v5378_v60 = vadd.f32 %v5377_v30, %v5231_v10 }
 0x6cb   :  { %v5403_v23 = vpop.f32.mrf.mxu1 }
 0x6cc   :  { %v5404_v18 = vadd.f32 %v5403_v23, %v5247_v7  ;;  %v9427_v7 = vadd.f32 %v5402_v1, %v8907_v38  ;;  %v10310_v38 = vld [vmem:[#allocation46_spill] sm:$0xff] }
 0x6cd   :  { %v5407_v29 = vpop.f32.mrf.mxu1 }
 0x6ce   :  { %v5408_v50 = vadd.f32 %v5407_v29, %v5251_v11  ;;  %v5392_v29 = vadd.f32 %v5391_v9, %v5239_v22  ;;  %v9423_v23 = vadd.f32 %v5404_v18, %v8897_v53  ;;  %v5384_v9 = vadd.f32 %v5383_v21, %v5235_v34 }
 0x6cf   :  { %v5409_v52 = vpop.f32.mrf.mxu1  ;;  %v9435_v53 = vadd.f32 %v5396_v49, %v10308_v28  ;;  %v5374_v49 = vadd.f32 %v5373_v12, %v5227_v61  ;;  %v5360_v28 = vadd.f32 %v9367_v15, %v5219_v57 }
 0x6d0   :  { %v5410_v40 = vadd.f32 %v5409_v52, %v5251_v11  ;;  %v9420_v52 = vadd.f32 %v5408_v50, %v8894_v33  ;;  %v5223_v11 = vpop.permute.xlu1 %5222  ;;  %v9439_v1 = vadd.f32 %v5392_v29, %v10310_v38  ;;  %v10316_v50 = vld [vmem:[#allocation38_spill] sm:$0xff] }
 0x6d1   :  { %v5413_v55 = vpop.f32.mrf.mxu1  ;;  %10309 = vst [vmem:[#allocation80_spill] sm:$0xff] %v9435_v53  ;;  %v5506_v30 = vmax.f32 %v9435_v53, 0.0  ;;  %v5368_v29 = vadd.f32 %v9397_v2, %v5223_v11 }
 0x6d2   :  { %v5414_v26 = vadd.f32 %v5413_v55, %v5255_v36  ;;  %v9414_v14 = vadd.f32 %v5410_v40, %v8891_v19  ;;  %v5510_v18 = vmax.f32 %v9420_v52, 0.0  ;;  %10311 = vst [vmem:[#allocation83_spill] sm:$0xff] %v9439_v1  ;;  %v5508_v55 = vmax.f32 %v9427_v7, 0.0 }
 0x6d3   :  { %v5415_v31 = vpop.f32.mrf.mxu1  ;;  %v5505_v12 = vmax.f32 %v9439_v1, 0.0 }
 0x6d4   :  { %v5416_v13 = vadd.f32 %v5415_v31, %v5255_v36  ;;  %v9411_v42 = vadd.f32 %v5414_v26, %v10305_v37  ;;  %v5390_v37 = vadd.f32 %v5389_v56, %v5239_v22  ;;  %v5511_v33 = vmax.f32 %v9414_v14, 0.0  ;;  %v5215_v21 = vpop.permute.xlu1 %5214 }
 0x6d5   :  { %v5380_v56 = vadd.f32 %v5379_v51, %v5231_v10  ;;  %v5372_v26 = vadd.f32 %v9399_v48, %v5227_v61  ;;  %v9452_v31 = vadd.f32 %v5384_v9, %v10316_v50  ;;  %v5211_v10 = vpop.permute.xlu0 %5210  ;;  %v5362_v61 = vadd.f32 %v9381_v4, %v5219_v57 }
 0x6d6   :  { %v9417_v35 = vadd.f32 %v5416_v13, %v10306_v24  ;;  %v5512_v19 = vmax.f32 %v9411_v42, 0.0  ;;  %v5386_v13 = vadd.f32 %v5385_v6, %v5235_v34  ;;  %v10307_v24 = vld [vmem:[#allocation42_spill] sm:$0xff]  ;;  %v5509_v6 = vmax.f32 %v9423_v23, 0.0  ;;  %v10314_v34 = vld [vmem:[#allocation41_spill] sm:$0xff] }
 0x6d7   :  { %v9431_v43 = vadd.f32 %v5398_v59, %v10307_v24  ;;  %v10312_v59 = vld [vmem:[#allocation44_spill] sm:$0xff]  ;;  %10317 = vst [vmem:[#allocation64_spill] sm:$0xff] %v9452_v31  ;;  %v5356_v38 = vadd.f32 %v9365_v17, %v5215_v21  ;;  %v5348_v50 = vadd.f32 %v9335_v25, %v5211_v10 }
 0x6d8   :  { %v5513_v36 = vmax.f32 %v9417_v35, 0.0  ;;  %v9443_v22 = vadd.f32 %v5390_v37, %v10312_v59  ;;  %v9447_v40 = vadd.f32 %v5386_v13, %v10314_v34  ;;  %v10320_v13 = vld [vmem:[#allocation48_spill] sm:$0xff]  ;;  %v5354_v59 = vadd.f32 %v9351_v47, %v5215_v21 }
 0x6d9   :  { %v5507_v51 = vmax.f32 %v9431_v43, 0.0  ;;  %v9462_v24 = vadd.f32 %v5378_v60, %v10320_v13  ;;  %v5203_v57 = vpop.permute.xlu0 %5202  ;;  %v5350_v34 = vadd.f32 %v9349_v32, %v5211_v10  ;;  %v10336_v13 = vld [vmem:[#allocation49_spill] sm:$0xff] }
 0x6da   :  { %5578 = vmatprep.subr.mxu0 %v5513_v36  ;;  %10313 = vst [vmem:[#allocation81_spill] sm:$0xff] %v9443_v22  ;;  %10315 = vst [vmem:[#allocation67_spill] sm:$0xff] %v9447_v40  ;;  %v10318_v36 = vld [vmem:[#allocation50_spill] sm:$0xff]  ;;  %v5504_v48 = vmax.f32 %v9443_v22, 0.0  ;;  %v5503_v2 = vmax.f32 %v9447_v40, 0.0 }
 0x6db   :  { %5579 = vmatpush1.msra.mxu0 %v5512_v19  ;;  %v9457_v37 = vadd.f32 %v5380_v56, %v10318_v36  ;;  %v5366_v19 = vadd.f32 %v9383_v63, %v5223_v11  ;;  %10321 = vst [vmem:[#allocation78_spill] sm:$0xff] %v9462_v24  ;;  %v5502_v63 = vmax.f32 %v9452_v31, 0.0  ;;  %v5207_v11 = vpop.permute.xlu1 %5206  ;;  %v5500_v15 = vmax.f32 %v9462_v24, 0.0  ;;  %v10334_v36 = vld [vmem:[#allocation34_spill] sm:$0xff] }
 0x6dc   :  { %5580 = vmatprep.subr.mxu0 %v5511_v33  ;;  %v10322_v33 = vld [vmem:[#allocation45_spill] sm:$0xff]  ;;  %v5344_v21 = vadd.f32 %v9333_v20, %v5207_v11 }
 0x6dd   :  { %5581 = vmatpush1.msra.mxu0 %v5510_v18  ;;  %10319 = vst [vmem:[#allocation79_spill] sm:$0xff] %v9457_v37  ;;  %v9467_v9 = vadd.f32 %v5374_v49, %v10322_v33  ;;  %v10324_v18 = vld [vmem:[#allocation43_spill] sm:$0xff]  ;;  %v5501_v4 = vmax.f32 %v9457_v37, 0.0 }
 0x6de   :  { %5582 = vmatprep.subr.mxu0 %v5509_v6  ;;  %v9472_v56 = vadd.f32 %v5372_v26, %v10324_v18  ;;  %v10326_v6 = vld [vmem:[#allocation68_spill] sm:$0xff]  ;;  %v10338_v33 = vld [vmem:[#allocation47_spill] sm:$0xff]  ;;  %v10340_v18 = vld [vmem:[#allocation54_spill] sm:$0xff] }
 0x6df   :  { %5583 = vmatpush1.msra.mxu0 %v5508_v55  ;;  %10323 = vst [vmem:[#allocation88_spill] sm:$0xff] %v9467_v9  ;;  %v9477_v60 = vadd.f32 %v5368_v29, %v10326_v6  ;;  %v10328_v55 = vld [vmem:[#allocation35_spill] sm:$0xff]  ;;  %v5499_v17 = vmax.f32 %v9467_v9, 0.0  ;;  %v5199_v10 = vpop.permute.xlu1 %5198  ;;  %v10342_v6 = vld [vmem:[#allocation20_spill] sm:$0xff] }
 0x6e0   :  { %5584 = vmatprep.subr.mxu0 %v5507_v51  ;;  %10325 = vst [vmem:[#allocation77_spill] sm:$0xff] %v9472_v56  ;;  %v9482_v49 = vadd.f32 %v5366_v19, %v10328_v55  ;;  %v10330_v51 = vld [vmem:[#allocation32_spill] sm:$0xff]  ;;  %v5498_v47 = vmax.f32 %v9472_v56, 0.0  ;;  %v5342_v19 = vadd.f32 %v9319_v27, %v5207_v11  ;;  %v5195_v11 = vpop.permute.xlu0 %5194 }
 0x6e1   :  { %5585 = vmatpush1.msra.mxu0 %v5506_v30  ;;  %10327 = vst [vmem:[#allocation75_spill] sm:$0xff] %v9477_v60  ;;  %v9487_v26 = vadd.f32 %v5362_v61, %v10330_v51  ;;  %v10332_v30 = vld [vmem:[#allocation37_spill] sm:$0xff]  ;;  %v5497_v32 = vmax.f32 %v9477_v60, 0.0  ;;  %v5338_v61 = vadd.f32 %v9317_v44, %v5203_v57  ;;  %v10344_v55 = vld [vmem:[#allocation8_spill] sm:$0xff] }
 0x6e2   :  { %5586 = vmatprep.subr.mxu0 %v5505_v12  ;;  %10329 = vst [vmem:[#allocation87_spill] sm:$0xff] %v9482_v49  ;;  %v9492_v29 = vadd.f32 %v5360_v28, %v10332_v30  ;;  %v9497_v12 = vadd.f32 %v5356_v38, %v10334_v36  ;;  %v5496_v25 = vmax.f32 %v9482_v49, 0.0  ;;  %v5336_v28 = vadd.f32 %v9303_v62, %v5203_v57  ;;  %v10352_v36 = vld [vmem:[#allocation61_spill] sm:$0xff] }
 0x6e3   :  { %5587 = vmatpush1.msra.mxu0 %v5504_v48  ;;  %10331 = vst [vmem:[#allocation85_spill] sm:$0xff] %v9487_v26  ;;  %v9502_v48 = vadd.f32 %v5354_v59, %v10336_v13  ;;  %v5495_v20 = vmax.f32 %v9487_v26, 0.0  ;;  %v5332_v38 = vadd.f32 %v9301_v58, %v5199_v10  ;;  %v5330_v59 = vadd.f32 %v9299_v16, %v5199_v10  ;;  %v10354_v13 = vld [vmem:[#allocation63_spill] sm:$0xff]  ;;  %v10356_v10 = vld [vmem:[#allocation52_spill] sm:$0xff] }
 0x6e4   :  { %5588 = vmatprep.subr.mxu0 %v5503_v2  ;;  %10333 = vst [vmem:[#allocation73_spill] sm:$0xff] %v9492_v29  ;;  %10335 = vst [vmem:[#allocation71_spill] sm:$0xff] %v9497_v12  ;;  %v9507_v2 = vadd.f32 %v5350_v34, %v10338_v33  ;;  %v5494_v27 = vmax.f32 %v9492_v29, 0.0  ;;  %v5493_v44 = vmax.f32 %v9497_v12, 0.0  ;;  %v5326_v57 = vadd.f32 %v9297_v5, %v5195_v11  ;;  %v10346_v34 = vld [vmem:[#allocation62_spill] sm:$0xff] }
 0x6e5   :  { %5589 = vmatpush1.msra.mxu0 %v5502_v63  ;;  %10337 = vst [vmem:[#allocation76_spill] sm:$0xff] %v9502_v48  ;;  %v9512_v63 = vadd.f32 %v5348_v50, %v10340_v18  ;;  %v5492_v62 = vmax.f32 %v9502_v48, 0.0  ;;  %v9527_v51 = vadd.f32 %v5338_v61, %v10346_v34  ;;  %v10348_v50 = vld [vmem:[#allocation60_spill] sm:$0xff]  ;;  %v5458_v34 = vld [vmem:[%s9855_s7 + $0x40] sm:$0xff] }
 0x6e6   :  { %5590 = vmatprep.subr.mxu0 %v5501_v4  ;;  %10339 = vst [vmem:[#allocation74_spill] sm:$0xff] %v9507_v2  ;;  %v9517_v4 = vadd.f32 %v5344_v21, %v10342_v6  ;;  %v5491_v58 = vmax.f32 %v9507_v2, 0.0  ;;  %v9532_v30 = vadd.f32 %v5336_v28, %v10348_v50  ;;  %v5452_v6 = vld [vmem:[%s9855_s7 + $0x10] sm:$0xff]  ;;  %v5461_v50 = vld [vmem:[%s9855_s7 + $0x58] sm:$0xff] }
 0x6e7   :  { %5591 = vmatpush1.msra.mxu0 %v5500_v15  ;;  %10341 = vst [vmem:[#allocation72_spill] sm:$0xff] %v9512_v63  ;;  %v9522_v15 = vadd.f32 %v5342_v19, %v10344_v55  ;;  %10347 = vst [vmem:[#allocation51_spill] sm:$0xff] %v9527_v51  ;;  %v5490_v16 = vmax.f32 %v9512_v63, 0.0  ;;  %v5455_v55 = vld [vmem:[%s9855_s7 + $0x28] sm:$0xff] }
 0x6e8   :  { %5592 = vmatprep.subr.mxu0 %v5499_v17  ;;  %10343 = vst [vmem:[#allocation70_spill] sm:$0xff] %v9517_v4  ;;  %v5324_v17 = vadd.f32 %v9295_v45, %v5195_v11  ;;  %10349 = vst [vmem:[#allocation31_spill] sm:$0xff] %v9532_v30  ;;  %v5489_v5 = vmax.f32 %v9517_v4, 0.0  ;;  %v9544_v45 = vadd.f32 %v5326_v57, %v10354_v13  ;;  %v5486_v33 = vmax.f32 %v9532_v30, 0.0  ;;  %v5450_v11 = vld [vmem:[%s9855_s7] sm:$0xff]  ;;  %v5457_v57 = vld [vmem:[%s9855_s7 + $0x38] sm:$0xff] }
 0x6e9   :  { %5593 = vmatpush1.msra.mxu0 %v5498_v47  ;;  %10345 = vst [vmem:[#allocation53_spill] sm:$0xff] %v9522_v15  ;;  %v10350_v47 = vld [vmem:[#allocation55_spill] sm:$0xff]  ;;  %v5488_v19 = vmax.f32 %v9522_v15, 0.0 }
 0x6ea   :  { %5594 = vmatprep.subr.mxu0 %v5497_v32  ;;  %v9536_v21 = vadd.f32 %v5332_v38, %v10350_v47  ;;  %v9540_v32 = vadd.f32 %v5330_v59, %v10352_v36  ;;  %10355 = vst [vmem:[#allocation94_spill] sm:$0xff] %v9544_v45  ;;  %v9548_v61 = vadd.f32 %v5324_v17, %v10356_v10  ;;  %v5483_v18 = vmax.f32 %v9544_v45, 0.0  ;;  %v5451_v38 = vld [vmem:[%s9855_s7 + $0x8] sm:$0xff]  ;;  %v5454_v59 = vld [vmem:[%s9855_s7 + $0x20] sm:$0xff]  ;;  %v5460_v17 = vld [vmem:[%s9855_s7 + $0x50] sm:$0xff]  ;;  %v5572_v45 = vpop.permute.xlu0 %5571 }
 0x6eb   :  { %5595 = vmatpush1.msra.mxu0 %v5496_v25  ;;  %v5487_v25 = vmax.f32 %v9527_v51, 0.0  ;;  %v5463_v47 = vld [vmem:[%s9855_s7 + $0x68] sm:$0xff]  ;;  %v5465_v36 = vld [vmem:[%s9855_s7 + $0x78] sm:$0xff] }
 0x6ec   :  { %5596 = vmatprep.subr.mxu0 %v5495_v20  ;;  %10351 = vst [vmem:[#allocation22_spill] sm:$0xff] %v9536_v21  ;;  %10353 = vst [vmem:[#allocation4_spill] sm:$0xff] %v9540_v32  ;;  %v5485_v20 = vmax.f32 %v9536_v21, 0.0  ;;  %v5484_v28 = vmax.f32 %v9540_v32, 0.0 }
 0x6ed   :  { %5597 = vmatpush1.msra.mxu0 %v5494_v27  ;;  %10357 = vst [vmem:[#allocation6_spill] sm:$0xff] %v9548_v61  ;;  %v5482_v27 = vmax.f32 %v9548_v61, 0.0 }
 0x6ee   :  { %5598 = vmatprep.subr.mxu0 %v5493_v44  ;;  %v5453_v44 = vld [vmem:[%s9855_s7 + $0x18] sm:$0xff] }
 0x6ef   :  { %5599 = vmatpush1.msra.mxu0 %v5492_v62  ;;  %v5456_v62 = vld [vmem:[%s9855_s7 + $0x30] sm:$0xff] }
 0x6f0   :  { %5600 = vmatprep.subr.mxu0 %v5491_v58  ;;  %v5459_v58 = vld [vmem:[%s9855_s7 + $0x48] sm:$0xff] }
 0x6f1   :  { %5601 = vmatpush1.msra.mxu0 %v5490_v16  ;;  %v5462_v16 = vld [vmem:[%s9855_s7 + $0x60] sm:$0xff] }
 0x6f2   :  { %5602 = vmatprep.subr.mxu0 %v5489_v5  ;;  %v5464_v5 = vld [vmem:[%s9855_s7 + $0x70] sm:$0xff] }
 0x6f3   :  { %5603 = vmatpush1.msra.mxu0 %v5488_v19 }
 0x6f4   :  { %5604 = vmatprep.subr.mxu0 %v5487_v25 }
 0x6f5   :  { %5605 = vmatpush1.msra.mxu0 %v5486_v33 }
 0x6f6   :  { %5606 = vmatprep.subr.mxu0 %v5485_v20  ;;  %v6401_v20 = vmov 6  }
 0x6f7   :  { %5607 = vmatpush1.msra.mxu0 %v5484_v28  ;;  %6330 = vset.pattern.permute.xlu0 %v6401_v20 }
 0x6f8   :  { %5608 = vmatprep.subr.mxu0 %v5483_v18  ;;  %6331 = vset.pattern.permute.xlu1 %v6401_v20 }
 0x6f9   :  { %5609 = vmatpush1.msra.mxu0 %v5482_v27  ;;  %5832 = vperm.xlu0 %6330, %v9308_v8  }
 0x6fa   :  { %5643 = vmatmul.mubr.f32.vlgmr.msra.gmra.mxu0 %v5450_v11  ;;  %5828 = vperm.xlu1 %6331, %v9314_v0   ;;  %v10358_v0 = vld [vmem:[#allocation56_spill] sm:$0xff] }
 0x6fb   :  { %5648 = vmatprep.mubr.f32.mxu0 %v10281_v54 }
 0x6fd   :  { %5820 = vperm.xlu0 %6330, %v9340_v41  }
 0x6fe   :  { %5649 = vmatmul.mubr.f32.gmra.mxu0 %v5451_v38  ;;  %5824 = vperm.xlu1 %6331, %v9324_v3   ;;  %v10360_v3 = vld [vmem:[#allocation57_spill] sm:$0xff] }
 0x6ff   :  { %5654 = vmatprep.mubr.f32.mxu0 %v10281_v54 }
 0x701   :  { %5812 = vperm.xlu0 %6330, %v9356_v46  }
 0x702   :  { %5655 = vmatmul.mubr.f32.gmra.mxu0 %v5452_v6  ;;  %5816 = vperm.xlu1 %6331, %v9330_v39   ;;  %v10362_v39 = vld [vmem:[#allocation82_spill] sm:$0xff] }
 0x703   :  { %5660 = vmatprep.mubr.f32.mxu0 %v10281_v54 }
 0x705   :  { %5804 = vperm.xlu0 %6330, %v10358_v0   ;;  %v5576_v0 = vpop.permute.xlu1 %5575 }
 0x706   :  { %5661 = vmatmul.mubr.f32.gmra.mxu0 %v5453_v44  ;;  %v10359_v44 = vld [vmem:[#allocation84_spill] sm:$0xff] }
 0x707   :  { %5666 = vmatprep.mubr.f32.mxu0 %v10281_v54  ;;  %5808 = vperm.xlu1 %6331, %v10359_v44  }
 0x709   :  { %5796 = vperm.xlu0 %6330, %v10360_v3   ;;  %v10368_v3 = vmov 0  }
 0x70a   :  { %5667 = vmatmul.mubr.f32.gmra.mxu0 %v5454_v59 }
 0x70b   :  { %5672 = vmatprep.mubr.f32.mxu0 %v10281_v54 }
 0x70d   :  { %5788 = vperm.xlu0 %6330, %v10362_v39  }
 0x70e   :  { %5673 = vmatmul.mubr.f32.gmra.mxu0 %v5455_v55  ;;  %v10361_v55 = vld [vmem:[#allocation58_spill] sm:$0xff] }
 0x70f   :  { %5678 = vmatprep.mubr.f32.mxu0 %v10281_v54  ;;  %5800 = vperm.xlu1 %6331, %v10361_v55  }
 0x712   :  { %5679 = vmatmul.mubr.f32.gmra.mxu0 %v5456_v62 }
 0x713   :  { %5684 = vmatprep.mubr.f32.mxu0 %v10281_v54 }
 0x716   :  { %5685 = vmatmul.mubr.f32.gmra.mxu0 %v5457_v57  ;;  %v10363_v57 = vld [vmem:[#allocation59_spill] sm:$0xff] }
 0x717   :  { %5690 = vmatprep.mubr.f32.mxu0 %v10281_v54  ;;  %5792 = vperm.xlu1 %6331, %v10363_v57   ;;  %v5568_v57 = vpop.permute.xlu1 %5567 }
 0x71a   :  { %5691 = vmatmul.mubr.f32.gmra.mxu0 %v5458_v34 }
 0x71b   :  { %5696 = vmatprep.mubr.f32.mxu0 %v10281_v54  ;;  %v5564_v32 = vpop.permute.xlu1 %5563 }
 0x71e   :  { %5697 = vmatmul.mubr.f32.gmra.mxu0 %v5459_v58 }
 0x71f   :  { %5702 = vmatprep.mubr.f32.mxu0 %v10281_v54 }
 0x722   :  { %5703 = vmatmul.mubr.f32.gmra.mxu0 %v5460_v17  ;;  %v10364_v17 = vld [vmem:[#allocation69_spill] sm:$0xff] }
 0x723   :  { %5708 = vmatprep.mubr.f32.mxu0 %v10281_v54  ;;  %5780 = vperm.xlu0 %6330, %v10364_v17  }
 0x726   :  { %5709 = vmatmul.mubr.f32.gmra.mxu0 %v5461_v50  ;;  %v10365_v50 = vld [vmem:[#allocation65_spill] sm:$0xff] }
 0x727   :  { %5714 = vmatprep.mubr.f32.mxu0 %v10281_v54  ;;  %5784 = vperm.xlu1 %6331, %v10365_v50  }
 0x72a   :  { %5715 = vmatmul.mubr.f32.gmra.mxu0 %v5462_v16 }
 0x72b   :  { %5720 = vmatprep.mubr.f32.mxu0 %v10281_v54 }
 0x72e   :  { %5721 = vmatmul.mubr.f32.gmra.mxu0 %v5463_v47 }
 0x72f   :  { %5726 = vmatprep.mubr.f32.mxu0 %v10281_v54 }
 0x732   :  { %5727 = vmatmul.mubr.f32.gmra.mxu0 %v5464_v5  ;;  %v10366_v5 = vld [vmem:[#allocation66_spill] sm:$0xff] }
 0x733   :  { %5732 = vmatprep.mubr.f32.mxu0 %v10281_v54  ;;  %5772 = vperm.xlu0 %6330, %v10366_v5   ;;  %v5560_v5 = vpop.permute.xlu0 %5559 }
 0x736   :  { %5733 = vmatmul.mubr.f32.gmra.mxu0 %v5465_v36  ;;  %v10367_v36 = vld [vmem:[#allocation86_spill] sm:$0xff] }
 0x737   :  { %6135 = vmatprep.mubr.f32.mxu0 %v10281_v54  ;;  %5776 = vperm.xlu1 %6331, %v10367_v36   ;;  %v5556_v36 = vpop.permute.xlu1 %5555  ;;  %v5552_v2 = vpop.permute.xlu0 %5551 }
 0x738   :  { %6333 = vset.pattern.permute.xlu0 %v10368_v3 }
 0x73b   :  { %6332 = vset.pattern.permute.xlu1 %v10368_v3  ;;  %v5548_v29 = vpop.permute.xlu1 %5547  ;;  %v5544_v40 = vpop.permute.xlu0 %5543 }
 0x7ba   :  { %v9619_v19 = vpop.f32.mrf.mxu0 }
 0x7bc   :  { %v9621_v13 = vpop.f32.mrf.mxu0 }
 0x7be   :  { %v9623_v25 = vpop.f32.mrf.mxu0 }
 0x7c0   :  { %v9625_v10 = vpop.f32.mrf.mxu0 }
 0x7c2   :  { %v9627_v33 = vpop.f32.mrf.mxu0 }
 0x7c4   :  { %v9629_v28 = vpop.f32.mrf.mxu0 }
 0x7c6   :  { %v9633_v18 = vpop.f32.mrf.mxu0 }
 0x7c8   :  { %v9635_v27 = vpop.f32.mrf.mxu0 }
 0x7ca   :  { %v9639_v11 = vpop.f32.mrf.mxu0 }
 0x7cc   :  { %v9641_v38 = vpop.f32.mrf.mxu0 }
 0x7ce   :  { %v9645_v6 = vpop.f32.mrf.mxu0 }
 0x7d0   :  { %v9647_v8 = vpop.f32.mrf.mxu0 }
 0x7d2   :  { %v9651_v59 = vpop.f32.mrf.mxu0 }
 0x7d4   :  { %v9653_v41 = vpop.f32.mrf.mxu0 }
 0x7d6   :  { %v9657_v62 = vpop.f32.mrf.mxu0 }
 0x7d8   :  { %v9659_v46 = vpop.f32.mrf.mxu0 }
 0x7da   :  { %v9663_v34 = vpop.f32.mrf.mxu0 }
 0x7dc   :  { %v9665_v58 = vpop.f32.mrf.mxu0 }
 0x7de   :  { %v5698_v16 = vpop.f32.mrf.mxu0 }
 0x7e0   :  { %v5700_v47 = vpop.f32.mrf.mxu0 }
 0x7e2   :  { %v5704_v20 = vpop.f32.mrf.mxu0 }
 0x7e4   :  { %v5706_v44 = vpop.f32.mrf.mxu0 }
 0x7e6   :  { %v5710_v55 = vpop.f32.mrf.mxu0 }
 0x7e8   :  { %v5712_v39 = vpop.f32.mrf.mxu0 }
 0x7e9   :  { %v5713_v22 = vadd.f32 %v5712_v39, %v5560_v5 }
 0x7ea   :  { %v5716_v61 = vpop.f32.mrf.mxu0 }
 0x7eb   :  { %v5717_v37 = vadd.f32 %v5716_v61, %v5564_v32 }
 0x7ec   :  { %v5718_v17 = vpop.f32.mrf.mxu0 }
 0x7ed   :  { %v5719_v9 = vadd.f32 %v5718_v17, %v5564_v32 }
 0x7ee   :  { %v5722_v50 = vpop.f32.mrf.mxu0 }
 0x7ef   :  { %v5723_v60 = vadd.f32 %v5722_v50, %v5568_v57 }
 0x7f0   :  { %v5724_v21 = vpop.f32.mrf.mxu0 }
 0x7f1   :  { %v5725_v26 = vadd.f32 %v5724_v21, %v5568_v57  ;;  %v5765_v53 = vmax.f32 %v5723_v60, 0.0  ;;  %v5763_v21 = vmax.f32 %v5717_v37, 0.0 }
 0x7f2   :  { %v5728_v30 = vpop.f32.mrf.mxu0 }
 0x7f3   :  { %v5729_v3 = vadd.f32 %v5728_v30, %v5572_v45  ;;  %v5766_v1 = vmax.f32 %v5725_v26, 0.0  ;;  %v5764_v30 = vmax.f32 %v5719_v9, 0.0  ;;  %v5695_v26 = vadd.f32 %v9665_v58, %v5548_v29 }
 0x7f4   :  { %v5730_v51 = vpop.f32.mrf.mxu0 }
 0x7f5   :  { %v5731_v48 = vadd.f32 %v5730_v51, %v5572_v45  ;;  %v5767_v31 = vmax.f32 %v5729_v3, 0.0  ;;  %v5707_v51 = vadd.f32 %v5706_v44, %v5556_v36  ;;  %v5756_v45 = vmax.f32 %v5695_v26, 0.0  ;;  %v5477_v26 = vld [vmem:[%s9856_s8 + $0x58] sm:$0xff] }
 0x7f6   :  { %v5734_v15 = vpop.f32.mrf.mxu0 }
 0x7f7   :  { %v5735_v4 = vadd.f32 %v5734_v15, %v5576_v0  ;;  %v5768_v24 = vmax.f32 %v5731_v48, 0.0  ;;  %v5711_v15 = vadd.f32 %v5710_v55, %v5560_v5  ;;  %v5762_v48 = vmax.f32 %v5713_v22, 0.0 }
 0x7f8   :  { %v5736_v63 = vpop.f32.mrf.mxu0 }
 0x7f9   :  { %v5737_v12 = vadd.f32 %v5736_v63, %v5576_v0  ;;  %v5769_v56 = vmax.f32 %v5735_v4, 0.0  ;;  %v5540_v63 = vpop.permute.xlu1 %5539  ;;  %v5701_v4 = vadd.f32 %v5700_v47, %v5552_v2  ;;  %v5761_v32 = vmax.f32 %v5711_v15, 0.0 }
 0x7fa   :  { %v5681_v61 = vadd.f32 %v9651_v59, %v5540_v63 }
 0x7fb   :  { %v5770_v49 = vmax.f32 %v5737_v12, 0.0  ;;  %v5705_v12 = vadd.f32 %v5704_v20, %v5556_v36  ;;  %v5758_v37 = vmax.f32 %v5701_v4, 0.0  ;;  %v5472_v4 = vld [vmem:[%s9856_s8 + $0x30] sm:$0xff] }
 0x7fc   :  { %v5751_v0 = vmax.f32 %v5681_v61, 0.0 }
 0x7fd   :  { %5835 = vmatprep.subr.mxu1 %v5770_v49  ;;  %v5699_v49 = vadd.f32 %v5698_v16, %v5552_v2  ;;  %v5759_v60 = vmax.f32 %v5705_v12, 0.0  ;;  %v5532_v9 = vpop.permute.xlu1 %5531  ;;  %v5683_v2 = vadd.f32 %v9653_v41, %v5540_v63  ;;  %v5470_v12 = vld [vmem:[%s9856_s8 + $0x20] sm:$0xff] }
 0x7fe   :  { %5836 = vmatpush1.msra.mxu1 %v5769_v56  ;;  %v5536_v56 = vpop.permute.xlu0 %5535  ;;  %v5669_v41 = vadd.f32 %v9639_v11, %v5532_v9 }
 0x7ff   :  { %5837 = vmatprep.subr.mxu1 %v5768_v24  ;;  %v5760_v24 = vmax.f32 %v5707_v51, 0.0  ;;  %v5757_v22 = vmax.f32 %v5699_v49, 0.0  ;;  %v5752_v20 = vmax.f32 %v5683_v2, 0.0  ;;  %v5474_v49 = vld [vmem:[%s9856_s8 + $0x40] sm:$0xff] }
 0x800   :  { %5838 = vmatpush1.msra.mxu1 %v5767_v31  ;;  %v5693_v31 = vadd.f32 %v9663_v34, %v5548_v29  ;;  %v5677_v34 = vadd.f32 %v9647_v8, %v5536_v56  ;;  %v5747_v17 = vmax.f32 %v5669_v41, 0.0 }
 0x801   :  { %5839 = vmatprep.subr.mxu1 %v5766_v1  ;;  %v5689_v1 = vadd.f32 %v9659_v46, %v5544_v40  ;;  %v5675_v46 = vadd.f32 %v9645_v6, %v5536_v56  ;;  %v5476_v56 = vld [vmem:[%s9856_s8 + $0x50] sm:$0xff] }
 0x802   :  { %5840 = vmatpush1.msra.mxu1 %v5765_v53  ;;  %v5687_v53 = vadd.f32 %v9657_v62, %v5544_v40  ;;  %v5755_v58 = vmax.f32 %v5693_v31, 0.0  ;;  %v5528_v29 = vpop.permute.xlu0 %5527  ;;  %v5524_v40 = vpop.permute.xlu1 %5523  ;;  %v5671_v62 = vadd.f32 %v9641_v38, %v5532_v9  ;;  %v5750_v44 = vmax.f32 %v5677_v34, 0.0  ;;  %v5479_v31 = vld [vmem:[%s9856_s8 + $0x68] sm:$0xff]  ;;  %v5481_v9 = vld [vmem:[%s9856_s8 + $0x78] sm:$0xff] }
 0x803   :  { %5841 = vmatprep.subr.mxu1 %v5764_v30  ;;  %v5754_v16 = vmax.f32 %v5689_v1, 0.0  ;;  %v5665_v59 = vadd.f32 %v9635_v27, %v5528_v29  ;;  %v5663_v8 = vadd.f32 %v9633_v18, %v5528_v29  ;;  %v5749_v55 = vmax.f32 %v5675_v46, 0.0  ;;  %v5469_v30 = vld [vmem:[%s9856_s8 + $0x18] sm:$0xff] }
 0x804   :  { %5842 = vmatpush1.msra.mxu1 %v5763_v21  ;;  %v5753_v47 = vmax.f32 %v5687_v53, 0.0  ;;  %v5659_v39 = vadd.f32 %v9629_v28, %v5524_v40  ;;  %v5748_v57 = vmax.f32 %v5671_v62, 0.0  ;;  %v5657_v38 = vadd.f32 %v9627_v33, %v5524_v40  ;;  %v5471_v21 = vld [vmem:[%s9856_s8 + $0x28] sm:$0xff] }
 0x805   :  { %5843 = vmatprep.subr.mxu1 %v5762_v48  ;;  %v5746_v5 = vmax.f32 %v5665_v59, 0.0  ;;  %v5745_v36 = vmax.f32 %v5663_v8, 0.0  ;;  %v5473_v48 = vld [vmem:[%s9856_s8 + $0x38] sm:$0xff]  ;;  %v17_v1 = vstv %s9857_s11 }
 0x806   :  { %5844 = vmatpush1.msra.mxu1 %v5761_v32  ;;  %v5520_v6 = vpop.permute.xlu0 %5519  ;;  %v5516_v11 = vpop.permute.xlu1 %5515  ;;  %v5744_v3 = vmax.f32 %v5659_v39, 0.0  ;;  %v5743_v15 = vmax.f32 %v5657_v38, 0.0  ;;  %v5475_v32 = vld [vmem:[%s9856_s8 + $0x48] sm:$0xff]  ;;  %18 = vst [vmem:[#allocation2] sm:$0x1] %v17_v1 }
 0x807   :  { %5845 = vmatprep.subr.mxu1 %v5760_v24  ;;  %v5653_v50 = vadd.f32 %v9625_v10, %v5520_v6  ;;  %v5651_v27 = vadd.f32 %v9623_v25, %v5520_v6  ;;  %v5647_v18 = vadd.f32 %v9621_v13, %v5516_v11  ;;  %v5645_v28 = vadd.f32 %v9619_v19, %v5516_v11  ;;  %v5466_v25 = vld [vmem:[%s9856_s8] sm:$0xff]  ;;  %v5467_v19 = vld [vmem:[%s9856_s8 + $0x8] sm:$0xff]  ;;  %v5468_v13 = vld [vmem:[%s9856_s8 + $0x10] sm:$0xff] }
 0x808   :  { %5846 = vmatpush1.msra.mxu1 %v5759_v60  ;;  %v5478_v24 = vld [vmem:[%s9856_s8 + $0x60] sm:$0xff]  ;;  %v5480_v60 = vld [vmem:[%s9856_s8 + $0x70] sm:$0xff] }
 0x809   :  { %5847 = vmatprep.subr.mxu1 %v5758_v37  ;;  %v5742_v33 = vmax.f32 %v5653_v50, 0.0  ;;  %v5741_v63 = vmax.f32 %v5651_v27, 0.0  ;;  %v5740_v51 = vmax.f32 %v5647_v18, 0.0  ;;  %v5739_v10 = vmax.f32 %v5645_v28, 0.0 }
 0x80a   :  { %5848 = vmatpush1.msra.mxu1 %v5757_v22  ;;  %v5829_v39 = vpop.permute.xlu1 %5828  ;;  %v5833_v38 = vpop.permute.xlu0 %5832 }
 0x80b   :  { %5849 = vmatprep.subr.mxu1 %v5756_v45 }
 0x80c   :  { %5850 = vmatpush1.msra.mxu1 %v5755_v58 }
 0x80d   :  { %5851 = vmatprep.subr.mxu1 %v5754_v16  ;;  %v6061_v37 = vld [vmem:[#allocation2] sm:$0x1] }
 0x80e   :  { %5852 = vmatpush1.msra.mxu1 %v5753_v47  ;;  %6064 = vperm.xlu1 %6332, %v6061_v37   ;;  %v5825_v50 = vpop.permute.xlu1 %5824  ;;  %v5821_v27 = vpop.permute.xlu0 %5820 }
 0x80f   :  { %5853 = vmatprep.subr.mxu1 %v5752_v20 }
 0x810   :  { %5854 = vmatpush1.msra.mxu1 %v5751_v0 }
 0x811   :  { %5855 = vmatprep.subr.mxu1 %v5750_v44 }
 0x812   :  { %5856 = vmatpush1.msra.mxu1 %v5749_v55 }
 0x813   :  { %5857 = vmatprep.subr.mxu1 %v5748_v57 }
 0x814   :  { %5858 = vmatpush1.msra.mxu1 %v5747_v17 }
 0x815   :  { %5859 = vmatprep.subr.mxu1 %v5746_v5 }
 0x816   :  { %5860 = vmatpush1.msra.mxu1 %v5745_v36 }
 0x817   :  { %5861 = vmatprep.subr.mxu1 %v5744_v3  ;;  %v5817_v3 = vpop.permute.xlu1 %5816 }
 0x818   :  { %5862 = vmatpush1.msra.mxu1 %v5743_v15  ;;  %v5813_v15 = vpop.permute.xlu0 %5812 }
 0x819   :  { %5863 = vmatprep.subr.mxu1 %v5742_v33 }
 0x81a   :  { %5864 = vmatpush1.msra.mxu1 %v5741_v63 }
 0x81b   :  { %5865 = vmatprep.subr.mxu1 %v5740_v51  ;;  %v5809_v51 = vpop.permute.xlu1 %5808 }
 0x81c   :  { %5866 = vmatpush1.msra.mxu1 %v5739_v10 }
 0x81d   :  { %5900 = vmatmul.mubr.f32.vlgmr.msra.gmra.mxu1 %v5466_v25 }
 0x81e   :  { %5905 = vmatprep.mubr.f32.mxu1 %v10281_v54 }
 0x821   :  { %5906 = vmatmul.mubr.f32.gmra.mxu1 %v5467_v19 }
 0x822   :  { %5911 = vmatprep.mubr.f32.mxu1 %v10281_v54 }
 0x825   :  { %5912 = vmatmul.mubr.f32.gmra.mxu1 %v5468_v13 }
 0x826   :  { %5917 = vmatprep.mubr.f32.mxu1 %v10281_v54 }
 0x829   :  { %5918 = vmatmul.mubr.f32.gmra.mxu1 %v5469_v30  ;;  %v5805_v30 = vpop.permute.xlu0 %5804 }
 0x82a   :  { %5923 = vmatprep.mubr.f32.mxu1 %v10281_v54 }
 0x82d   :  { %5924 = vmatmul.mubr.f32.gmra.mxu1 %v5470_v12 }
 0x82e   :  { %5929 = vmatprep.mubr.f32.mxu1 %v10281_v54 }
 0x831   :  { %5930 = vmatmul.mubr.f32.gmra.mxu1 %v5471_v21 }
 0x832   :  { %5935 = vmatprep.mubr.f32.mxu1 %v10281_v54 }
 0x835   :  { %5936 = vmatmul.mubr.f32.gmra.mxu1 %v5472_v4 }
 0x836   :  { %5941 = vmatprep.mubr.f32.mxu1 %v10281_v54 }
 0x839   :  { %5942 = vmatmul.mubr.f32.gmra.mxu1 %v5473_v48 }
 0x83a   :  { %5947 = vmatprep.mubr.f32.mxu1 %v10281_v54 }
 0x83d   :  { %5948 = vmatmul.mubr.f32.gmra.mxu1 %v5474_v49 }
 0x83e   :  { %5953 = vmatprep.mubr.f32.mxu1 %v10281_v54 }
 0x841   :  { %5954 = vmatmul.mubr.f32.gmra.mxu1 %v5475_v32 }
 0x842   :  { %5959 = vmatprep.mubr.f32.mxu1 %v10281_v54 }
 0x845   :  { %5960 = vmatmul.mubr.f32.gmra.mxu1 %v5476_v56 }
 0x846   :  { %5965 = vmatprep.mubr.f32.mxu1 %v10281_v54 }
 0x849   :  { %5966 = vmatmul.mubr.f32.gmra.mxu1 %v5477_v26 }
 0x84a   :  { %5971 = vmatprep.mubr.f32.mxu1 %v10281_v54 }
 0x84d   :  { %5972 = vmatmul.mubr.f32.gmra.mxu1 %v5478_v24 }
 0x84e   :  { %5977 = vmatprep.mubr.f32.mxu1 %v10281_v54 }
 0x851   :  { %5978 = vmatmul.mubr.f32.gmra.mxu1 %v5479_v31  ;;  %v5801_v31 = vpop.permute.xlu1 %5800 }
 0x852   :  { %5983 = vmatprep.mubr.f32.mxu1 %v10281_v54 }
 0x855   :  { %5984 = vmatmul.mubr.f32.gmra.mxu1 %v5480_v60 }
 0x856   :  { %5989 = vmatprep.mubr.f32.mxu1 %v10281_v54 }
 0x859   :  { %5990 = vmatmul.mubr.f32.gmra.mxu1 %v5481_v9 }
 0x8dd   :  { %v9757_v53 = vpop.f32.mrf.mxu1 }
 0x8df   :  { %v9759_v22 = vpop.f32.mrf.mxu1 }
 0x8e1   :  { %v9761_v2 = vpop.f32.mrf.mxu1 }
 0x8e3   :  { %v9763_v45 = vpop.f32.mrf.mxu1 }
 0x8e5   :  { %v9765_v54 = vpop.f32.mrf.mxu1 }
 0x8e7   :  { %v9767_v61 = vpop.f32.mrf.mxu1 }
 0x8e9   :  { %v9769_v58 = vpop.f32.mrf.mxu1 }
 0x8eb   :  { %v9771_v29 = vpop.f32.mrf.mxu1 }
 0x8ed   :  { %v9773_v34 = vpop.f32.mrf.mxu1 }
 0x8ef   :  { %v9775_v16 = vpop.f32.mrf.mxu1 }
 0x8f1   :  { %v9777_v46 = vpop.f32.mrf.mxu1 }
 0x8f3   :  { %v9779_v47 = vpop.f32.mrf.mxu1 }
 0x8f5   :  { %v9781_v40 = vpop.f32.mrf.mxu1 }
 0x8f7   :  { %v9783_v62 = vpop.f32.mrf.mxu1 }
 0x8f9   :  { %v9785_v20 = vpop.f32.mrf.mxu1 }
 0x8fb   :  { %v9787_v41 = vpop.f32.mrf.mxu1 }
 0x8fd   :  { %v9789_v0 = vpop.f32.mrf.mxu1 }
 0x8ff   :  { %v5951_v59 = vpop.f32.mrf.mxu1 }
 0x901   :  { %v5955_v44 = vpop.f32.mrf.mxu1 }
 0x903   :  { %v5957_v8 = vpop.f32.mrf.mxu1 }
 0x905   :  { %v5961_v55 = vpop.f32.mrf.mxu1 }
 0x907   :  { %v5963_v6 = vpop.f32.mrf.mxu1 }
 0x909   :  { %v5967_v57 = vpop.f32.mrf.mxu1 }
 0x90a   :  { %v5968_v37 = vadd.f32 %v5967_v57, %v5817_v3  ;;  %v5956_v57 = vadd.f32 %v5955_v44, %v5809_v51  ;;  %v10374_v44 = vld [vmem:[#allocation79_spill] sm:$0xff] }
 0x90b   :  { %v5969_v17 = vpop.f32.mrf.mxu1 }
 0x90c   :  { %v5970_v60 = vadd.f32 %v5969_v17, %v5817_v3  ;;  %v10370_v17 = vld [vmem:[#allocation83_spill] sm:$0xff]  ;;  %v10371_v3 = vld [vmem:[#allocation81_spill] sm:$0xff] }
 0x90d   :  { %v5973_v11 = vpop.f32.mrf.mxu1 }
 0x90e   :  { %v5974_v26 = vadd.f32 %v5973_v11, %v5821_v27 }
 0x90f   :  { %v5975_v5 = vpop.f32.mrf.mxu1 }
 0x910   :  { %v5976_v49 = vadd.f32 %v5975_v5, %v5821_v27 }
 0x911   :  { %v5979_v36 = vpop.f32.mrf.mxu1 }
 0x912   :  { %v5980_v4 = vadd.f32 %v5979_v36, %v5825_v50  ;;  %v5964_v36 = vadd.f32 %v5963_v6, %v5813_v15  ;;  %v5793_v6 = vpop.permute.xlu1 %5792 }
 0x913   :  { %v5981_v18 = vpop.f32.mrf.mxu1 }
 0x914   :  { %v5982_v12 = vadd.f32 %v5981_v18, %v5825_v50  ;;  %v5797_v50 = vpop.permute.xlu0 %5796  ;;  %v6019_v18 = vadd.f32 %v5970_v60, %v10370_v17 }
 0x915   :  { %v5985_v28 = vpop.f32.mrf.mxu1 }
 0x916   :  { %v5986_v19 = vadd.f32 %v5985_v28, %v5829_v39  ;;  %v6023_v9 = vadd.f32 %v5982_v12, %v9423_v23  ;;  %v6052_v12 = vmax.f32 %v6019_v18, 0.0  ;;  %v5785_v60 = vpop.permute.xlu1 %5784 }
 0x917   :  { %v5987_v33 = vpop.f32.mrf.mxu1  ;;  %v5920_v18 = vadd.f32 %v9769_v58, %v5785_v60 }
 0x918   :  { %v5988_v10 = vadd.f32 %v5987_v33, %v5829_v39  ;;  %v6024_v24 = vadd.f32 %v5986_v19, %v9420_v52  ;;  %v6022_v39 = vadd.f32 %v5980_v4, %v9427_v7  ;;  %v5958_v52 = vadd.f32 %v5957_v8, %v5809_v51  ;;  %v5789_v19 = vpop.permute.xlu0 %5788 }
 0x919   :  { %v5991_v63 = vpop.f32.mrf.mxu1  ;;  %v6056_v23 = vmax.f32 %v6023_v9, 0.0  ;;  %v6018_v7 = vadd.f32 %v5968_v37, %v10371_v3  ;;  %v5952_v33 = vadd.f32 %v5951_v59, %v5805_v30  ;;  %v10375_v59 = vld [vmem:[#allocation78_spill] sm:$0xff]  ;;  %v5934_v9 = vadd.f32 %v9779_v47, %v5793_v6  ;;  %v10381_v47 = vld [vmem:[#allocation73_spill] sm:$0xff] }
 0x91a   :  { %v5992_v25 = vadd.f32 %v5991_v63, %v5833_v38  ;;  %v6025_v32 = vadd.f32 %v5988_v10, %v9414_v14  ;;  %v5962_v14 = vadd.f32 %v5961_v55, %v5813_v15  ;;  %v6057_v27 = vmax.f32 %v6024_v24, 0.0  ;;  %v10373_v15 = vld [vmem:[#allocation64_spill] sm:$0xff]  ;;  %v5777_v3 = vpop.permute.xlu1 %5776 }
 0x91b   :  { %v5993_v13 = vpop.f32.mrf.mxu1  ;;  %v6055_v28 = vmax.f32 %v6022_v39, 0.0  ;;  %v5950_v55 = vadd.f32 %v9789_v0, %v5805_v30  ;;  %v6015_v51 = vadd.f32 %v5958_v52, %v10374_v44  ;;  %v6014_v4 = vadd.f32 %v5956_v57, %v10375_v59  ;;  %v10376_v0 = vld [vmem:[#allocation88_spill] sm:$0xff]  ;;  %v10389_v59 = vld [vmem:[#allocation31_spill] sm:$0xff] }
 0x91c   :  { %v5994_v21 = vadd.f32 %v5993_v13, %v5833_v38  ;;  %v6026_v48 = vadd.f32 %v5992_v25, %v9411_v42  ;;  %v6021_v42 = vadd.f32 %v5976_v49, %v9431_v43  ;;  %v6058_v5 = vmax.f32 %v6025_v32, 0.0  ;;  %v10372_v43 = vld [vmem:[#allocation67_spill] sm:$0xff] }
 0x91d   :  { %v6017_v63 = vadd.f32 %v5964_v36, %v10372_v43  ;;  %v6016_v25 = vadd.f32 %v5962_v14, %v10373_v15  ;;  %v5946_v13 = vadd.f32 %v9787_v41, %v5801_v31  ;;  %v5940_v49 = vadd.f32 %v9783_v62, %v5797_v50  ;;  %v10379_v62 = vld [vmem:[#allocation87_spill] sm:$0xff]  ;;  %v5781_v36 = vpop.permute.xlu0 %5780 }
 0x91e   :  { %v6027_v56 = vadd.f32 %v5994_v21, %v9417_v35  ;;  %v6059_v38 = vmax.f32 %v6026_v48, 0.0  ;;  %v10369_v35 = vld [vmem:[#allocation80_spill] sm:$0xff]  ;;  %v6054_v10 = vmax.f32 %v6021_v42, 0.0  ;;  %v5944_v21 = vadd.f32 %v9785_v20, %v5801_v31  ;;  %v10378_v20 = vld [vmem:[#allocation75_spill] sm:$0xff] }
 0x91f   :  { %v6020_v11 = vadd.f32 %v5974_v26, %v10369_v35  ;;  %v6051_v48 = vmax.f32 %v6018_v7, 0.0  ;;  %v6013_v30 = vadd.f32 %v5952_v33, %v10376_v0  ;;  %v6050_v32 = vmax.f32 %v6017_v63, 0.0  ;;  %v10377_v26 = vld [vmem:[#allocation77_spill] sm:$0xff] }
 0x920   :  { %v6060_v1 = vmax.f32 %v6027_v56, 0.0  ;;  %v5938_v56 = vadd.f32 %v9781_v40, %v5797_v50  ;;  %v6012_v41 = vadd.f32 %v5950_v55, %v10377_v26  ;;  %v6049_v24 = vmax.f32 %v6016_v25, 0.0  ;;  %v10380_v50 = vld [vmem:[#allocation85_spill] sm:$0xff]  ;;  %v10386_v55 = vld [vmem:[#allocation70_spill] sm:$0xff] }
 0x921   :  { %v6053_v8 = vmax.f32 %v6020_v11, 0.0  ;;  %v6011_v31 = vadd.f32 %v5946_v13, %v10378_v20  ;;  %v5932_v37 = vadd.f32 %v9777_v46, %v5793_v6  ;;  %v6010_v39 = vadd.f32 %v5944_v21, %v10379_v62  ;;  %v10382_v46 = vld [vmem:[#allocation71_spill] sm:$0xff]  ;;  %v10394_v62 = vld [vmem:[#allocation18_spill] sm:$0xff] }
 0x922   :  { %6071 = vmatprep.subr.mxu0 %v6060_v1  ;;  %v6048_v1 = vmax.f32 %v6015_v51, 0.0  ;;  %v5928_v40 = vadd.f32 %v9775_v16, %v5789_v19  ;;  %v6009_v42 = vadd.f32 %v5940_v49, %v10380_v50  ;;  %v5926_v14 = vadd.f32 %v9773_v34, %v5789_v19  ;;  %v10384_v34 = vld [vmem:[#allocation74_spill] sm:$0xff] }
 0x923   :  { %6072 = vmatpush1.msra.mxu0 %v6059_v38  ;;  %v6047_v38 = vmax.f32 %v6014_v4, 0.0  ;;  %v6008_v35 = vadd.f32 %v5938_v56, %v10381_v47  ;;  %v6045_v11 = vmax.f32 %v6012_v41, 0.0  ;;  %v6007_v52 = vadd.f32 %v5934_v9, %v10382_v46  ;;  %v10392_v56 = vld [vmem:[#allocation94_spill] sm:$0xff] }
 0x924   :  { %6073 = vmatprep.subr.mxu0 %v6058_v5  ;;  %v6046_v5 = vmax.f32 %v6013_v30, 0.0  ;;  %v6044_v17 = vmax.f32 %v6011_v31, 0.0  ;;  %v6043_v57 = vmax.f32 %v6010_v39, 0.0  ;;  %v5916_v7 = vadd.f32 %v9767_v61, %v5781_v36  ;;  %v10387_v61 = vld [vmem:[#allocation53_spill] sm:$0xff]  ;;  %v10393_v41 = vld [vmem:[#allocation6_spill] sm:$0xff] }
 0x925   :  { %6074 = vmatpush1.msra.mxu0 %v6057_v27  ;;  %v5922_v27 = vadd.f32 %v9771_v29, %v5785_v60  ;;  %v6042_v6 = vmax.f32 %v6009_v42, 0.0  ;;  %v5914_v33 = vadd.f32 %v9765_v54, %v5781_v36  ;;  %v10385_v29 = vld [vmem:[#allocation72_spill] sm:$0xff]  ;;  %v6041_v63 = vmax.f32 %v6008_v35, 0.0  ;;  %v10388_v54 = vld [vmem:[#allocation51_spill] sm:$0xff] }
 0x926   :  { %6075 = vmatprep.subr.mxu0 %v6056_v23  ;;  %v10383_v23 = vld [vmem:[#allocation76_spill] sm:$0xff]  ;;  %v6004_v43 = vadd.f32 %v5926_v14, %v10385_v29  ;;  %v5910_v58 = vadd.f32 %v9763_v45, %v5777_v3  ;;  %v6040_v25 = vmax.f32 %v6007_v52, 0.0  ;;  %v6002_v19 = vadd.f32 %v5920_v18, %v10387_v61 }
 0x927   :  { %6076 = vmatpush1.msra.mxu0 %v6055_v28  ;;  %v6006_v16 = vadd.f32 %v5932_v37, %v10383_v23  ;;  %v6005_v28 = vadd.f32 %v5928_v40, %v10384_v34  ;;  %v6003_v15 = vadd.f32 %v5922_v27, %v10386_v55  ;;  %v6001_v51 = vadd.f32 %v5916_v7, %v10388_v54  ;;  %v6065_v37 = vpop.permute.xlu1 %6064 }
 0x928   :  { %6077 = vmatprep.subr.mxu0 %v6054_v10  ;;  %v5773_v10 = vpop.permute.xlu0 %5772  ;;  %v6000_v45 = vadd.f32 %v5914_v33, %v10389_v59  ;;  %v6037_v4 = vmax.f32 %v6004_v43, 0.0  ;;  %v6070_v39 = vrot.slane %v6065_v37, %v10394_v62 }
 0x929   :  { %6078 = vmatpush1.msra.mxu0 %v6053_v8  ;;  %v5908_v8 = vadd.f32 %v9761_v2, %v5777_v3  ;;  %v6039_v13 = vmax.f32 %v6006_v16, 0.0  ;;  %v5904_v44 = vadd.f32 %v9759_v22, %v5773_v10  ;;  %v5902_v21 = vadd.f32 %v9757_v53, %v5773_v10  ;;  %v10391_v2 = vld [vmem:[#allocation4_spill] sm:$0xff] }
 0x92a   :  { %6079 = vmatprep.subr.mxu0 %v6052_v12  ;;  %v6038_v12 = vmax.f32 %v6005_v28, 0.0  ;;  %v6036_v0 = vmax.f32 %v6003_v15, 0.0  ;;  %v6034_v26 = vmax.f32 %v6001_v51, 0.0  ;;  %v6033_v60 = vmax.f32 %v6000_v45, 0.0 }
 0x92b   :  { %6080 = vmatpush1.msra.mxu0 %v6051_v48  ;;  %v10390_v48 = vld [vmem:[#allocation22_spill] sm:$0xff]  ;;  %v5998_v30 = vadd.f32 %v5908_v8, %v10391_v2  ;;  %v5997_v22 = vadd.f32 %v5904_v44, %v10392_v56 }
 0x92c   :  { %6081 = vmatprep.subr.mxu0 %v6050_v32  ;;  %v5999_v49 = vadd.f32 %v5910_v58, %v10390_v48  ;;  %v6035_v32 = vmax.f32 %v6002_v19, 0.0 }
 0x92d   :  { %6082 = vmatpush1.msra.mxu0 %v6049_v24  ;;  %v5996_v24 = vadd.f32 %v5902_v21, %v10393_v41  ;;  %v6031_v9 = vmax.f32 %v5998_v30, 0.0  ;;  %v6030_v20 = vmax.f32 %v5997_v22, 0.0 }
 0x92e   :  { %6083 = vmatprep.subr.mxu0 %v6048_v1  ;;  %v6032_v53 = vmax.f32 %v5999_v49, 0.0  ;;  %v6028_v1 = vld [vmem:[%s9858_s9] sm:$0x1] }
 0x92f   :  { %6084 = vmatpush1.msra.mxu0 %v6047_v38  ;;  %v6029_v31 = vmax.f32 %v5996_v24, 0.0 }
 0x930   :  { %6085 = vmatprep.subr.mxu0 %v6046_v5 }
 0x931   :  { %6086 = vmatpush1.msra.mxu0 %v6045_v11 }
 0x932   :  { %6087 = vmatprep.subr.mxu0 %v6044_v17 }
 0x933   :  { %6088 = vmatpush1.msra.mxu0 %v6043_v57 }
 0x934   :  { %6089 = vmatprep.subr.mxu0 %v6042_v6 }
 0x935   :  { %6090 = vmatpush1.msra.mxu0 %v6041_v63 }
 0x936   :  { %6091 = vmatprep.subr.mxu0 %v6040_v25 }
 0x937   :  { %6092 = vmatpush1.msra.mxu0 %v6039_v13 }
 0x938   :  { %6093 = vmatprep.subr.mxu0 %v6038_v12 }
 0x939   :  { %6094 = vmatpush1.msra.mxu0 %v6037_v4 }
 0x93a   :  { %6095 = vmatprep.subr.mxu0 %v6036_v0 }
 0x93b   :  { %6096 = vmatpush1.msra.mxu0 %v6035_v32 }
 0x93c   :  { %6097 = vmatprep.subr.mxu0 %v6034_v26 }
 0x93d   :  { %6098 = vmatpush1.msra.mxu0 %v6033_v60 }
 0x93e   :  { %6099 = vmatprep.subr.mxu0 %v6032_v53 }
 0x93f   :  { %6100 = vmatpush1.msra.mxu0 %v6031_v9 }
 0x940   :  { %6101 = vmatprep.subr.mxu0 %v6030_v20 }
 0x941   :  { %6102 = vmatpush1.msra.mxu0 %v6029_v31 }
 0x942   :  { %6136 = vmatmul.mubr.f32.vlgmr.msra.gmra.mxu0 %v6028_v1 }
 0xa02   :  { %v6137_v38 = vpop.f32.mrf.mxu0 }
 0xa03   :  { %v6138_v36 = vadd.f32 %v6137_v38, %v6070_v39 }
 0xa04   :  { %v6139_v40 = vpop.f32.mrf.mxu0 }
 0xa05   :  { %v6215_v50 = vmul.f32 -1.442695, %v6138_v36  ;;  %v6140_v42 = vadd.f32 %v6139_v40, %v6070_v39 }
 0xa07   :  { %6336 = vpow2.f32 %v6215_v50  ;;  %v6216_v5 = vmul.f32 -1.442695, %v6140_v42 }
 0xa09   :  { %6338 = vpow2.f32 %v6216_v5 }
 0xa14   :  { %v6337_v14 = vpop.eup %6336 }
 0xa15   :  { %v6148_v47 = vadd.f32 1.0, %v6337_v14 }
 0xa16   :  { %v6339_v35 = vpop.eup %6338 }
 0xa17   :  { %6340 = vrcp.f32 %v6148_v47  ;;  %v6149_v11 = vadd.f32 1.0, %v6339_v35 }
 0xa19   :  { %6342 = vrcp.f32 %v6149_v11 }
 0xa24   :  { %v6341_v27 = vpop.eup %6340 }
 0xa25   :  { %v6156_v46 = vrot.slane %v6341_v27, 7 }
 0xa26   :  { %v6343_v52 = vpop.eup %6342 }
 0xa27   :  { %v6157_v17 = vrot.slane %v6343_v52, 7  ;;  %v6161_v18 = vsel %vm6160_vm10, %v6138_v36, %v6156_v46 }
 0xa29   :  { %v6162_v23 = vsel %vm6160_vm10, %v6140_v42, %v6157_v17 }
 0xa2a   :  { %v6165_v16 = vcombine.low %v6161_v18, %v6162_v23 }
 0xa2c   :  { %6217 = vst.sshfl [vmem:[%s9859_s12] sm:$0x33 pattern:$0x76325410] %v6165_v16 }

</bundles_post_ra>
